<compile_context>
chip_gen: v7x
topology: tpu7x:2x2x1
jax: 0.10.0
libtpu: 0.0.40
codegen_flags: <defaults>
</compile_context>

<pallas_src>
import functools

import jax
import jax.numpy as jnp
from jax import lax
from jax.experimental import pallas as pl
from jax.experimental.pallas import tpu as pltpu

EPS = 1e-5
_TM_TARGET = 512        # max rows per tile (multiple of 8 sublanes)
_MIN_GRID_STEPS = 4     # >= 2x TensorCores (v7x) so both cores get work


# ----------------------------------------------------------------- utils ---

def _round_up(x, mult):
    return ((x + mult - 1) // mult) * mult


def _pick_tile(m, target=_TM_TARGET, min_steps=_MIN_GRID_STEPS):
    """Return (row_tile, padded_rows).

    Prefers the largest multiple-of-8 divisor of m that is <= target AND
    yields >= min_steps grid steps.  Never falls back to a single whole-array
    block (VMEM safety on v5e's 16 MiB scoped / v7x's 64 MiB physical VMEM);
    awkward m is padded up to a multiple of a bounded tile instead.
    """
    if m >= 8 * min_steps:
        divs = [t for t in range(8, min(target, m // min_steps) + 1, 8)
                if m % t == 0]
        if divs:
            return max(divs), m
    divs = [t for t in range(8, min(target, m) + 1, 8) if m % t == 0]
    if divs:
        return max(divs), m
    tm = min(target, 256, _round_up(m, 8))
    return tm, _round_up(m, tm)


def _pick_row_tile(n, h, w, target_rows=_TM_TARGET, min_steps=_MIN_GRID_STEPS):
    """Image-row tile for the fused deconv kernel (grid = (N, H // th))."""
    divs = [t for t in range(1, h + 1) if h % t == 0]
    ok = [t for t in divs if t * w <= target_rows]
    if not ok:
        return 1
    pref = [t for t in ok if n * (h // t) >= min_steps]
    return max(pref) if pref else max(ok)


def _parallel_params(ndims=1):
    return pltpu.CompilerParams(dimension_semantics=("parallel",) * ndims)


# --------------------------------------------------------------- kernels ---

def _matmul_stats_kernel(x_ref, w_ref, y_ref, s_ref):
    # y = x @ w ; also emit this tile's BatchNorm partials (sum, sum of sq).
    y = jnp.dot(x_ref[...], w_ref[...], preferred_element_type=jnp.float32)
    y_ref[...] = y
    s_ref[0, 0:1, :] = jnp.sum(y, axis=0, keepdims=True)
    s_ref[0, 1:2, :] = jnp.sum(y * y, axis=0, keepdims=True)


def _bn_relu_matmul_stats_kernel(x_ref, a_ref, c_ref, w_ref, y_ref, s_ref, *,
                                 valid_rows, tile_rows):
    # Previous layer's BN affine + ReLU fused into the input load, then the
    # 1x1-conv matmul plus this layer's BatchNorm partials.
    z = jnp.maximum(x_ref[...] * a_ref[...] + c_ref[...], 0.0)
    if valid_rows is not None:   # static: ragged tail was zero-padded
        row = (pl.program_id(0) * tile_rows
               + lax.broadcasted_iota(jnp.int32, z.shape, 0))
        z = jnp.where(row < valid_rows, z, 0.0)
    y = jnp.dot(z, w_ref[...], preferred_element_type=jnp.float32)
    y_ref[...] = y
    s_ref[0, 0:1, :] = jnp.sum(y, axis=0, keepdims=True)
    s_ref[0, 1:2, :] = jnp.sum(y * y, axis=0, keepdims=True)


def _deconv_fused_kernel(cur_ref, halo_ref, a_ref, c_ref, wk_ref,
                         y_ref, s_ref, zp_ref):
    # cur_ref : (1, th, W, C)   RAW conv1 output rows [r0, r0+th)
    # halo_ref: (1, 1,  W, C)   RAW conv1 output row r0+th (clamped at bottom)
    # a_ref/c_ref: (1, C)       folded BN1 scale / shift
    # wk_ref  : (4, C, 4C)      sub-pixel packed ConvTranspose weight blocks
    # y_ref   : (1, th, W, 4C)  phase-packed deconv output
    # s_ref   : (1, 1, 2, 4C)   per-tile BN2 partials (sum, sum_sq)
    # zp_ref  : (1, th+1, W+1, C) VMEM scratch: BN1+ReLU'd rows + zero pad
    th = cur_ref.shape[1]
    w = cur_ref.shape[2]
    c = cur_ref.shape[3]
    a = a_ref[...]
    b = c_ref[...]

    # BN1 + ReLU, written into the padded scratch.  Zero padding is applied
    # AFTER the affine+ReLU (ReLU(0*a + c) != 0 in general).
    zp_ref[:, 0:th, 0:w, :] = jnp.maximum(cur_ref[...] * a + b, 0.0)
    zh = jnp.maximum(halo_ref[...] * a + b, 0.0)
    is_bottom = pl.program_id(1) == pl.num_programs(1) - 1
    zp_ref[:, th:th + 1, 0:w, :] = jnp.where(is_bottom, 0.0, zh)
    zp_ref[:, :, w:w + 1, :] = jnp.zeros((1, th + 1, 1, c), jnp.float32)

    # 2x2 sub-pixel patches, built by slicing the scratch (no HBM traffic).
    p00 = zp_ref[:, 0:th, 0:w, :].reshape(th * w, c)
    p01 = zp_ref[:, 0:th, 1:w + 1, :].reshape(th * w, c)
    p10 = zp_ref[:, 1:th + 1, 0:w, :].reshape(th * w, c)
    p11 = zp_ref[:, 1:th + 1, 1:w + 1, :].reshape(th * w, c)

    y = jnp.dot(p00, wk_ref[0], preferred_element_type=jnp.float32)
    y = y + jnp.dot(p01, wk_ref[1], preferred_element_type=jnp.float32)
    y = y + jnp.dot(p10, wk_ref[2], preferred_element_type=jnp.float32)
    y = y + jnp.dot(p11, wk_ref[3], preferred_element_type=jnp.float32)

    y_ref[...] = y.reshape(1, th, w, 4 * c)
    s_ref[0, 0, 0:1, :] = jnp.sum(y, axis=0, keepdims=True)
    s_ref[0, 0, 1:2, :] = jnp.sum(y * y, axis=0, keepdims=True)


def _bn_relu_kernel(x_ref, a_ref, c_ref, o_ref):
    # Elementwise BatchNorm (pre-folded scale/shift) + ReLU.
    o_ref[...] = jnp.maximum(x_ref[...] * a_ref[...] + c_ref[...], 0.0)


# --------------------------------------------------------- pallas wrappers ---

def matmul_with_stats(x, w):
    m, k = x.shape
    c = w.shape[1]
    tm, mp = _pick_tile(m)
    if mp != m:
        x = jnp.pad(x, ((0, mp - m), (0, 0)))   # zero rows: zero stats contrib
    nt = mp // tm
    y, s = pl.pallas_call(
        _matmul_stats_kernel,
        grid=(nt,),
        in_specs=[pl.BlockSpec((tm, k), lambda i: (i, 0)),
                  pl.BlockSpec((k, c), lambda i: (0, 0))],
        out_specs=(pl.BlockSpec((tm, c), lambda i: (i, 0)),
                   pl.BlockSpec((1, 2, c), lambda i: (i, 0, 0))),
        out_shape=(jax.ShapeDtypeStruct((mp, c), jnp.float32),
                   jax.ShapeDtypeStruct((nt, 2, c), jnp.float32)),
        compiler_params=_parallel_params(1),
    )(x, w)
    if mp != m:
        y = y[:m]
    return y, s


def bn_relu_matmul_with_stats(x, a, c_shift, w):
    m, k = x.shape
    c = w.shape[1]
    tm, mp = _pick_tile(m)
    if mp != m:
        x = jnp.pad(x, ((0, mp - m), (0, 0)))
    nt = mp // tm
    kernel = functools.partial(_bn_relu_matmul_stats_kernel,
                               valid_rows=(m if mp != m else None),
                               tile_rows=tm)
    y, s = pl.pallas_call(
        kernel,
        grid=(nt,),
        in_specs=[pl.BlockSpec((tm, k), lambda i: (i, 0)),
                  pl.BlockSpec((1, k), lambda i: (0, 0)),
                  pl.BlockSpec((1, k), lambda i: (0, 0)),
                  pl.BlockSpec((k, c), lambda i: (0, 0))],
        out_specs=(pl.BlockSpec((tm, c), lambda i: (i, 0)),
                   pl.BlockSpec((1, 2, c), lambda i: (i, 0, 0))),
        out_shape=(jax.ShapeDtypeStruct((mp, c), jnp.float32),
                   jax.ShapeDtypeStruct((nt, 2, c), jnp.float32)),
        compiler_params=_parallel_params(1),
    )(x, a.reshape(1, k), c_shift.reshape(1, k), w)
    if mp != m:
        y = y[:m]
    return y, s


def deconv_subpixel(y1_raw_nhwc, a1, c1, wt2):
    """Fused BN1+ReLU -> 2x2 patch build -> 4-phase sub-pixel deconv matmul.

    Input is the RAW conv1 output [N, H, W, C]; output is the phase-packed
    deconv result [N, H, W, 4C] plus per-tile BN2 partials [N, HT, 2, 4C].
    """
    n, h, w, c = y1_raw_nhwc.shape
    w_dec = _subpixel_weight(wt2).reshape(4, c, 4 * c)
    th = _pick_row_tile(n, h, w)
    ht = h // th

    cur_spec = pl.BlockSpec((1, th, w, c), lambda b, i: (b, i, 0, 0))
    halo_spec = pl.BlockSpec(
        (1, 1, w, c),
        lambda b, i: (b, jnp.minimum((i + 1) * th, h - 1), 0, 0))

    y2, s2 = pl.pallas_call(
        _deconv_fused_kernel,
        grid=(n, ht),
        in_specs=[cur_spec,
                  halo_spec,
                  pl.BlockSpec((1, c), lambda b, i: (0, 0)),
                  pl.BlockSpec((1, c), lambda b, i: (0, 0)),
                  pl.BlockSpec((4, c, 4 * c), lambda b, i: (0, 0, 0))],
        out_specs=(pl.BlockSpec((1, th, w, 4 * c), lambda b, i: (b, i, 0, 0)),
                   pl.BlockSpec((1, 1, 2, 4 * c), lambda b, i: (b, i, 0, 0))),
        out_shape=(jax.ShapeDtypeStruct((n, h, w, 4 * c), jnp.float32),
                   jax.ShapeDtypeStruct((n, ht, 2, 4 * c), jnp.float32)),
        scratch_shapes=[pltpu.VMEM((1, th + 1, w + 1, c), jnp.float32)],
        compiler_params=_parallel_params(2),
    )(y1_raw_nhwc, y1_raw_nhwc, a1.reshape(1, c), c1.reshape(1, c), w_dec)
    return y2, s2


def _bn_relu_call(x2d, a_row, c_row, tm):
    m, c = x2d.shape
    nt = m // tm
    return pl.pallas_call(
        _bn_relu_kernel,
        grid=(nt,),
        in_specs=[pl.BlockSpec((tm, c), lambda i: (i, 0)),
                  pl.BlockSpec((1, c), lambda i: (0, 0)),
                  pl.BlockSpec((1, c), lambda i: (0, 0))],
        out_specs=pl.BlockSpec((tm, c), lambda i: (i, 0)),
        out_shape=jax.ShapeDtypeStruct((m, c), jnp.float32),
        compiler_params=_parallel_params(1),
    )(x2d, a_row, c_row)


def bn_relu(x, a, c_shift):
    """Elementwise BN affine + ReLU.

    When the channel count divides the lane width, run on a free lane-dense
    [rows, lanes] view (lanes in {512,256,128}) so stores are unmasked vst
    instead of masked vst.msk on a C=8/16/32-wide output.
    """
    m, c = x.shape
    lanes = 0
    for cand in (512, 256, 128):
        if cand % c == 0 and (m * c) % cand == 0:
            lanes = cand
            break
    if lanes:
        rows = (m * c) // lanes
        rep = lanes // c
        a_v = jnp.tile(a, rep).reshape(1, lanes)
        c_v = jnp.tile(c_shift, rep).reshape(1, lanes)
        xr = x.reshape(rows, lanes)
        tm, rp = _pick_tile(rows)
        if rp != rows:
            xr = jnp.pad(xr, ((0, rp - rows), (0, 0)))
        y = _bn_relu_call(xr, a_v, c_v, tm)
        if rp != rows:
            y = y[:rows]
        return y.reshape(m, c)
    # channel-sparse fallback
    tm, mp = _pick_tile(m)
    xp = jnp.pad(x, ((0, mp - m), (0, 0))) if mp != m else x
    y = _bn_relu_call(xp, a.reshape(1, c), c_shift.reshape(1, c), tm)
    return y[:m] if mp != m else y


# ---------------------------------------------------------- host-side glue ---

def _bn_affine(partials, count, gamma, beta):
    """Fold per-tile (sum, sum_sq) partials into BN (scale, shift).

    partials: [..., 2, P*C] where any sub-pixel phase packing P is folded
    into the channel statistics.  count = total elements per real channel.
    NOTE: E[y^2]-E[y]^2 in f32; fine here, use Welford for extreme means.
    """
    c = gamma.shape[0]
    s = partials.reshape(-1, 2, partials.shape[-1]).sum(axis=0)   # [2, P*C]
    s = s.reshape(2, -1, c).sum(axis=1)                           # [2, C]
    mean = s[0] / count
    var = s[1] / count - mean * mean        # biased variance (train-mode BN)
    inv = lax.rsqrt(var + EPS)
    a = gamma * inv
    return a, beta - mean * a


def _subpixel_weight(wt):
    """Phase-packed forward weight for ConvTranspose2d(3x3, s=2, p=1, op=1).

    wt: [Cin, Cout, 3, 3] (PyTorch ConvTranspose2d layout).
    Rows: 2x2 input patch [x(m,n) | x(m,n+1) | x(m+1,n) | x(m+1,n+1)].
    Cols: output sub-pixel phases [(0,0) | (0,1) | (1,0) | (1,1)] (dh, dw).
    Only 9 of the 16 Cin x Cout blocks are non-zero (the 3x3 taps).
    """
    ci, co = wt.shape[0], wt.shape[1]
    w = jnp.zeros((4 * ci, 4 * co), jnp.float32)
    taps = [(0, 0, 1, 1),
            (0, 1, 1, 2), (1, 1, 1, 0),
            (0, 2, 2, 1), (2, 2, 0, 1),
            (0, 3, 2, 2), (1, 3, 2, 0), (2, 3, 0, 2), (3, 3, 0, 0)]
    for r, p, kh, kw in taps:
        w = w.at[r * ci:(r + 1) * ci, p * co:(p + 1) * co].set(wt[:, :, kh, kw])
    return w


# ----------------------------------------------------------------- module ---

def init_decoder_block_params(key, in_channels, n_filters):
    cmid = in_channels // 4
    ks = jax.random.split(key, 6)
    return {
        # conv1: 1x1, in_channels -> cmid (stored as [Cin, Cmid] matmul weight)
        "w1": jax.random.normal(ks[0], (in_channels, cmid), jnp.float32) * 0.1,
        "b1": jax.random.normal(ks[1], (cmid,), jnp.float32) * 0.1,
        "g1": jnp.ones((cmid,), jnp.float32),
        "be1": jnp.zeros((cmid,), jnp.float32),
        # deconv2: ConvTranspose2d weight, PyTorch layout [Cin, Cout, kH, kW]
        "wt2": jax.random.normal(ks[2], (cmid, cmid, 3, 3), jnp.float32) * 0.1,
        "b2": jax.random.normal(ks[3], (cmid,), jnp.float32) * 0.1,
        "g2": jnp.ones((cmid,), jnp.float32),
        "be2": jnp.zeros((cmid,), jnp.float32),
        # conv3: 1x1, cmid -> n_filters
        "w3": jax.random.normal(ks[4], (cmid, n_filters), jnp.float32) * 0.1,
        "b3": jax.random.normal(ks[5], (n_filters,), jnp.float32) * 0.1,
        "g3": jnp.ones((n_filters,), jnp.float32),
        "be3": jnp.zeros((n_filters,), jnp.float32),
    }


def decoder_block_forward(x_nchw, p):
    n, cin, h, w = x_nchw.shape
    cmid = p["w1"].shape[1]
    nf = p["w3"].shape[1]
    m = n * h * w

    # NCHW -> NHWC (single XLA relayout at the head).
    x = jnp.transpose(x_nchw, (0, 2, 3, 1)).reshape(m, cin)      # [M, Cin]

    # ---- conv1 (1x1) + BN1 stats (conv bias dropped: cancelled by BN) -----
    y1_raw, s1 = matmul_with_stats(x, p["w1"])
    a1, c1 = _bn_affine(s1, m, p["g1"], p["be1"])

    # ---- fused BN1+ReLU -> patch build -> sub-pixel deconv + BN2 stats ----
    y2_raw, s2 = deconv_subpixel(y1_raw.reshape(n, h, w, cmid), a1, c1,
                                 p["wt2"])                       # [N,H,W,4C]
    a2, c2 = _bn_affine(s2, 4 * m, p["g2"], p["be2"])            # all phases

    # ---- conv3 (1x1) with BN2+ReLU fused into the load, + BN3 stats -------
    # Stay phase-packed: [N,H,W,4C] -> [4M, C] is a contiguous (free) reshape;
    # conv3/BN are per-channel and row-order independent.
    y3_raw, s3 = bn_relu_matmul_with_stats(y2_raw.reshape(4 * m, cmid),
                                           a2, c2, p["w3"])      # [4M, nf]
    a3, c3 = _bn_affine(s3, 4 * m, p["g3"], p["be3"])

    # ---- BN3 + ReLU (lane-dense elementwise kernel) ------------------------
    y3 = bn_relu(y3_raw, a3, c3)

    # Single relayout at the tail: phase-unpack + NHWC->NCHW in one transpose.
    y3 = y3.reshape(n, h, w, 2, 2, nf)
    return jnp.transpose(y3, (0, 5, 1, 3, 2, 4)).reshape(n, nf, 2 * h, 2 * w)


# ------------------------------------------------------------- reference ---

def decoder_block_reference(x_nchw, p):
    x = jnp.transpose(x_nchw, (0, 2, 3, 1))

    def bn_relu_ref(y, g, b):
        mu = jnp.mean(y, axis=(0, 1, 2), keepdims=True)
        var = jnp.mean((y - mu) ** 2, axis=(0, 1, 2), keepdims=True)
        return jnp.maximum((y - mu) * lax.rsqrt(var + EPS) * g + b, 0.0)

    y = jnp.einsum('nhwc,cd->nhwd', x, p["w1"]) + p["b1"]
    y = bn_relu_ref(y, p["g1"], p["be1"])
    w_conv = jnp.transpose(jnp.flip(p["wt2"], (2, 3)), (2, 3, 0, 1))
    y = lax.conv_general_dilated(
        y, w_conv, window_strides=(1, 1), padding=((1, 2), (1, 2)),
        lhs_dilation=(2, 2),
        dimension_numbers=('NHWC', 'HWIO', 'NHWC')) + p["b2"]
    y = bn_relu_ref(y, p["g2"], p["be2"])
    y = jnp.einsum('nhwc,cd->nhwd', y, p["w3"]) + p["b3"]
    y = bn_relu_ref(y, p["g3"], p["be3"])
    return jnp.transpose(y, (0, 3, 1, 2))


# ------------------------------------------------------------------ main ---

if __name__ == "__main__":
    key = jax.random.PRNGKey(0)
    k_x, k_p = jax.random.split(key)

    N, Cin, H, W = 2, 32, 16, 16        # in_channels=32 -> cmid=8
    n_filters = 16
    x = jax.random.normal(k_x, (N, Cin, H, W), jnp.float32)
    params = init_decoder_block_params(k_p, Cin, n_filters)

    fwd = jax.jit(decoder_block_forward)
    out = jax.block_until_ready(fwd(x, params))
    ref = jax.block_until_ready(decoder_block_reference(x, params))

    assert out.shape == (N, n_filters, 2 * H, 2 * W), out.shape
    max_err = float(jnp.max(jnp.abs(out - ref)))
    assert jnp.allclose(out, ref, atol=1e-4, rtol=1e-4), max_err

    print("KERNEL_OK")
</pallas_src>

<mosaic_0001>
module attributes {stable_mosaic.version = 11 : i64} {
  func.func @_matmul_stats_kernel(%arg0: i32, %arg1: memref<128x32xf32, #tpu.memory_space<vmem>>, %arg2: memref<32x8xf32, #tpu.memory_space<vmem>>, %arg3: memref<128x8xf32, #tpu.memory_space<vmem>>, %arg4: memref<1x2x8xf32, #tpu.memory_space<vmem>>) attributes {dimension_semantics = [#tpu.dimension_semantics<parallel>], iteration_bounds = array<i64: 4>, scalar_prefetch = 0 : i64, scratch_operands = 0 : i64, tpu.core_type = #tpu.core_type<tc>, window_params = [{transform_indices = @transform_0, window_bounds = array<i64: 128, 32>}, {pipeline_mode = #tpu.pipeline_mode<synchronous>, transform_indices = @transform_1, window_bounds = array<i64: 32, 8>}, {transform_indices = @transform_2, window_bounds = array<i64: 128, 8>}, {transform_indices = @transform_3, window_bounds = array<i64: 1, 2, 8>}]} {
    %c0 = arith.constant 0 : index
    %c0_0 = arith.constant 0 : index
    %0 = vector.load %arg1[%c0, %c0_0] : memref<128x32xf32, #tpu.memory_space<vmem>>, vector<128x32xf32>
    %c0_1 = arith.constant 0 : index
    %c0_2 = arith.constant 0 : index
    %1 = vector.load %arg2[%c0_1, %c0_2] : memref<32x8xf32, #tpu.memory_space<vmem>>, vector<32x8xf32>
    %cst = arith.constant dense<0.000000e+00> : vector<128x8xf32>
    %2 = tpu.matmul %0, %1, %cst {dimension_numbers = #tpu.dot_dimension_numbers<[1], [0], [0], [1], [0, 0, 1, 1], [], []>} : vector<128x32xf32>, vector<32x8xf32>, vector<128x8xf32> -> vector<128x8xf32>
    %c0_3 = arith.constant 0 : index
    %c0_4 = arith.constant 0 : index
    %3 = vector.load %arg3[%c0_3, %c0_4] : memref<128x8xf32, #tpu.memory_space<vmem>>, vector<128x8xf32>
    tpu.vector_store %arg3[%c0_3, %c0_4], %2 {strides = array<i32>} : memref<128x8xf32, #tpu.memory_space<vmem>>, vector<128x8xf32>,
    %cst_5 = arith.constant dense<0.000000e+00> : vector<8xf32>
    %4 = vector.multi_reduction <add>, %2, %cst_5 [0] : vector<128x8xf32> to vector<8xf32>
    %5 = vector.shape_cast %4 : vector<8xf32> to vector<1x8xf32>
    %c0_6 = arith.constant 0 : index
    %c0_7 = arith.constant 0 : index
    %c0_8 = arith.constant 0 : index
    %6 = vector.load %arg4[%c0_6, %c0_7, %c0_8] : memref<1x2x8xf32, #tpu.memory_space<vmem>>, vector<1x1x8xf32>
    %7 = vector.shape_cast %6 : vector<1x1x8xf32> to vector<1x8xf32>
    %8 = vector.shape_cast %5 : vector<1x8xf32> to vector<1x1x8xf32>
    tpu.vector_store %arg4[%c0_6, %c0_7, %c0_8], %8 {strides = array<i32>} : memref<1x2x8xf32, #tpu.memory_space<vmem>>, vector<1x1x8xf32>,
    %9 = arith.mulf %2, %2 : vector<128x8xf32>
    %cst_9 = arith.constant dense<0.000000e+00> : vector<8xf32>
    %10 = vector.multi_reduction <add>, %9, %cst_9 [0] : vector<128x8xf32> to vector<8xf32>
    %11 = vector.shape_cast %10 : vector<8xf32> to vector<1x8xf32>
    %c0_10 = arith.constant 0 : index
    %c1 = arith.constant 1 : index
    %c0_11 = arith.constant 0 : index
    %12 = vector.load %arg4[%c0_10, %c1, %c0_11] : memref<1x2x8xf32, #tpu.memory_space<vmem>>, vector<1x1x8xf32>
    %13 = vector.shape_cast %12 : vector<1x1x8xf32> to vector<1x8xf32>
    %14 = vector.shape_cast %11 : vector<1x8xf32> to vector<1x1x8xf32>
    tpu.vector_store %arg4[%c0_10, %c1, %c0_11], %14 {strides = array<i32>} : memref<1x2x8xf32, #tpu.memory_space<vmem>>, vector<1x1x8xf32>,
    return
  }
  func.func @transform_0(%arg0: i32) -> (i32, i32) {
    %c0_i32 = arith.constant 0 : i32
    %c0_i32_0 = arith.constant 0 : i32
    return %arg0, %c0_i32 : i32, i32
  }
  func.func @transform_1(%arg0: i32) -> (i32, i32) {
    %c0_i32 = arith.constant 0 : i32
    %c0_i32_0 = arith.constant 0 : i32
    %c0_i32_1 = arith.constant 0 : i32
    return %c0_i32, %c0_i32_0 : i32, i32
  }
  func.func @transform_2(%arg0: i32) -> (i32, i32) {
    %c0_i32 = arith.constant 0 : i32
    %c0_i32_0 = arith.constant 0 : i32
    return %arg0, %c0_i32 : i32, i32
  }
  func.func @transform_3(%arg0: i32) -> (i32, i32, i32) {
    %c0_i32 = arith.constant 0 : i32
    %c0_i32_0 = arith.constant 0 : i32
    %c0_i32_1 = arith.constant 0 : i32
    return %arg0, %c0_i32, %c0_i32_0 : i32, i32, i32
  }
}

module attributes {stable_mosaic.version = 11 : i64} {
  func.func @_deconv_fused_kernel(%arg0: i32, %arg1: i32, %arg2: memref<1x8x16x8xf32, #tpu.memory_space<vmem>>, %arg3: memref<1x1x16x8xf32, #tpu.memory_space<vmem>>, %arg4: memref<1x8xf32, #tpu.memory_space<vmem>>, %arg5: memref<1x8xf32, #tpu.memory_space<vmem>>, %arg6: memref<4x8x32xf32, #tpu.memory_space<vmem>>, %arg7: memref<1x8x16x32xf32, #tpu.memory_space<vmem>>, %arg8: memref<1x1x2x32xf32, #tpu.memory_space<vmem>>, %arg9: memref<1x9x17x8xf32, #tpu.memory_space<vmem>>) attributes {dimension_semantics = [#tpu.dimension_semantics<parallel>, #tpu.dimension_semantics<parallel>], iteration_bounds = array<i64: 2, 2>, scalar_prefetch = 0 : i64, scratch_operands = 1 : i64, tpu.core_type = #tpu.core_type<tc>, window_params = [{transform_indices = @transform_0, window_bounds = array<i64: 1, 8, 16, 8>}, {transform_indices = @transform_1, window_bounds = array<i64: 1, 1, 16, 8>}, {pipeline_mode = #tpu.pipeline_mode<synchronous>, transform_indices = @transform_2, window_bounds = array<i64: 1, 8>}, {pipeline_mode = #tpu.pipeline_mode<synchronous>, transform_indices = @transform_3, window_bounds = array<i64: 1, 8>}, {pipeline_mode = #tpu.pipeline_mode<synchronous>, transform_indices = @transform_4, window_bounds = array<i64: 4, 8, 32>}, {transform_indices = @transform_5, window_bounds = array<i64: 1, 8, 16, 32>}, {transform_indices = @transform_6, window_bounds = array<i64: 1, 1, 2, 32>}]} {
    %c0 = arith.constant 0 : index
    %c0_0 = arith.constant 0 : index
    %0 = vector.load %arg4[%c0, %c0_0] : memref<1x8xf32, #tpu.memory_space<vmem>>, vector<1x8xf32>
    %c0_1 = arith.constant 0 : index
    %c0_2 = arith.constant 0 : index
    %1 = vector.load %arg5[%c0_1, %c0_2] : memref<1x8xf32, #tpu.memory_space<vmem>>, vector<1x8xf32>
    %c0_3 = arith.constant 0 : index
    %c0_4 = arith.constant 0 : index
    %c0_5 = arith.constant 0 : index
    %c0_6 = arith.constant 0 : index
    %2 = vector.load %arg2[%c0_3, %c0_4, %c0_5, %c0_6] : memref<1x8x16x8xf32, #tpu.memory_space<vmem>>, vector<1x8x16x8xf32>
    %3 = vector.shape_cast %0 : vector<1x8xf32> to vector<1x1x1x8xf32>
    %4 = vector.broadcast %3 : vector<1x1x1x8xf32> to vector<1x8x16x8xf32>
    %5 = arith.mulf %2, %4 : vector<1x8x16x8xf32>
    %6 = vector.shape_cast %1 : vector<1x8xf32> to vector<1x1x1x8xf32>
    %7 = vector.broadcast %6 : vector<1x1x1x8xf32> to vector<1x8x16x8xf32>
    %8 = arith.addf %5, %7 : vector<1x8x16x8xf32>
    %cst = arith.constant 0.000000e+00 : f32
    %9 = vector.broadcast %cst : f32 to vector<1x8x16x8xf32>
    %10 = arith.maximumf %8, %9 : vector<1x8x16x8xf32>
    %c0_7 = arith.constant 0 : index
    %c0_8 = arith.constant 0 : index
    %c0_9 = arith.constant 0 : index
    %c0_10 = arith.constant 0 : index
    %11 = vector.load %arg9[%c0_7, %c0_8, %c0_9, %c0_10] : memref<1x9x17x8xf32, #tpu.memory_space<vmem>>, vector<1x8x16x8xf32>
    tpu.vector_store %arg9[%c0_7, %c0_8, %c0_9, %c0_10], %10 {strides = array<i32>} : memref<1x9x17x8xf32, #tpu.memory_space<vmem>>, vector<1x8x16x8xf32>,
    %c0_11 = arith.constant 0 : index
    %c0_12 = arith.constant 0 : index
    %c0_13 = arith.constant 0 : index
    %c0_14 = arith.constant 0 : index
    %12 = vector.load %arg3[%c0_11, %c0_12, %c0_13, %c0_14] : memref<1x1x16x8xf32, #tpu.memory_space<vmem>>, vector<1x1x16x8xf32>
    %13 = vector.shape_cast %0 : vector<1x8xf32> to vector<1x1x1x8xf32>
    %14 = vector.broadcast %13 : vector<1x1x1x8xf32> to vector<1x1x16x8xf32>
    %15 = arith.mulf %12, %14 : vector<1x1x16x8xf32>
    %16 = vector.shape_cast %1 : vector<1x8xf32> to vector<1x1x1x8xf32>
    %17 = vector.broadcast %16 : vector<1x1x1x8xf32> to vector<1x1x16x8xf32>
    %18 = arith.addf %15, %17 : vector<1x1x16x8xf32>
    %cst_15 = arith.constant 0.000000e+00 : f32
    %19 = vector.broadcast %cst_15 : f32 to vector<1x1x16x8xf32>
    %20 = arith.maximumf %18, %19 : vector<1x1x16x8xf32>
    %c1_i32 = arith.constant 1 : i32
    %21 = arith.cmpi eq, %arg1, %c1_i32 : i32
    %cst_16 = arith.constant 0.000000e+00 : f32
    %22 = vector.broadcast %cst_16 : f32 to vector<1x1x16x8xf32>
    %23 = arith.select %21, %22, %20 : vector<1x1x16x8xf32>
    %c0_17 = arith.constant 0 : index
    %c8 = arith.constant 8 : index
    %c0_18 = arith.constant 0 : index
    %c0_19 = arith.constant 0 : index
    %24 = vector.load %arg9[%c0_17, %c8, %c0_18, %c0_19] : memref<1x9x17x8xf32, #tpu.memory_space<vmem>>, vector<1x1x16x8xf32>
    tpu.vector_store %arg9[%c0_17, %c8, %c0_18, %c0_19], %23 {strides = array<i32>} : memref<1x9x17x8xf32, #tpu.memory_space<vmem>>, vector<1x1x16x8xf32>,
    %cst_20 = arith.constant 0.000000e+00 : f32
    %25 = vector.broadcast %cst_20 : f32 to vector<1x9x1x8xf32>
    %c0_21 = arith.constant 0 : index
    %c0_22 = arith.constant 0 : index
    %c16 = arith.constant 16 : index
    %c0_23 = arith.constant 0 : index
    %26 = vector.load %arg9[%c0_21, %c0_22, %c16, %c0_23] : memref<1x9x17x8xf32, #tpu.memory_space<vmem>>, vector<1x9x1x8xf32>
    tpu.vector_store %arg9[%c0_21, %c0_22, %c16, %c0_23], %25 {strides = array<i32>} : memref<1x9x17x8xf32, #tpu.memory_space<vmem>>, vector<1x9x1x8xf32>,
    %c0_24 = arith.constant 0 : index
    %c0_25 = arith.constant 0 : index
    %c0_26 = arith.constant 0 : index
    %c0_27 = arith.constant 0 : index
    %27 = vector.load %arg9[%c0_24, %c0_25, %c0_26, %c0_27] : memref<1x9x17x8xf32, #tpu.memory_space<vmem>>, vector<1x8x16x8xf32>
    %28 = vector.shape_cast %27 : vector<1x8x16x8xf32> to vector<128x8xf32>
    %c0_28 = arith.constant 0 : index
    %c0_29 = arith.constant 0 : index
    %c1 = arith.constant 1 : index
    %c0_30 = arith.constant 0 : index
    %29 = vector.load %arg9[%c0_28, %c0_29, %c1, %c0_30] : memref<1x9x17x8xf32, #tpu.memory_space<vmem>>, vector<1x8x16x8xf32>
    %30 = vector.shape_cast %29 : vector<1x8x16x8xf32> to vector<128x8xf32>
    %c0_31 = arith.constant 0 : index
    %c1_32 = arith.constant 1 : index
    %c0_33 = arith.constant 0 : index
    %c0_34 = arith.constant 0 : index
    %31 = vector.load %arg9[%c0_31, %c1_32, %c0_33, %c0_34] : memref<1x9x17x8xf32, #tpu.memory_space<vmem>>, vector<1x8x16x8xf32>
    %32 = vector.shape_cast %31 : vector<1x8x16x8xf32> to vector<128x8xf32>
    %c0_35 = arith.constant 0 : index
    %c1_36 = arith.constant 1 : index
    %c1_37 = arith.constant 1 : index
    %c0_38 = arith.constant 0 : index
    %33 = vector.load %arg9[%c0_35, %c1_36, %c1_37, %c0_38] : memref<1x9x17x8xf32, #tpu.memory_space<vmem>>, vector<1x8x16x8xf32>
    %34 = vector.shape_cast %33 : vector<1x8x16x8xf32> to vector<128x8xf32>
    %c0_39 = arith.constant 0 : index
    %c0_40 = arith.constant 0 : index
    %c0_41 = arith.constant 0 : index
    %35 = vector.load %arg6[%c0_39, %c0_40, %c0_41] : memref<4x8x32xf32, #tpu.memory_space<vmem>>, vector<1x8x32xf32>
    %36 = vector.shape_cast %35 : vector<1x8x32xf32> to vector<8x32xf32>
    %cst_42 = arith.constant dense<0.000000e+00> : vector<128x32xf32>
    %37 = tpu.matmul %28, %36, %cst_42 {dimension_numbers = #tpu.dot_dimension_numbers<[1], [0], [0], [1], [0, 0, 1, 1], [], []>} : vector<128x8xf32>, vector<8x32xf32>, vector<128x32xf32> -> vector<128x32xf32>
    %c1_43 = arith.constant 1 : index
    %c0_44 = arith.constant 0 : index
    %c0_45 = arith.constant 0 : index
    %38 = vector.load %arg6[%c1_43, %c0_44, %c0_45] : memref<4x8x32xf32, #tpu.memory_space<vmem>>, vector<1x8x32xf32>
    %39 = vector.shape_cast %38 : vector<1x8x32xf32> to vector<8x32xf32>
    %cst_46 = arith.constant dense<0.000000e+00> : vector<128x32xf32>
    %40 = tpu.matmul %30, %39, %cst_46 {dimension_numbers = #tpu.dot_dimension_numbers<[1], [0], [0], [1], [0, 0, 1, 1], [], []>} : vector<128x8xf32>, vector<8x32xf32>, vector<128x32xf32> -> vector<128x32xf32>
    %41 = arith.addf %37, %40 : vector<128x32xf32>
    %c2 = arith.constant 2 : index
    %c0_47 = arith.constant 0 : index
    %c0_48 = arith.constant 0 : index
    %42 = vector.load %arg6[%c2, %c0_47, %c0_48] : memref<4x8x32xf32, #tpu.memory_space<vmem>>, vector<1x8x32xf32>
    %43 = vector.shape_cast %42 : vector<1x8x32xf32> to vector<8x32xf32>
    %cst_49 = arith.constant dense<0.000000e+00> : vector<128x32xf32>
    %44 = tpu.matmul %32, %43, %cst_49 {dimension_numbers = #tpu.dot_dimension_numbers<[1], [0], [0], [1], [0, 0, 1, 1], [], []>} : vector<128x8xf32>, vector<8x32xf32>, vector<128x32xf32> -> vector<128x32xf32>
    %45 = arith.addf %41, %44 : vector<128x32xf32>
    %c3 = arith.constant 3 : index
    %c0_50 = arith.constant 0 : index
    %c0_51 = arith.constant 0 : index
    %46 = vector.load %arg6[%c3, %c0_50, %c0_51] : memref<4x8x32xf32, #tpu.memory_space<vmem>>, vector<1x8x32xf32>
    %47 = vector.shape_cast %46 : vector<1x8x32xf32> to vector<8x32xf32>
    %cst_52 = arith.constant dense<0.000000e+00> : vector<128x32xf32>
    %48 = tpu.matmul %34, %47, %cst_52 {dimension_numbers = #tpu.dot_dimension_numbers<[1], [0], [0], [1], [0, 0, 1, 1], [], []>} : vector<128x8xf32>, vector<8x32xf32>, vector<128x32xf32> -> vector<128x32xf32>
    %49 = arith.addf %45, %48 : vector<128x32xf32>
    %50 = vector.shape_cast %49 : vector<128x32xf32> to vector<1x8x16x32xf32>
    %c0_53 = arith.constant 0 : index
    %c0_54 = arith.constant 0 : index
    %c0_55 = arith.constant 0 : index
    %c0_56 = arith.constant 0 : index
    %51 = vector.load %arg7[%c0_53, %c0_54, %c0_55, %c0_56] : memref<1x8x16x32xf32, #tpu.memory_space<vmem>>, vector<1x8x16x32xf32>
    tpu.vector_store %arg7[%c0_53, %c0_54, %c0_55, %c0_56], %50 {strides = array<i32>} : memref<1x8x16x32xf32, #tpu.memory_space<vmem>>, vector<1x8x16x32xf32>,
    %cst_57 = arith.constant dense<0.000000e+00> : vector<32xf32>
    %52 = vector.multi_reduction <add>, %49, %cst_57 [0] : vector<128x32xf32> to vector<32xf32>
    %53 = vector.shape_cast %52 : vector<32xf32> to vector<1x32xf32>
    %c0_58 = arith.constant 0 : index
    %c0_59 = arith.constant 0 : index
    %c0_60 = arith.constant 0 : index
    %c0_61 = arith.constant 0 : index
    %54 = vector.load %arg8[%c0_58, %c0_59, %c0_60, %c0_61] : memref<1x1x2x32xf32, #tpu.memory_space<vmem>>, vector<1x1x1x32xf32>
    %55 = vector.shape_cast %54 : vector<1x1x1x32xf32> to vector<1x32xf32>
    %56 = vector.shape_cast %53 : vector<1x32xf32> to vector<1x1x1x32xf32>
    tpu.vector_store %arg8[%c0_58, %c0_59, %c0_60, %c0_61], %56 {strides = array<i32>} : memref<1x1x2x32xf32, #tpu.memory_space<vmem>>, vector<1x1x1x32xf32>,
    %57 = arith.mulf %49, %49 : vector<128x32xf32>
    %cst_62 = arith.constant dense<0.000000e+00> : vector<32xf32>
    %58 = vector.multi_reduction <add>, %57, %cst_62 [0] : vector<128x32xf32> to vector<32xf32>
    %59 = vector.shape_cast %58 : vector<32xf32> to vector<1x32xf32>
    %c0_63 = arith.constant 0 : index
    %c0_64 = arith.constant 0 : index
    %c1_65 = arith.constant 1 : index
    %c0_66 = arith.constant 0 : index
    %60 = vector.load %arg8[%c0_63, %c0_64, %c1_65, %c0_66] : memref<1x1x2x32xf32, #tpu.memory_space<vmem>>, vector<1x1x1x32xf32>
    %61 = vector.shape_cast %60 : vector<1x1x1x32xf32> to vector<1x32xf32>
    %62 = vector.shape_cast %59 : vector<1x32xf32> to vector<1x1x1x32xf32>
    tpu.vector_store %arg8[%c0_63, %c0_64, %c1_65, %c0_66], %62 {strides = array<i32>} : memref<1x1x2x32xf32, #tpu.memory_space<vmem>>, vector<1x1x1x32xf32>,
    return
  }
  func.func @transform_0(%arg0: i32, %arg1: i32) -> (i32, i32, i32, i32) {
    %c0_i32 = arith.constant 0 : i32
    %c0_i32_0 = arith.constant 0 : i32
    %c0_i32_1 = arith.constant 0 : i32
    return %arg0, %arg1, %c0_i32, %c0_i32_0 : i32, i32, i32, i32
  }
  func.func @transform_1(%arg0: i32, %arg1: i32) -> (i32, i32, i32, i32) {
    %c1_i32 = arith.constant 1 : i32
    %0 = arith.addi %arg1, %c1_i32 : i32
    %c8_i32 = arith.constant 8 : i32
    %1 = arith.muli %0, %c8_i32 : i32
    %c15_i32 = arith.constant 15 : i32
    %2 = arith.minsi %1, %c15_i32 : i32
    %c0_i32 = arith.constant 0 : i32
    %c0_i32_0 = arith.constant 0 : i32
    %c0_i32_1 = arith.constant 0 : i32
    return %arg0, %2, %c0_i32, %c0_i32_0 : i32, i32, i32, i32
  }
  func.func @transform_2(%arg0: i32, %arg1: i32) -> (i32, i32) {
    %c0_i32 = arith.constant 0 : i32
    %c0_i32_0 = arith.constant 0 : i32
    %c0_i32_1 = arith.constant 0 : i32
    return %c0_i32, %c0_i32_0 : i32, i32
  }
  func.func @transform_3(%arg0: i32, %arg1: i32) -> (i32, i32) {
    %c0_i32 = arith.constant 0 : i32
    %c0_i32_0 = arith.constant 0 : i32
    %c0_i32_1 = arith.constant 0 : i32
    return %c0_i32, %c0_i32_0 : i32, i32
  }
  func.func @transform_4(%arg0: i32, %arg1: i32) -> (i32, i32, i32) {
    %c0_i32 = arith.constant 0 : i32
    %c0_i32_0 = arith.constant 0 : i32
    %c0_i32_1 = arith.constant 0 : i32
    %c0_i32_2 = arith.constant 0 : i32
    return %c0_i32, %c0_i32_0, %c0_i32_1 : i32, i32, i32
  }
  func.func @transform_5(%arg0: i32, %arg1: i32) -> (i32, i32, i32, i32) {
    %c0_i32 = arith.constant 0 : i32
    %c0_i32_0 = arith.constant 0 : i32
    %c0_i32_1 = arith.constant 0 : i32
    return %arg0, %arg1, %c0_i32, %c0_i32_0 : i32, i32, i32, i32
  }
  func.func @transform_6(%arg0: i32, %arg1: i32) -> (i32, i32, i32, i32) {
    %c0_i32 = arith.constant 0 : i32
    %c0_i32_0 = arith.constant 0 : i32
    %c0_i32_1 = arith.constant 0 : i32
    return %arg0, %arg1, %c0_i32, %c0_i32_0 : i32, i32, i32, i32
  }
}

module attributes {stable_mosaic.version = 11 : i64} {
  func.func @_bn_relu_matmul_stats_kernel(%arg0: i32, %arg1: memref<512x8xf32, #tpu.memory_space<vmem>>, %arg2: memref<1x8xf32, #tpu.memory_space<vmem>>, %arg3: memref<1x8xf32, #tpu.memory_space<vmem>>, %arg4: memref<8x16xf32, #tpu.memory_space<vmem>>, %arg5: memref<512x16xf32, #tpu.memory_space<vmem>>, %arg6: memref<1x2x16xf32, #tpu.memory_space<vmem>>) attributes {dimension_semantics = [#tpu.dimension_semantics<parallel>], iteration_bounds = array<i64: 4>, scalar_prefetch = 0 : i64, scratch_operands = 0 : i64, tpu.core_type = #tpu.core_type<tc>, window_params = [{transform_indices = @transform_0, window_bounds = array<i64: 512, 8>}, {pipeline_mode = #tpu.pipeline_mode<synchronous>, transform_indices = @transform_1, window_bounds = array<i64: 1, 8>}, {pipeline_mode = #tpu.pipeline_mode<synchronous>, transform_indices = @transform_2, window_bounds = array<i64: 1, 8>}, {pipeline_mode = #tpu.pipeline_mode<synchronous>, transform_indices = @transform_3, window_bounds = array<i64: 8, 16>}, {transform_indices = @transform_4, window_bounds = array<i64: 512, 16>}, {transform_indices = @transform_5, window_bounds = array<i64: 1, 2, 16>}]} {
    %c0 = arith.constant 0 : index
    %c0_0 = arith.constant 0 : index
    %0 = vector.load %arg1[%c0, %c0_0] : memref<512x8xf32, #tpu.memory_space<vmem>>, vector<512x8xf32>
    %c0_1 = arith.constant 0 : index
    %c0_2 = arith.constant 0 : index
    %1 = vector.load %arg2[%c0_1, %c0_2] : memref<1x8xf32, #tpu.memory_space<vmem>>, vector<1x8xf32>
    %2 = vector.broadcast %1 : vector<1x8xf32> to vector<512x8xf32>
    %3 = arith.mulf %0, %2 : vector<512x8xf32>
    %c0_3 = arith.constant 0 : index
    %c0_4 = arith.constant 0 : index
    %4 = vector.load %arg3[%c0_3, %c0_4] : memref<1x8xf32, #tpu.memory_space<vmem>>, vector<1x8xf32>
    %5 = vector.broadcast %4 : vector<1x8xf32> to vector<512x8xf32>
    %6 = arith.addf %3, %5 : vector<512x8xf32>
    %cst = arith.constant 0.000000e+00 : f32
    %7 = vector.broadcast %cst : f32 to vector<512x8xf32>
    %8 = arith.maximumf %6, %7 : vector<512x8xf32>
    %c0_5 = arith.constant 0 : index
    %c0_6 = arith.constant 0 : index
    %9 = vector.load %arg4[%c0_5, %c0_6] : memref<8x16xf32, #tpu.memory_space<vmem>>, vector<8x16xf32>
    %cst_7 = arith.constant dense<0.000000e+00> : vector<512x16xf32>
    %10 = tpu.matmul %8, %9, %cst_7 {dimension_numbers = #tpu.dot_dimension_numbers<[1], [0], [0], [1], [0, 0, 1, 1], [], []>} : vector<512x8xf32>, vector<8x16xf32>, vector<512x16xf32> -> vector<512x16xf32>
    %c0_8 = arith.constant 0 : index
    %c0_9 = arith.constant 0 : index
    %11 = vector.load %arg5[%c0_8, %c0_9] : memref<512x16xf32, #tpu.memory_space<vmem>>, vector<512x16xf32>
    tpu.vector_store %arg5[%c0_8, %c0_9], %10 {strides = array<i32>} : memref<512x16xf32, #tpu.memory_space<vmem>>, vector<512x16xf32>,
    %cst_10 = arith.constant dense<0.000000e+00> : vector<16xf32>
    %12 = vector.multi_reduction <add>, %10, %cst_10 [0] : vector<512x16xf32> to vector<16xf32>
    %13 = vector.shape_cast %12 : vector<16xf32> to vector<1x16xf32>
    %c0_11 = arith.constant 0 : index
    %c0_12 = arith.constant 0 : index
    %c0_13 = arith.constant 0 : index
    %14 = vector.load %arg6[%c0_11, %c0_12, %c0_13] : memref<1x2x16xf32, #tpu.memory_space<vmem>>, vector<1x1x16xf32>
    %15 = vector.shape_cast %14 : vector<1x1x16xf32> to vector<1x16xf32>
    %16 = vector.shape_cast %13 : vector<1x16xf32> to vector<1x1x16xf32>
    tpu.vector_store %arg6[%c0_11, %c0_12, %c0_13], %16 {strides = array<i32>} : memref<1x2x16xf32, #tpu.memory_space<vmem>>, vector<1x1x16xf32>,
    %17 = arith.mulf %10, %10 : vector<512x16xf32>
    %cst_14 = arith.constant dense<0.000000e+00> : vector<16xf32>
    %18 = vector.multi_reduction <add>, %17, %cst_14 [0] : vector<512x16xf32> to vector<16xf32>
    %19 = vector.shape_cast %18 : vector<16xf32> to vector<1x16xf32>
    %c0_15 = arith.constant 0 : index
    %c1 = arith.constant 1 : index
    %c0_16 = arith.constant 0 : index
    %20 = vector.load %arg6[%c0_15, %c1, %c0_16] : memref<1x2x16xf32, #tpu.memory_space<vmem>>, vector<1x1x16xf32>
    %21 = vector.shape_cast %20 : vector<1x1x16xf32> to vector<1x16xf32>
    %22 = vector.shape_cast %19 : vector<1x16xf32> to vector<1x1x16xf32>
    tpu.vector_store %arg6[%c0_15, %c1, %c0_16], %22 {strides = array<i32>} : memref<1x2x16xf32, #tpu.memory_space<vmem>>, vector<1x1x16xf32>,
    return
  }
  func.func @transform_0(%arg0: i32) -> (i32, i32) {
    %c0_i32 = arith.constant 0 : i32
    %c0_i32_0 = arith.constant 0 : i32
    return %arg0, %c0_i32 : i32, i32
  }
  func.func @transform_1(%arg0: i32) -> (i32, i32) {
    %c0_i32 = arith.constant 0 : i32
    %c0_i32_0 = arith.constant 0 : i32
    %c0_i32_1 = arith.constant 0 : i32
    return %c0_i32, %c0_i32_0 : i32, i32
  }
  func.func @transform_2(%arg0: i32) -> (i32, i32) {
    %c0_i32 = arith.constant 0 : i32
    %c0_i32_0 = arith.constant 0 : i32
    %c0_i32_1 = arith.constant 0 : i32
    return %c0_i32, %c0_i32_0 : i32, i32
  }
  func.func @transform_3(%arg0: i32) -> (i32, i32) {
    %c0_i32 = arith.constant 0 : i32
    %c0_i32_0 = arith.constant 0 : i32
    %c0_i32_1 = arith.constant 0 : i32
    return %c0_i32, %c0_i32_0 : i32, i32
  }
  func.func @transform_4(%arg0: i32) -> (i32, i32) {
    %c0_i32 = arith.constant 0 : i32
    %c0_i32_0 = arith.constant 0 : i32
    return %arg0, %c0_i32 : i32, i32
  }
  func.func @transform_5(%arg0: i32) -> (i32, i32, i32) {
    %c0_i32 = arith.constant 0 : i32
    %c0_i32_0 = arith.constant 0 : i32
    %c0_i32_1 = arith.constant 0 : i32
    return %arg0, %c0_i32, %c0_i32_0 : i32, i32, i32
  }
}

module attributes {stable_mosaic.version = 11 : i64} {
  func.func @_bn_relu_kernel(%arg0: i32, %arg1: memref<16x512xf32, #tpu.memory_space<vmem>>, %arg2: memref<1x512xf32, #tpu.memory_space<vmem>>, %arg3: memref<1x512xf32, #tpu.memory_space<vmem>>, %arg4: memref<16x512xf32, #tpu.memory_space<vmem>>) attributes {dimension_semantics = [#tpu.dimension_semantics<parallel>], iteration_bounds = array<i64: 4>, scalar_prefetch = 0 : i64, scratch_operands = 0 : i64, tpu.core_type = #tpu.core_type<tc>, window_params = [{transform_indices = @transform_0, window_bounds = array<i64: 16, 512>}, {pipeline_mode = #tpu.pipeline_mode<synchronous>, transform_indices = @transform_1, window_bounds = array<i64: 1, 512>}, {pipeline_mode = #tpu.pipeline_mode<synchronous>, transform_indices = @transform_2, window_bounds = array<i64: 1, 512>}, {transform_indices = @transform_3, window_bounds = array<i64: 16, 512>}]} {
    %c0 = arith.constant 0 : index
    %c0_0 = arith.constant 0 : index
    %0 = vector.load %arg1[%c0, %c0_0] : memref<16x512xf32, #tpu.memory_space<vmem>>, vector<16x512xf32>
    %c0_1 = arith.constant 0 : index
    %c0_2 = arith.constant 0 : index
    %1 = vector.load %arg2[%c0_1, %c0_2] : memref<1x512xf32, #tpu.memory_space<vmem>>, vector<1x512xf32>
    %2 = vector.broadcast %1 : vector<1x512xf32> to vector<16x512xf32>
    %3 = arith.mulf %0, %2 : vector<16x512xf32>
    %c0_3 = arith.constant 0 : index
    %c0_4 = arith.constant 0 : index
    %4 = vector.load %arg3[%c0_3, %c0_4] : memref<1x512xf32, #tpu.memory_space<vmem>>, vector<1x512xf32>
    %5 = vector.broadcast %4 : vector<1x512xf32> to vector<16x512xf32>
    %6 = arith.addf %3, %5 : vector<16x512xf32>
    %cst = arith.constant 0.000000e+00 : f32
    %7 = vector.broadcast %cst : f32 to vector<16x512xf32>
    %8 = arith.maximumf %6, %7 : vector<16x512xf32>
    %c0_5 = arith.constant 0 : index
    %c0_6 = arith.constant 0 : index
    %9 = vector.load %arg4[%c0_5, %c0_6] : memref<16x512xf32, #tpu.memory_space<vmem>>, vector<16x512xf32>
    tpu.vector_store %arg4[%c0_5, %c0_6], %8 {strides = array<i32>} : memref<16x512xf32, #tpu.memory_space<vmem>>, vector<16x512xf32>,
    return
  }
  func.func @transform_0(%arg0: i32) -> (i32, i32) {
    %c0_i32 = arith.constant 0 : i32
    %c0_i32_0 = arith.constant 0 : i32
    return %arg0, %c0_i32 : i32, i32
  }
  func.func @transform_1(%arg0: i32) -> (i32, i32) {
    %c0_i32 = arith.constant 0 : i32
    %c0_i32_0 = arith.constant 0 : i32
    %c0_i32_1 = arith.constant 0 : i32
    return %c0_i32, %c0_i32_0 : i32, i32
  }
  func.func @transform_2(%arg0: i32) -> (i32, i32) {
    %c0_i32 = arith.constant 0 : i32
    %c0_i32_0 = arith.constant 0 : i32
    %c0_i32_1 = arith.constant 0 : i32
    return %c0_i32, %c0_i32_0 : i32, i32
  }
  func.func @transform_3(%arg0: i32) -> (i32, i32) {
    %c0_i32 = arith.constant 0 : i32
    %c0_i32_0 = arith.constant 0 : i32
    return %arg0, %c0_i32 : i32, i32
  }
}

</mosaic_0001>

<bundles_post_ra>
// kernel: decoder_block_forward.4
= control target key start
LH: loop header
LB: loop body
LE: loop exit
PB: predicated region body
PF: predicated region fallthrough
CT: control target
= control target key end

     0   :  { %s724_s12 = smov 0   ;;  %s880_s0 = inlined_call_operand.vmem [shape: f32[512,32], index: 0, kind: input, shape index: {}]   ;;  %s881_s1 = inlined_call_operand.vmem [shape: f32[32,8], index: 1, kind: input, shape index: {}]   ;;  %s882_s2 = inlined_call_operand.vmem [shape: f32[512,8], index: 2, kind: output, shape index: {0}]   ;;  %s883_s3 = inlined_call_operand.vmem [shape: f32[4,2,8], index: 3, kind: output, shape index: {1}]  }
   0x1 LB: > { %s730_s13 = sadd.s32 4294967295, %s702_s12   ;;  %p600_p0 = scmp.ge.s32.totalorder %s702_s12, 1  ;;  %s702_s12 = sphi %s724_s12, %s14_s12  }
   0x2   : > { %p141_p1 = scmp.lt.s32.totalorder %s702_s12, 5 }
   0x4   : > { %p142_p2 = pnand %p600_p0, %p141_p1 }
   0x5   : > { %v201_v0 = vld [vmem:[%s881_s1] sm:$0xff] (!%p142_p2)  ;;  %v202_v1 = vld [vmem:[%s881_s1 + $0x8] sm:$0xff] (!%p142_p2)  ;;  %v203_v2 = vld [vmem:[%s881_s1 + $0x10] sm:$0xff] (!%p142_p2)  ;;  %s601_s20 = sshll.u32 (!%p142_p2), %s730_s13, 4  ;;  %vm205_vm0 = vcmask (!%p142_p2), 261120   ;;  %vm399_vm1 = vcmask (!%p142_p2), 64512  }
   0x6   : > { %145 = sbr.rel (%p142_p2) target bundleno = 279 (0x117), region = 28  ;;  %v676_v3 = vpack.c.bf16 (!%p142_p2), %v202_v1, %v201_v0  ;;  %v204_v4 = vld [vmem:[%s881_s1 + $0x18] sm:$0xff] (!%p142_p2)  ;;  %p170_p3 = scmp.lt.s32.totalorder (!%p142_p2), %s601_s20, 63  ;;  %vm453_vm2 = vcmask (!%p142_p2), 57344  }
   0x7   : > { %v680_v5 = vpack.c.bf16 (!%p142_p2), %v204_v4, %v203_v2  ;;  %p181_p4 = scmp.lt.s32.totalorder (!%p142_p2), %s730_s13, 3 }
   0x8   : > { %677 = vmatprep.subr.bf16.mxu0 (!%p142_p2), %v676_v3  ;;  %684 = vmatprep.subr.bf16.mxu1 (!%p142_p2), %v676_v3 }
   0x9   : > { %679 = vmatpush3.bf16.msra.mxu0 (!%p142_p2), %v676_v3  ;;  %686 = vmatpush3.bf16.msra.mxu1 (!%p142_p2), %v676_v3 }
   0xa   : > { %681 = vmatprep.subr.bf16.mxu0 (!%p142_p2), %v680_v5  ;;  %685 = vmatprep.subr.bf16.mxu1 (!%p142_p2), %v680_v5 }
   0xd   : > { %s885_s20 = smov (!%p170_p3, %s601_s20), 63  ;;  %683 = vmatpush3.bf16.msra.mxu0 %v680_v5  ;;  %687 = vmatpush3.bf16.msra.mxu1 %v680_v5  ;;  %s887_s13 = smov (!%p181_p4, %s730_s13), 3 }
   0xe   : > { %s602_s23 = sshll.u32 %s885_s20, 3  ;;  %s605_s30 = sshll.u32 %s887_s13, 1 }
   0xf   : > { %s755_s26 = scalar_lea.vmem %s880_s0, %s602_s23  ;;  %s794_s29 = scalar_lea.vmem %s882_s2, %s602_s23 }
  0x10   : > { %v185_v6 = vld [vmem:[%s755_s26] sm:$0xff]  ;;  %v186_v7 = vld [vmem:[%s755_s26 + $0x8] sm:$0xff]  ;;  %v187_v8 = vld [vmem:[%s755_s26 + $0x10] sm:$0xff]  ;;  %s184_s6 = scalar_lea.vmem %s883_s3, %s605_s30 }
  0x11   : > { %652 = vmatprep.mubr.msk.f32.mxu0 %vm205_vm0, %v185_v6  ;;  %v193_v9 = vld [vmem:[%s755_s26 + $0x40] sm:$0xff]  ;;  %v194_v10 = vld [vmem:[%s755_s26 + $0x48] sm:$0xff]  ;;  %v195_v11 = vld [vmem:[%s755_s26 + $0x50] sm:$0xff] }
  0x12   : > { %664 = vmatprep.mubr.msk.f32.mxu1 %vm205_vm0, %v193_v9  ;;  %653 = vmatmul.mubr.msk.f32.vlgmr.msra.gmra.mrb[0].mxu0 %vm205_vm0, %v186_v7  ;;  %v188_v12 = vld [vmem:[%s755_s26 + $0x18] sm:$0xff]  ;;  %v189_v13 = vld [vmem:[%s755_s26 + $0x20] sm:$0xff]  ;;  %v190_v16 = vld [vmem:[%s755_s26 + $0x28] sm:$0xff] }
  0x13   : > { %655 = vmatprep.mubr.msk.f32.mxu0 %vm205_vm0, %v187_v8  ;;  %665 = vmatmul.mubr.msk.f32.vlgmr.msra.gmra.mrb[0].mxu1 %vm205_vm0, %v194_v10  ;;  %v196_v14 = vld [vmem:[%s755_s26 + $0x58] sm:$0xff]  ;;  %v197_v15 = vld [vmem:[%s755_s26 + $0x60] sm:$0xff]  ;;  %v191_v17 = vld [vmem:[%s755_s26 + $0x30] sm:$0xff] }
  0x14   : > { %667 = vmatprep.mubr.msk.f32.mxu1 %vm205_vm0, %v195_v11  ;;  %v198_v18 = vld [vmem:[%s755_s26 + $0x68] sm:$0xff]  ;;  %v199_v19 = vld [vmem:[%s755_s26 + $0x70] sm:$0xff]  ;;  %v192_v20 = vld [vmem:[%s755_s26 + $0x38] sm:$0xff] }
  0x15   : > { %v200_v21 = vld [vmem:[%s755_s26 + $0x78] sm:$0xff] }
  0x16   : > { %656 = vmatmul.mubr.msk.f32.gmra.mrb[2].mxu0 %vm205_vm0, %v188_v12 }
  0x17   : > { %658 = vmatprep.mubr.msk.f32.mxu0 %vm205_vm0, %v189_v13  ;;  %668 = vmatmul.mubr.msk.f32.gmra.mrb[2].mxu1 %vm205_vm0, %v196_v14 }
  0x18   : > { %670 = vmatprep.mubr.msk.f32.mxu1 %vm205_vm0, %v197_v15 }
  0x1a   : > { %659 = vmatmul.mubr.msk.f32.gmra.mrb[4].mxu0 %vm205_vm0, %v190_v16 }
  0x1b   : > { %661 = vmatprep.mubr.msk.f32.mxu0 %vm205_vm0, %v191_v17  ;;  %671 = vmatmul.mubr.msk.f32.gmra.mrb[4].mxu1 %vm205_vm0, %v198_v18 }
  0x1c   : > { %673 = vmatprep.mubr.msk.f32.mxu1 %vm205_vm0, %v199_v19 }
  0x1e   : > { %662 = vmatmul.mubr.msk.f32.gmra.mrb[6].mxu0 %vm205_vm0, %v192_v20 }
  0x1f   : > { %674 = vmatmul.mubr.msk.f32.gmra.mrb[6].mxu1 %vm205_vm0, %v200_v21 }
  0xe5   : > { %v654_v22 = vpop.f32.mrb[0].mxu0 }
  0xe6   : > { %401 = vst.msk [vmem:[%s794_s29 + $0x8] sm:$0xff] %vm399_vm1, %v654_v22  ;;  %v417_v23 = vsel %vm399_vm1, %v654_v22, 0.0  ;;  %v456_v24 = vmul.f32 %v654_v22, %v654_v22  ;;  %v320_v25 = vpop.f32.mrb[1].mxu0  ;;  %v799_v26 = vpop.f32.mrb[0].mxu1 }
  0xe7   : > { %400 = vst.msk [vmem:[%s794_s29] sm:$0xff] %vm399_vm1, %v320_v25  ;;  %v416_v27 = vsel %vm399_vm1, %v320_v25, 0.0  ;;  %v455_v28 = vmul.f32 %v320_v25, %v320_v25  ;;  %409 = vst.msk [vmem:[%s794_s29 + $0x48] sm:$0xff] %vm399_vm1, %v799_v26  ;;  %v360_v29 = vpop.f32.mrb[1].mxu1  ;;  %v464_v13 = vmul.f32 %v799_v26, %v799_v26  ;;  %v433_v18 = vsel %vm399_vm1, %v799_v26, 0.0 }
  0xe8   : > { %v472_v30 = vsel %vm399_vm1, %v456_v24, 0.0  ;;  %v418_v31 = vadd.f32 %v417_v23, %v416_v27  ;;  %408 = vst.msk [vmem:[%s794_s29 + $0x40] sm:$0xff] %vm399_vm1, %v360_v29  ;;  %v463_v62 = vmul.f32 %v360_v29, %v360_v29  ;;  %v431_v9 = vsel %vm399_vm1, %v360_v29, 0.0 }
  0xe9   : > { %v471_v32 = vsel %vm399_vm1, %v455_v28, 0.0  ;;  %v657_v33 = vpop.f32.mrb[2].mxu0  ;;  %v488_v22 = vsel %vm399_vm1, %v464_v13, 0.0 }
  0xea   : > { %v473_v34 = vadd.f32 %v472_v30, %v471_v32  ;;  %403 = vst.msk [vmem:[%s794_s29 + $0x18] sm:$0xff] %vm399_vm1, %v657_v33  ;;  %v330_v35 = vpop.f32.mrb[3].mxu0  ;;  %v813_v36 = vpop.f32.mrb[2].mxu1  ;;  %v458_v37 = vmul.f32 %v657_v33, %v657_v33  ;;  %v421_v42 = vsel %vm399_vm1, %v657_v33, 0.0  ;;  %v486_v14 = vsel %vm399_vm1, %v463_v62, 0.0 }
  0xeb   : > { %402 = vst.msk [vmem:[%s794_s29 + $0x10] sm:$0xff] %vm399_vm1, %v330_v35  ;;  %v419_v38 = vsel %vm399_vm1, %v330_v35, 0.0  ;;  %v457_v39 = vmul.f32 %v330_v35, %v330_v35  ;;  %411 = vst.msk [vmem:[%s794_s29 + $0x58] sm:$0xff] %vm399_vm1, %v813_v36  ;;  %v370_v40 = vpop.f32.mrb[3].mxu1  ;;  %v466_v23 = vmul.f32 %v813_v36, %v813_v36  ;;  %v437_v29 = vsel %vm399_vm1, %v813_v36, 0.0 }
  0xec   : > { %v420_v41 = vadd.f32 %v419_v38, %v418_v31  ;;  %410 = vst.msk [vmem:[%s794_s29 + $0x50] sm:$0xff] %vm399_vm1, %v370_v40  ;;  %v476_v49 = vsel %vm399_vm1, %v458_v37, 0.0  ;;  %v465_v15 = vmul.f32 %v370_v40, %v370_v40  ;;  %v435_v19 = vsel %vm399_vm1, %v370_v40, 0.0 }
  0xed   : > { %v474_v43 = vsel %vm399_vm1, %v457_v39, 0.0  ;;  %v660_v44 = vpop.f32.mrb[4].mxu0  ;;  %v492_v32 = vsel %vm399_vm1, %v466_v23, 0.0 }
  0xee   : > { %v475_v45 = vadd.f32 %v474_v43, %v473_v34  ;;  %405 = vst.msk [vmem:[%s794_s29 + $0x28] sm:$0xff] %vm399_vm1, %v660_v44  ;;  %v340_v46 = vpop.f32.mrb[5].mxu0  ;;  %v422_v47 = vadd.f32 %v421_v42, %v420_v41  ;;  %v672_v48 = vpop.f32.mrb[4].mxu1  ;;  %v460_v50 = vmul.f32 %v660_v44, %v660_v44  ;;  %v425_v56 = vsel %vm399_vm1, %v660_v44, 0.0 }
  0xef   : > { %404 = vst.msk [vmem:[%s794_s29 + $0x20] sm:$0xff] %vm399_vm1, %v340_v46  ;;  %v423_v51 = vsel %vm399_vm1, %v340_v46, 0.0  ;;  %v459_v52 = vmul.f32 %v340_v46, %v340_v46  ;;  %413 = vst.msk [vmem:[%s794_s29 + $0x68] sm:$0xff] %vm399_vm1, %v672_v48  ;;  %v380_v53 = vpop.f32.mrb[5].mxu1  ;;  %v490_v24 = vsel %vm399_vm1, %v465_v15, 0.0  ;;  %v468_v33 = vmul.f32 %v672_v48, %v672_v48 }
  0xf0   : > { %v424_v54 = vadd.f32 %v423_v51, %v422_v47  ;;  %v477_v55 = vadd.f32 %v476_v49, %v475_v45  ;;  %412 = vst.msk [vmem:[%s794_s29 + $0x60] sm:$0xff] %vm399_vm1, %v380_v53  ;;  %v480_v0 = vsel %vm399_vm1, %v460_v50, 0.0  ;;  %v467_v25 = vmul.f32 %v380_v53, %v380_v53 }
  0xf1   : > { %v478_v57 = vsel %vm399_vm1, %v459_v52, 0.0  ;;  %v663_v58 = vpop.f32.mrb[6].mxu0  ;;  %v439_v30 = vsel %vm399_vm1, %v380_v53, 0.0  ;;  %v441_v39 = vsel %vm399_vm1, %v672_v48, 0.0  ;;  %v496_v42 = vsel %vm399_vm1, %v468_v33, 0.0 }
  0xf2   : > { %v479_v59 = vadd.f32 %v478_v57, %v477_v55  ;;  %407 = vst.msk [vmem:[%s794_s29 + $0x38] sm:$0xff] %vm399_vm1, %v663_v58  ;;  %v350_v60 = vpop.f32.mrb[7].mxu0  ;;  %v426_v61 = vadd.f32 %v425_v56, %v424_v54  ;;  %v675_v63 = vpop.f32.mrb[6].mxu1  ;;  %v462_v1 = vmul.f32 %v663_v58, %v663_v58  ;;  %v429_v7 = vsel %vm399_vm1, %v663_v58, 0.0 }
  0xf3   : > { %406 = vst.msk [vmem:[%s794_s29 + $0x30] sm:$0xff] %vm399_vm1, %v350_v60  ;;  %v427_v2 = vsel %vm399_vm1, %v350_v60, 0.0  ;;  %v461_v3 = vmul.f32 %v350_v60, %v350_v60  ;;  %415 = vst.msk [vmem:[%s794_s29 + $0x78] sm:$0xff] %vm399_vm1, %v675_v63  ;;  %v390_v4 = vpop.f32.mrb[7].mxu1  ;;  %v494_v34 = vsel %vm399_vm1, %v467_v25, 0.0  ;;  %v470_v43 = vmul.f32 %v675_v63, %v675_v63 }
  0xf4   : > { %v428_v5 = vadd.f32 %v427_v2, %v426_v61  ;;  %v481_v6 = vadd.f32 %v480_v0, %v479_v59  ;;  %414 = vst.msk [vmem:[%s794_s29 + $0x70] sm:$0xff] %vm399_vm1, %v390_v4  ;;  %v484_v12 = vsel %vm399_vm1, %v462_v1, 0.0  ;;  %v469_v35 = vmul.f32 %v390_v4, %v390_v4 }
  0xf5   : > { %v482_v8 = vsel %vm399_vm1, %v461_v3, 0.0  ;;  %v443_v40 = vsel %vm399_vm1, %v390_v4, 0.0  ;;  %v445_v47 = vsel %vm399_vm1, %v675_v63, 0.0  ;;  %v500_v51 = vsel %vm399_vm1, %v470_v43, 0.0 }
  0xf6   : > { %v430_v10 = vadd.f32 %v429_v7, %v428_v5  ;;  %v483_v11 = vadd.f32 %v482_v8, %v481_v6  ;;  %v498_v44 = vsel %vm399_vm1, %v469_v35, 0.0 }
  0xf8   : > { %v485_v16 = vadd.f32 %v484_v12, %v483_v11  ;;  %v432_v17 = vadd.f32 %v431_v9, %v430_v10 }
  0xfa   : > { %v487_v20 = vadd.f32 %v486_v14, %v485_v16  ;;  %v434_v21 = vadd.f32 %v433_v18, %v432_v17 }
  0xfc   : > { %v436_v27 = vadd.f32 %v435_v19, %v434_v21  ;;  %v489_v28 = vadd.f32 %v488_v22, %v487_v20 }
  0xfe   : > { %v491_v26 = vadd.f32 %v490_v24, %v489_v28  ;;  %v438_v31 = vadd.f32 %v437_v29, %v436_v27 }
 0x100   : > { %v440_v37 = vadd.f32 %v439_v30, %v438_v31  ;;  %v493_v38 = vadd.f32 %v492_v32, %v491_v26 }
 0x102   : > { %v495_v41 = vadd.f32 %v494_v34, %v493_v38  ;;  %v442_v36 = vadd.f32 %v441_v39, %v440_v37 }
 0x104   : > { %v444_v45 = vadd.f32 %v443_v40, %v442_v36  ;;  %v497_v46 = vadd.f32 %v496_v42, %v495_v41 }
 0x106   : > { %v446_v49 = vadd.f32 %v445_v47, %v444_v45  ;;  %v499_v50 = vadd.f32 %v498_v44, %v497_v46 }
 0x108   : > { %v447_v48 = vrot.slane %v446_v49, 4  ;;  %v501_v52 = vadd.f32 %v500_v51, %v499_v50 }
 0x10a   : > { %v448_v53 = vadd.f32 %v447_v48, %v446_v49  ;;  %v502_v54 = vrot.slane %v501_v52, 4 }
 0x10c   : > { %v449_v55 = vrot.slane %v448_v53, 2  ;;  %v503_v56 = vadd.f32 %v502_v54, %v501_v52 }
 0x10e   : > { %v450_v57 = vadd.f32 %v449_v55, %v448_v53  ;;  %v504_v58 = vrot.slane %v503_v56, 2 }
 0x110   : > { %v451_v59 = vrot.slane %v450_v57, 1  ;;  %v505_v60 = vadd.f32 %v504_v58, %v503_v56 }
 0x112   : > { %v452_v61 = vadd.f32 %v451_v59, %v450_v57  ;;  %v506_v62 = vrot.slane %v505_v60, 1 }
 0x114   : > { %454 = vst.msk [vmem:[%s184_s6] sm:$0x1] %vm453_vm2, %v452_v61  ;;  %v507_v63 = vadd.f32 %v506_v62, %v505_v60 }
 0x116   : > { %508 = vst.msk [vmem:[%s184_s6 + $0x1] sm:$0x1] %vm453_vm2, %v507_v63 }
 0x117 PF: > { %s14_s12 = sadd.s32 1, %s702_s12  }
 0x118   : > { %p11_p5 = scmp.ge.s32.totalorder %s14_s12, 6  }
 0x11a   :  { %13 = sbr.rel (!%p11_p5) target bundleno = 1 (0x1), region = 70 }

// kernel: decoder_block_forward.5
= control target key start
LH: loop header
LB: loop body
LE: loop exit
PB: predicated region body
PF: predicated region fallthrough
CT: control target
= control target key end

     0   :  { %s2092_s21 = smov 0   ;;  %s2094_s22 = smov 0   ;;  %s2448_s0 = inlined_call_operand.vmem [shape: f32[2,16,16,8], index: 0, kind: input, shape index: {}, may-alias: {0,1}]   ;;  %s2449_s1 = inlined_call_operand.vmem [shape: f32[2,16,16,8], index: 1, kind: input, shape index: {}, may-alias: {0,1}]   ;;  %s2450_s2 = inlined_call_operand.vmem [shape: f32[1,8], index: 2, kind: input, shape index: {}]   ;;  %s2451_s3 = inlined_call_operand.vmem [shape: f32[1,8], index: 3, kind: input, shape index: {}]   ;;  %s2452_s4 = inlined_call_operand.vmem [shape: f32[4,8,32], index: 4, kind: input, shape index: {}]   ;;  %s2453_s5 = inlined_call_operand.vmem [shape: f32[2,16,16,32], index: 5, kind: output, shape index: {0}]   ;;  %s2454_s6 = inlined_call_operand.vmem [shape: f32[2,2,2,32], index: 6, kind: output, shape index: {1}]  }
   0x1   :  { %s2096_s23 = smov 0   ;;  %s2098_s24 = smov 0  }
   0x2   :  { %s2100_s25 = smov 0  }
   0x3 LB: > { %s26_s26 = sadd.s32 1, %s2046_s23  ;;  %s29_s27 = sadd.s32 1, %s2050_s24  ;;  %s2054_s25 = sphi %s2100_s25, %s17_s25   ;;  %s2050_s24 = sphi %s2098_s24, %s2459_s24   ;;  %s2046_s23 = sphi %s2096_s23, %s2458_s23   ;;  %s2042_s22 = sphi %s2094_s22, %s2457_s22   ;;  %s2038_s21 = sphi %s2092_s21, %s2456_s21  }
   0x4   : > { %p27_p0 = scmp.ge.s32.totalorder %s26_s26, 2  ;;  %p1660_p1 = scmp.ge.s32.totalorder %s2054_s25, 1 }
   0x5   : > { %p271_p2 = scmp.lt.s32.totalorder %s2054_s25, 5 }
   0x6   : > { %s2461_s26 = smov (%p27_p0, %s26_s26), 0  ;;  %s2463_s27 = smov (!%p27_p0, %s29_s27), %s2050_s24 }
   0x7   : > { %p272_p3 = pnand %p1660_p1, %p271_p2  ;;  %p31_p4 = scmp.ge.s32.totalorder %s2463_s27, 2 }
   0x8   : > { %v1680_v0 = vld [vmem:[%s2452_s4 + $0x8] sm:$0xff] (!%p272_p3)  ;;  %v1713_v1 = vld [vmem:[%s2452_s4 + $0x10] sm:$0xff] (!%p272_p3)  ;;  %s2131_s8 = sshll.u32 (!%p272_p3), %s2038_s21, 3  ;;  %p333_p5 = scmp.lt.s32.totalorder (!%p272_p3), %s2042_s22, 1  ;;  %v2137_v2 = vld [vmem:[%s2452_s4] sm:$0xff] (!%p272_p3)  ;;  %vm491_vm0 = vcmask (!%p272_p3), 57344  }
   0x9   : > { %s2465_s27 = smov (%p31_p4, %s2463_s27), 0  ;;  %275 = sbr.rel (%p272_p3) target bundleno = 335 (0x14f), region = 40 }
   0xa   : > { %1823 = vmatprep.subr.mxu1 (!%p272_p3), %v1680_v0  ;;  %1875 = vmatprep.subr.mxu0 (!%p272_p3), %v1713_v1  ;;  %p335_p6 = scmp.lt.s32.totalorder (!%p272_p3), %s2131_s8, 15  ;;  %v2142_v3 = vld [vmem:[%s2452_s4 + $0x18] sm:$0xff] (!%p272_p3)  ;;  %v2056_v4 = vmov (!%p272_p3), 0.0   ;;  %s1754_s15 = sadd.s32 (!%p272_p3), 8, %s2131_s8  ;;  %v2163_v5 = vld [vmem:[%s2450_s2] ss:$0 sm:$0xff] (!%p272_p3) }
   0xb   : > { %1824 = vmatpush3.msra.mxu1 (!%p272_p3), %v1680_v0  ;;  %1876 = vmatpush3.msra.mxu0 (!%p272_p3), %v1713_v1  ;;  %492 = vst.msk [vmem:[#allocation2 + $0x10] sm:$0x1] (!%p272_p3), %vm491_vm0, %v2056_v4  ;;  %493 = vst.msk [vmem:[#allocation2 + $0x28] sm:$0x1] (!%p272_p3), %vm491_vm0, %v2056_v4  ;;  %p2151_p7 = scmp.lt.s32.totalorder (!%p272_p3), %s1754_s15, 15  ;;  %vm457_vm1 = vcmask (!%p272_p3), 64512  }
   0xc   : > { %1849 = vmatprep.subr.mxu1 (!%p272_p3), %v2137_v2  ;;  %1901 = vmatprep.subr.mxu0 (!%p272_p3), %v2142_v3  ;;  %494 = vst.msk [vmem:[#allocation2 + $0x40] sm:$0x1] (!%p272_p3), %vm491_vm0, %v2056_v4  ;;  %495 = vst.msk [vmem:[#allocation2 + $0x58] sm:$0x1] (!%p272_p3), %vm491_vm0, %v2056_v4  ;;  %v2175_v6 = vld [vmem:[%s2451_s3] ss:$0 sm:$0xff] (!%p272_p3) }
   0xd   : > { %496 = vst.msk [vmem:[#allocation2 + $0x70] sm:$0x1] (!%p272_p3), %vm491_vm0, %v2056_v4  ;;  %497 = vst.msk [vmem:[#allocation2 + $0x88] sm:$0x1] (!%p272_p3), %vm491_vm0, %v2056_v4  ;;  %p482_p8 = scmp.eq.s32.totalorder (!%p272_p3), %s2038_s21, 1  ;;  %vm1377_vm3 = vcmask (!%p272_p3), 261120  }
   0xe   : > { %498 = vst.msk [vmem:[#allocation2 + $0xa0] sm:$0x1] (!%p272_p3), %vm491_vm0, %v2056_v4  ;;  %499 = vst.msk [vmem:[#allocation2 + $0xb8] sm:$0x1] (!%p272_p3), %vm491_vm0, %v2056_v4  ;;  %p373_p9 = scmp.lt.s32.totalorder (!%p272_p3), %s2038_s21, 1  ;;  %vm1431_vm4 = vcmask (!%p272_p3), 253952  }
   0xf   : > { %500 = vst.msk [vmem:[#allocation2 + $0xd0] sm:$0x1] (!%p272_p3), %vm491_vm0, %v2056_v4 }
  0x10   : > { %s2467_s22 = smov (!%p333_p5, %s2042_s22), 1  ;;  %s2469_s15 = smov (!%p2151_p7, %s1754_s15), 15 }
  0x11   : > { %s336_s13 = scalar_select %p335_p6, %s2131_s8, 15 }
  0x12   : > { %s1663_s14 = sshll.u32 %s2467_s22, 5  ;;  %s2471_s15 = smov (!%p2151_p7, %s2469_s15), 15 }
  0x13   : > { %s1662_s16 = sshll.u32 %s336_s13, 1  ;;  %s1669_s10 = sshll.u32 %s2471_s15, 1 }
  0x14   : > { %s2157_s18 = sadd.s32 %s1663_s14, %s1662_s16  ;;  %s353_s11 = sadd.s32 %s1669_s10, %s1663_s14 }
  0x15   : > { %s1664_s19 = sshll.u32 %s2157_s18, 3  ;;  %s1671_s12 = sshll.u32 %s353_s11, 3 }
  0x16   : > { %s2170_s7 = scalar_lea.vmem %s2448_s0, %s1664_s19  ;;  %s355_s15 = scalar_lea.vmem %s2449_s1, %s1671_s12 }
  0x17   : > { %v381_v7 = vld [vmem:[%s2170_s7] sm:$0xff]  ;;  %v382_v8 = vld [vmem:[%s2170_s7 + $0x8] sm:$0xff]  ;;  %v383_v9 = vld [vmem:[%s2170_s7 + $0x10] sm:$0xff]  ;;  %s2238_s16 = scalar_select %p482_p8, 1, 0 }
  0x18   : > { %v403_v10 = vmul.f32 %v2163_v5, %v381_v7  ;;  %v404_v11 = vmul.f32 %v2163_v5, %v382_v8  ;;  %v405_v12 = vmul.f32 %v2163_v5, %v383_v9  ;;  %v384_v13 = vld [vmem:[%s2170_s7 + $0x18] sm:$0xff]  ;;  %v385_v14 = vld [vmem:[%s2170_s7 + $0x20] sm:$0xff]  ;;  %v386_v15 = vld [vmem:[%s2170_s7 + $0x28] sm:$0xff]  ;;  %s2361_s28 = scalar_lea.vmem %s2453_s5, %s1664_s19  ;;  %s2473_s21 = smov (!%p373_p9, %s2038_s21), 1 }
  0x19   : > { %v406_v16 = vmul.f32 %v2163_v5, %v384_v13  ;;  %v407_v17 = vmul.f32 %v2163_v5, %v385_v14  ;;  %v408_v18 = vmul.f32 %v2163_v5, %v386_v15  ;;  %v387_v19 = vld [vmem:[%s2170_s7 + $0x30] sm:$0xff]  ;;  %v388_v20 = vld [vmem:[%s2170_s7 + $0x38] sm:$0xff]  ;;  %v389_v29 = vld [vmem:[%s2170_s7 + $0x40] sm:$0xff]  ;;  %v484_v13 = vstv %s2238_s16  ;;  %s1676_s18 = sshll.u32 %s2467_s22, 1 }
  0x1a   : > { %v425_v21 = vadd.f32 %v2175_v6, %v403_v10  ;;  %v426_v22 = vadd.f32 %v2175_v6, %v404_v11  ;;  %v427_v23 = vadd.f32 %v2175_v6, %v405_v12  ;;  %v409_v24 = vmul.f32 %v2163_v5, %v387_v19  ;;  %v390_v30 = vld [vmem:[%s2170_s7 + $0x48] sm:$0xff]  ;;  %v391_v31 = vld [vmem:[%s2170_s7 + $0x50] sm:$0xff]  ;;  %v392_v36 = vld [vmem:[%s2170_s7 + $0x58] sm:$0xff]  ;;  %s376_s19 = sadd.s32 %s1676_s18, %s2473_s21 }
  0x1b   : > { %v428_v25 = vadd.f32 %v2175_v6, %v406_v16  ;;  %v429_v26 = vadd.f32 %v2175_v6, %v407_v17  ;;  %v430_v27 = vadd.f32 %v2175_v6, %v408_v18  ;;  %v410_v28 = vmul.f32 %v2163_v5, %v388_v20  ;;  %v393_v37 = vld [vmem:[%s2170_s7 + $0x60] sm:$0xff]  ;;  %v394_v38 = vld [vmem:[%s2170_s7 + $0x68] sm:$0xff]  ;;  %v395_v43 = vld [vmem:[%s2170_s7 + $0x70] sm:$0xff]  ;;  %s1677_s29 = sshll.u32 %s376_s19, 1 }
  0x1c   : > { %v441_v32 = vmax.f32 %v425_v21, 0.0  ;;  %v442_v33 = vmax.f32 %v426_v22, 0.0  ;;  %v443_v34 = vmax.f32 %v427_v23, 0.0  ;;  %v431_v35 = vadd.f32 %v2175_v6, %v409_v24  ;;  %v396_v48 = vld [vmem:[%s2170_s7 + $0x78] sm:$0xff]  ;;  %v474_v61 = vld [vmem:[%s355_s15] sm:$0xff]  ;;  %v475_v62 = vld [vmem:[%s355_s15 + $0x8] sm:$0xff]  ;;  %s378_s8 = scalar_lea.vmem %s2454_s6, %s1677_s29 }
  0x1d   : > { %v444_v39 = vmax.f32 %v428_v25, 0.0  ;;  %v445_v40 = vmax.f32 %v429_v26, 0.0  ;;  %v446_v41 = vmax.f32 %v430_v27, 0.0  ;;  %v432_v42 = vadd.f32 %v2175_v6, %v410_v28 }
  0x1e   : > { %458 = vst.msk [vmem:[#allocation2] sm:$0xff] %vm457_vm1, %v441_v32  ;;  %459 = vst.msk [vmem:[#allocation2 + $0x8] sm:$0xff] %vm457_vm1, %v442_v33  ;;  %v447_v44 = vmax.f32 %v431_v35, 0.0  ;;  %v411_v45 = vmul.f32 %v2163_v5, %v389_v29  ;;  %v412_v46 = vmul.f32 %v2163_v5, %v390_v30  ;;  %v413_v47 = vmul.f32 %v2163_v5, %v391_v31 }
  0x1f   : > { %460 = vst.msk [vmem:[#allocation2 + $0x18] sm:$0xff] %vm457_vm1, %v443_v34  ;;  %461 = vst.msk [vmem:[#allocation2 + $0x20] sm:$0xff] %vm457_vm1, %v444_v39  ;;  %v448_v49 = vmax.f32 %v432_v42, 0.0  ;;  %v414_v50 = vmul.f32 %v2163_v5, %v392_v36  ;;  %v415_v51 = vmul.f32 %v2163_v5, %v393_v37  ;;  %v416_v52 = vmul.f32 %v2163_v5, %v394_v38 }
  0x20   : > { %462 = vst.msk [vmem:[#allocation2 + $0x30] sm:$0xff] %vm457_vm1, %v445_v40  ;;  %463 = vst.msk [vmem:[#allocation2 + $0x38] sm:$0xff] %vm457_vm1, %v446_v41  ;;  %v433_v53 = vadd.f32 %v2175_v6, %v411_v45  ;;  %v434_v54 = vadd.f32 %v2175_v6, %v412_v46  ;;  %v435_v55 = vadd.f32 %v2175_v6, %v413_v47  ;;  %vm485_vm2 = vcmp.eq.s32.totalorder %v484_v13, 1 }
  0x21   : > { %464 = vst.msk [vmem:[#allocation2 + $0x48] sm:$0xff] %vm457_vm1, %v447_v44  ;;  %v417_v56 = vmul.f32 %v2163_v5, %v395_v43  ;;  %465 = vst.msk [vmem:[#allocation2 + $0x50] sm:$0xff] %vm457_vm1, %v448_v49  ;;  %v436_v57 = vadd.f32 %v2175_v6, %v414_v50  ;;  %v437_v58 = vadd.f32 %v2175_v6, %v415_v51 }
  0x22   : > { %v438_v59 = vadd.f32 %v2175_v6, %v416_v52  ;;  %v418_v60 = vmul.f32 %v2163_v5, %v396_v48  ;;  %v449_v63 = vmax.f32 %v433_v53, 0.0  ;;  %v450_v0 = vmax.f32 %v434_v54, 0.0 }
  0x23   : > { %v451_v1 = vmax.f32 %v435_v55, 0.0  ;;  %v439_v4 = vadd.f32 %v2175_v6, %v417_v56  ;;  %v452_v7 = vmax.f32 %v436_v57, 0.0  ;;  %v453_v8 = vmax.f32 %v437_v58, 0.0 }
  0x24   : > { %v454_v9 = vmax.f32 %v438_v59, 0.0  ;;  %v440_v10 = vadd.f32 %v2175_v6, %v418_v60  ;;  %466 = vst.msk [vmem:[#allocation2 + $0x60] sm:$0xff] %vm457_vm1, %v449_v63  ;;  %467 = vst.msk [vmem:[#allocation2 + $0x68] sm:$0xff] %vm457_vm1, %v450_v0  ;;  %v476_v12 = vmul.f32 %v2163_v5, %v474_v61  ;;  %v477_v14 = vmul.f32 %v2163_v5, %v475_v62 }
  0x25   : > { %468 = vst.msk [vmem:[#allocation2 + $0x78] sm:$0xff] %vm457_vm1, %v451_v1  ;;  %v455_v11 = vmax.f32 %v439_v4, 0.0  ;;  %v517_v15 = vld [vmem:[#allocation2 + $0x1] sm:$0xff]  ;;  %v518_v17 = vld [vmem:[#allocation2 + $0x9] sm:$0xff]  ;;  %469 = vst.msk [vmem:[#allocation2 + $0x80] sm:$0xff] %vm457_vm1, %v452_v7 }
  0x26   : > { %v2253_v16 = vld [vmem:[#allocation2 + $0x18] sm:$0xff]  ;;  %470 = vst.msk [vmem:[#allocation2 + $0x90] sm:$0xff] %vm457_vm1, %v453_v8  ;;  %471 = vst.msk [vmem:[#allocation2 + $0x98] sm:$0xff] %vm457_vm1, %v454_v9  ;;  %v456_v18 = vmax.f32 %v440_v10, 0.0  ;;  %1825 = vmatprep.mubr.msk.f32.mxu1 %vm457_vm1, %v517_v15  ;;  %v2261_v19 = vld [vmem:[#allocation2 + $0x20] sm:$0xff]  ;;  %v478_v21 = vadd.f32 %v2175_v6, %v476_v12  ;;  %v479_v22 = vadd.f32 %v2175_v6, %v477_v14 }
  0x27   : > { %1877 = vmatprep.mubr.msk.f32.mxu0 %vm457_vm1, %v2253_v16  ;;  %v2263_v20 = vld [vmem:[#allocation2 + $0x19] sm:$0xff]  ;;  %v2265_v5 = vld [vmem:[#allocation2 + $0x30] sm:$0xff]  ;;  %472 = vst.msk [vmem:[#allocation2 + $0xa8] sm:$0xff] %vm457_vm1, %v455_v11  ;;  %1826 = vmatmul.mubr.msk.f32.vlgmr.msra.gmra.mrb[0].mxu1 %vm457_vm1, %v518_v17  ;;  %v2276_v23 = vld [vmem:[#allocation2 + $0x21] sm:$0xff] }
  0x28   : > { %1878 = vmatmul.mubr.msk.f32.vlgmr.msra.gmra.mrb[0].mxu0 %vm457_vm1, %v2261_v19  ;;  %473 = vst.msk [vmem:[#allocation2 + $0xb0] sm:$0xff] %vm457_vm1, %v456_v18  ;;  %1850 = vmatpush3.msra.mxu1 %v2137_v2  ;;  %v2278_v24 = vld [vmem:[#allocation2 + $0x38] sm:$0xff]  ;;  %v480_v25 = vmax.f32 %v478_v21, 0.0  ;;  %v481_v26 = vmax.f32 %v479_v22, 0.0  ;;  %v2284_v27 = vld [vmem:[#allocation2 + $0x48] sm:$0xff]  ;;  %v501_v50 = vld [vmem:[#allocation2] sm:$0xff] }
  0x29   : > { %1902 = vmatpush3.msra.mxu0 %v2142_v3  ;;  %1828 = vmatprep.mubr.msk.f32.mxu1 %vm457_vm1, %v2263_v20  ;;  %v521_v6 = vld [vmem:[#allocation2 + $0x31] sm:$0xff]  ;;  %v522_v2 = vld [vmem:[#allocation2 + $0x39] sm:$0xff]  ;;  %v523_v30 = vld [vmem:[#allocation2 + $0x49] sm:$0xff] }
  0x2a   : > { %1880 = vmatprep.mubr.msk.f32.mxu0 %vm457_vm1, %v2265_v5  ;;  %v486_v28 = vsel %vm485_vm2, 0.0, %v480_v25  ;;  %v487_v29 = vsel %vm485_vm2, 0.0, %v481_v26  ;;  %v539_v3 = vld [vmem:[#allocation2 + $0x50] sm:$0xff]  ;;  %v502_v51 = vld [vmem:[#allocation2 + $0x8] sm:$0xff] }
  0x2b   : > { %1829 = vmatmul.mubr.msk.f32.gmra.mrb[2].mxu1 %vm457_vm1, %v2276_v23  ;;  %489 = vst.msk [vmem:[#allocation2 + $0xc0] sm:$0xff] %vm457_vm1, %v486_v28  ;;  %490 = vst.msk [vmem:[#allocation2 + $0xc8] sm:$0xff] %vm457_vm1, %v487_v29  ;;  %v540_v31 = vld [vmem:[#allocation2 + $0x60] sm:$0xff]  ;;  %v524_v32 = vld [vmem:[#allocation2 + $0x51] sm:$0xff] }
  0x2c   : > { %1881 = vmatmul.mubr.msk.f32.gmra.mrb[2].mxu0 %vm457_vm1, %v2278_v24  ;;  %1831 = vmatprep.mubr.msk.f32.mxu1 %vm457_vm1, %v521_v6  ;;  %v541_v33 = vld [vmem:[#allocation2 + $0x68] sm:$0xff]  ;;  %v542_v35 = vld [vmem:[#allocation2 + $0x78] sm:$0xff]  ;;  %v543_v37 = vld [vmem:[#allocation2 + $0x80] sm:$0xff] }
  0x2d   : > { %1883 = vmatprep.mubr.msk.f32.mxu0 %vm457_vm1, %v2284_v27  ;;  %v525_v34 = vld [vmem:[#allocation2 + $0x61] sm:$0xff]  ;;  %v526_v36 = vld [vmem:[#allocation2 + $0x69] sm:$0xff]  ;;  %v527_v38 = vld [vmem:[#allocation2 + $0x79] sm:$0xff] }
  0x2e   : > { %v544_v39 = vld [vmem:[#allocation2 + $0x90] sm:$0xff]  ;;  %v528_v40 = vld [vmem:[#allocation2 + $0x81] sm:$0xff]  ;;  %v545_v41 = vld [vmem:[#allocation2 + $0x98] sm:$0xff] }
  0x2f   : > { %1832 = vmatmul.mubr.msk.f32.gmra.mrb[4].mxu1 %vm457_vm1, %v522_v2  ;;  %v529_v42 = vld [vmem:[#allocation2 + $0x91] sm:$0xff]  ;;  %v546_v43 = vld [vmem:[#allocation2 + $0xa8] sm:$0xff]  ;;  %v530_v44 = vld [vmem:[#allocation2 + $0x99] sm:$0xff] }
  0x30   : > { %1884 = vmatmul.mubr.msk.f32.gmra.mrb[4].mxu0 %vm457_vm1, %v539_v3  ;;  %1834 = vmatprep.mubr.msk.f32.mxu1 %vm457_vm1, %v523_v30  ;;  %v547_v45 = vld [vmem:[#allocation2 + $0xb0] sm:$0xff] }
  0x31   : > { %1886 = vmatprep.mubr.msk.f32.mxu0 %vm457_vm1, %v540_v31  ;;  %v531_v46 = vld [vmem:[#allocation2 + $0xa9] sm:$0xff]  ;;  %v532_v48 = vld [vmem:[#allocation2 + $0xb1] sm:$0xff] }
  0x32   : > { %v548_v47 = vld [vmem:[#allocation2 + $0xc0] sm:$0xff]  ;;  %v549_v49 = vld [vmem:[#allocation2 + $0xc8] sm:$0xff] }
  0x33   : > { %1835 = vmatmul.mubr.msk.f32.gmra.mrb[6].mxu1 %vm457_vm1, %v524_v32  ;;  %v564_v52 = vld [vmem:[#allocation2 + $0xc1] sm:$0xff]  ;;  %v565_v53 = vld [vmem:[#allocation2 + $0xc9] sm:$0xff] }
  0x34   : > { %1887 = vmatmul.mubr.msk.f32.gmra.mrb[6].mxu0 %vm457_vm1, %v541_v33  ;;  %1837 = vmatprep.mubr.msk.f32.mxu1 %vm457_vm1, %v525_v34 }
  0x35   : > { %1889 = vmatprep.mubr.msk.f32.mxu0 %vm457_vm1, %v542_v35 }
  0x37   : > { %1838 = vmatmul.mubr.msk.f32.gmra.mrb[8].mxu1 %vm457_vm1, %v526_v36 }
  0x38   : > { %1890 = vmatmul.mubr.msk.f32.gmra.mrb[8].mxu0 %vm457_vm1, %v543_v37  ;;  %1840 = vmatprep.mubr.msk.f32.mxu1 %vm457_vm1, %v527_v38 }
  0x39   : > { %1892 = vmatprep.mubr.msk.f32.mxu0 %vm457_vm1, %v544_v39 }
  0x3b   : > { %1841 = vmatmul.mubr.msk.f32.gmra.mrb[10].mxu1 %vm457_vm1, %v528_v40 }
  0x3c   : > { %1893 = vmatmul.mubr.msk.f32.gmra.mrb[10].mxu0 %vm457_vm1, %v545_v41  ;;  %1843 = vmatprep.mubr.msk.f32.mxu1 %vm457_vm1, %v529_v42 }
  0x3d   : > { %1895 = vmatprep.mubr.msk.f32.mxu0 %vm457_vm1, %v546_v43 }
  0x3f   : > { %1844 = vmatmul.mubr.msk.f32.gmra.mrb[12].mxu1 %vm457_vm1, %v530_v44 }
  0x40   : > { %1896 = vmatmul.mubr.msk.f32.gmra.mrb[12].mxu0 %vm457_vm1, %v547_v45  ;;  %1846 = vmatprep.mubr.msk.f32.mxu1 %vm457_vm1, %v531_v46 }
  0x41   : > { %1898 = vmatprep.mubr.msk.f32.mxu0 %vm457_vm1, %v548_v47 }
  0x43   : > { %1847 = vmatmul.mubr.msk.f32.gmra.mrb[14].mxu1 %vm457_vm1, %v532_v48 }
  0x44   : > { %1899 = vmatmul.mubr.msk.f32.gmra.mrb[14].mxu0 %vm457_vm1, %v549_v49  ;;  %1851 = vmatprep.mubr.msk.f32.mxu1 %vm457_vm1, %v501_v50 }
  0x45   : > { %1903 = vmatprep.mubr.msk.f32.mxu0 %vm457_vm1, %v2263_v20 }
  0x47   : > { %1852 = vmatmul.mubr.msk.f32.vlgmr.msra.gmra.mrb[0].mxu1 %vm457_vm1, %v502_v51 }
  0x48   : > { %1904 = vmatmul.mubr.msk.f32.vlgmr.msra.gmra.mrb[0].mxu0 %vm457_vm1, %v2276_v23  ;;  %1854 = vmatprep.mubr.msk.f32.mxu1 %vm457_vm1, %v2253_v16 }
  0x49   : > { %1906 = vmatprep.mubr.msk.f32.mxu0 %vm457_vm1, %v521_v6 }
  0x4b   : > { %1855 = vmatmul.mubr.msk.f32.gmra.mrb[2].mxu1 %vm457_vm1, %v2261_v19 }
  0x4c   : > { %1907 = vmatmul.mubr.msk.f32.gmra.mrb[2].mxu0 %vm457_vm1, %v522_v2  ;;  %1857 = vmatprep.mubr.msk.f32.mxu1 %vm457_vm1, %v2265_v5 }
  0x4d   : > { %1909 = vmatprep.mubr.msk.f32.mxu0 %vm457_vm1, %v523_v30 }
  0x4f   : > { %1858 = vmatmul.mubr.msk.f32.gmra.mrb[4].mxu1 %vm457_vm1, %v2278_v24 }
  0x50   : > { %1910 = vmatmul.mubr.msk.f32.gmra.mrb[4].mxu0 %vm457_vm1, %v524_v32  ;;  %1860 = vmatprep.mubr.msk.f32.mxu1 %vm457_vm1, %v2284_v27 }
  0x51   : > { %1912 = vmatprep.mubr.msk.f32.mxu0 %vm457_vm1, %v525_v34 }
  0x53   : > { %1861 = vmatmul.mubr.msk.f32.gmra.mrb[6].mxu1 %vm457_vm1, %v539_v3 }
  0x54   : > { %1913 = vmatmul.mubr.msk.f32.gmra.mrb[6].mxu0 %vm457_vm1, %v526_v36  ;;  %1863 = vmatprep.mubr.msk.f32.mxu1 %vm457_vm1, %v540_v31 }
  0x55   : > { %1915 = vmatprep.mubr.msk.f32.mxu0 %vm457_vm1, %v527_v38 }
  0x57   : > { %1864 = vmatmul.mubr.msk.f32.gmra.mrb[8].mxu1 %vm457_vm1, %v541_v33 }
  0x58   : > { %1916 = vmatmul.mubr.msk.f32.gmra.mrb[8].mxu0 %vm457_vm1, %v528_v40  ;;  %1866 = vmatprep.mubr.msk.f32.mxu1 %vm457_vm1, %v542_v35 }
  0x59   : > { %1918 = vmatprep.mubr.msk.f32.mxu0 %vm457_vm1, %v529_v42 }
  0x5b   : > { %1867 = vmatmul.mubr.msk.f32.gmra.mrb[10].mxu1 %vm457_vm1, %v543_v37 }
  0x5c   : > { %1919 = vmatmul.mubr.msk.f32.gmra.mrb[10].mxu0 %vm457_vm1, %v530_v44  ;;  %1869 = vmatprep.mubr.msk.f32.mxu1 %vm457_vm1, %v544_v39 }
  0x5d   : > { %1921 = vmatprep.mubr.msk.f32.mxu0 %vm457_vm1, %v531_v46 }
  0x5f   : > { %1870 = vmatmul.mubr.msk.f32.gmra.mrb[12].mxu1 %vm457_vm1, %v545_v41 }
  0x60   : > { %1922 = vmatmul.mubr.msk.f32.gmra.mrb[12].mxu0 %vm457_vm1, %v532_v48  ;;  %1872 = vmatprep.mubr.msk.f32.mxu1 %vm457_vm1, %v546_v43 }
  0x61   : > { %1924 = vmatprep.mubr.msk.f32.mxu0 %vm457_vm1, %v564_v52 }
  0x63   : > { %1873 = vmatmul.mubr.msk.f32.gmra.mrb[14].mxu1 %vm457_vm1, %v547_v45 }
  0x64   : > { %1925 = vmatmul.mubr.msk.f32.gmra.mrb[14].mxu0 %vm457_vm1, %v565_v53 }
 0x11a   : > { %v1853_v54 = vpop.f32.mrb[0].mxu1 }
 0x11b   : > { %v1905_v55 = vpop.f32.mrb[0].mxu0  ;;  %v876_v57 = vpop.f32.mrb[1].mxu1 }
 0x11c   : > { %v1927_v56 = vadd.f32 %v1905_v55, %v1853_v54  ;;  %v1282_v58 = vpop.f32.mrb[1].mxu0 }
 0x11d   : > { %v1928_v59 = vadd.f32 %v1282_v58, %v876_v57 }
 0x11e   : > { %1379 = vst.msk [vmem:[%s2361_s28 + $0x8] sm:$0xff] %vm1377_vm3, %v1927_v56  ;;  %v1395_v60 = vsel %vm1377_vm3, %v1927_v56, 0.0  ;;  %v1434_v61 = vmul.f32 %v1927_v56, %v1927_v56  ;;  %v1856_v0 = vpop.f32.mrb[2].mxu1 }
 0x11f   : > { %1378 = vst.msk [vmem:[%s2361_s28] sm:$0xff] %vm1377_vm3, %v1928_v59  ;;  %v1394_v62 = vsel %vm1377_vm3, %v1928_v59, 0.0  ;;  %v1433_v63 = vmul.f32 %v1928_v59, %v1928_v59  ;;  %v1908_v1 = vpop.f32.mrb[2].mxu0  ;;  %v886_v9 = vpop.f32.mrb[3].mxu1 }
 0x120   : > { %v1450_v4 = vsel %vm1377_vm3, %v1434_v61, 0.0  ;;  %v1396_v7 = vadd.f32 %v1395_v60, %v1394_v62  ;;  %v1929_v8 = vadd.f32 %v1908_v1, %v1856_v0  ;;  %v1292_v10 = vpop.f32.mrb[3].mxu0 }
 0x121   : > { %v1449_v11 = vsel %vm1377_vm3, %v1433_v63, 0.0  ;;  %v1930_v12 = vadd.f32 %v1292_v10, %v886_v9 }
 0x122   : > { %v1451_v13 = vadd.f32 %v1450_v4, %v1449_v11  ;;  %1381 = vst.msk [vmem:[%s2361_s28 + $0x18] sm:$0xff] %vm1377_vm3, %v1929_v8  ;;  %v1436_v14 = vmul.f32 %v1929_v8, %v1929_v8  ;;  %v1859_v17 = vpop.f32.mrb[4].mxu1  ;;  %v1399_v22 = vsel %vm1377_vm3, %v1929_v8, 0.0 }
 0x123   : > { %1380 = vst.msk [vmem:[%s2361_s28 + $0x10] sm:$0xff] %vm1377_vm3, %v1930_v12  ;;  %v1397_v15 = vsel %vm1377_vm3, %v1930_v12, 0.0  ;;  %v1435_v16 = vmul.f32 %v1930_v12, %v1930_v12  ;;  %v1911_v18 = vpop.f32.mrb[4].mxu0  ;;  %v896_v5 = vpop.f32.mrb[5].mxu1 }
 0x124   : > { %v1398_v19 = vadd.f32 %v1397_v15, %v1396_v7  ;;  %v1931_v20 = vadd.f32 %v1911_v18, %v1859_v17  ;;  %v1302_v21 = vpop.f32.mrb[5].mxu0  ;;  %v1454_v6 = vsel %vm1377_vm3, %v1436_v14, 0.0 }
 0x125   : > { %v1452_v23 = vsel %vm1377_vm3, %v1435_v16, 0.0  ;;  %v1932_v24 = vadd.f32 %v1302_v21, %v896_v5 }
 0x126   : > { %v1453_v25 = vadd.f32 %v1452_v23, %v1451_v13  ;;  %1383 = vst.msk [vmem:[%s2361_s28 + $0x28] sm:$0xff] %vm1377_vm3, %v1931_v20  ;;  %v1400_v26 = vadd.f32 %v1399_v22, %v1398_v19  ;;  %v1438_v27 = vmul.f32 %v1931_v20, %v1931_v20  ;;  %v1862_v2 = vpop.f32.mrb[6].mxu1  ;;  %v1403_v35 = vsel %vm1377_vm3, %v1931_v20, 0.0 }
 0x127   : > { %1382 = vst.msk [vmem:[%s2361_s28 + $0x20] sm:$0xff] %vm1377_vm3, %v1932_v24  ;;  %v1401_v28 = vsel %vm1377_vm3, %v1932_v24, 0.0  ;;  %v1437_v29 = vmul.f32 %v1932_v24, %v1932_v24  ;;  %v1914_v3 = vpop.f32.mrb[6].mxu0  ;;  %v906_v33 = vpop.f32.mrb[7].mxu1 }
 0x128   : > { %v1402_v30 = vadd.f32 %v1401_v28, %v1400_v26  ;;  %v1455_v31 = vadd.f32 %v1454_v6, %v1453_v25  ;;  %v1933_v32 = vadd.f32 %v1914_v3, %v1862_v2  ;;  %v1312_v34 = vpop.f32.mrb[7].mxu0  ;;  %v1458_v40 = vsel %vm1377_vm3, %v1438_v27, 0.0 }
 0x129   : > { %v1456_v36 = vsel %vm1377_vm3, %v1437_v29, 0.0  ;;  %v1934_v37 = vadd.f32 %v1312_v34, %v906_v33 }
 0x12a   : > { %v1457_v38 = vadd.f32 %v1456_v36, %v1455_v31  ;;  %1385 = vst.msk [vmem:[%s2361_s28 + $0x38] sm:$0xff] %vm1377_vm3, %v1933_v32  ;;  %v1404_v39 = vadd.f32 %v1403_v35, %v1402_v30  ;;  %v1440_v41 = vmul.f32 %v1933_v32, %v1933_v32  ;;  %v1865_v44 = vpop.f32.mrb[8].mxu1  ;;  %v1407_v51 = vsel %vm1377_vm3, %v1933_v32, 0.0 }
 0x12b   : > { %1384 = vst.msk [vmem:[%s2361_s28 + $0x30] sm:$0xff] %vm1377_vm3, %v1934_v37  ;;  %v1405_v42 = vsel %vm1377_vm3, %v1934_v37, 0.0  ;;  %v1439_v43 = vmul.f32 %v1934_v37, %v1934_v37  ;;  %v1917_v45 = vpop.f32.mrb[8].mxu0  ;;  %v916_v49 = vpop.f32.mrb[9].mxu1 }
 0x12c   : > { %v1406_v46 = vadd.f32 %v1405_v42, %v1404_v39  ;;  %v1459_v47 = vadd.f32 %v1458_v40, %v1457_v38  ;;  %v1935_v48 = vadd.f32 %v1917_v45, %v1865_v44  ;;  %v1322_v50 = vpop.f32.mrb[9].mxu0  ;;  %v1462_v56 = vsel %vm1377_vm3, %v1440_v41, 0.0 }
 0x12d   : > { %v1460_v52 = vsel %vm1377_vm3, %v1439_v43, 0.0  ;;  %v1936_v53 = vadd.f32 %v1322_v50, %v916_v49 }
 0x12e   : > { %v1461_v54 = vadd.f32 %v1460_v52, %v1459_v47  ;;  %1387 = vst.msk [vmem:[%s2361_s28 + $0x48] sm:$0xff] %vm1377_vm3, %v1935_v48  ;;  %v1408_v55 = vadd.f32 %v1407_v51, %v1406_v46  ;;  %v1442_v57 = vmul.f32 %v1935_v48, %v1935_v48  ;;  %v1868_v60 = vpop.f32.mrb[10].mxu1  ;;  %v1411_v7 = vsel %vm1377_vm3, %v1935_v48, 0.0 }
 0x12f   : > { %1386 = vst.msk [vmem:[%s2361_s28 + $0x40] sm:$0xff] %vm1377_vm3, %v1936_v53  ;;  %v1409_v58 = vsel %vm1377_vm3, %v1936_v53, 0.0  ;;  %v1441_v59 = vmul.f32 %v1936_v53, %v1936_v53  ;;  %v1920_v61 = vpop.f32.mrb[10].mxu0  ;;  %v926_v1 = vpop.f32.mrb[11].mxu1 }
 0x130   : > { %v1410_v62 = vadd.f32 %v1409_v58, %v1408_v55  ;;  %v1463_v63 = vadd.f32 %v1462_v56, %v1461_v54  ;;  %v1937_v0 = vadd.f32 %v1920_v61, %v1868_v60  ;;  %v1332_v4 = vpop.f32.mrb[11].mxu0  ;;  %v1466_v12 = vsel %vm1377_vm3, %v1442_v57, 0.0 }
 0x131   : > { %v1464_v8 = vsel %vm1377_vm3, %v1441_v59, 0.0  ;;  %v1938_v9 = vadd.f32 %v1332_v4, %v926_v1 }
 0x132   : > { %v1465_v10 = vadd.f32 %v1464_v8, %v1463_v63  ;;  %1389 = vst.msk [vmem:[%s2361_s28 + $0x58] sm:$0xff] %vm1377_vm3, %v1937_v0  ;;  %v1412_v11 = vadd.f32 %v1411_v7, %v1410_v62  ;;  %v1444_v13 = vmul.f32 %v1937_v0, %v1937_v0  ;;  %v1871_v16 = vpop.f32.mrb[12].mxu1  ;;  %v1415_v22 = vsel %vm1377_vm3, %v1937_v0, 0.0 }
 0x133   : > { %1388 = vst.msk [vmem:[%s2361_s28 + $0x50] sm:$0xff] %vm1377_vm3, %v1938_v9  ;;  %v1413_v14 = vsel %vm1377_vm3, %v1938_v9, 0.0  ;;  %v1443_v15 = vmul.f32 %v1938_v9, %v1938_v9  ;;  %v1923_v17 = vpop.f32.mrb[12].mxu0  ;;  %v936_v5 = vpop.f32.mrb[13].mxu1 }
 0x134   : > { %v1414_v18 = vadd.f32 %v1413_v14, %v1412_v11  ;;  %v1467_v19 = vadd.f32 %v1466_v12, %v1465_v10  ;;  %v1939_v20 = vadd.f32 %v1923_v17, %v1871_v16  ;;  %v1342_v21 = vpop.f32.mrb[13].mxu0  ;;  %v1470_v6 = vsel %vm1377_vm3, %v1444_v13, 0.0 }
 0x135   : > { %v1468_v23 = vsel %vm1377_vm3, %v1443_v15, 0.0  ;;  %v1940_v24 = vadd.f32 %v1342_v21, %v936_v5 }
 0x136   : > { %v1469_v25 = vadd.f32 %v1468_v23, %v1467_v19  ;;  %1391 = vst.msk [vmem:[%s2361_s28 + $0x68] sm:$0xff] %vm1377_vm3, %v1939_v20  ;;  %v1416_v26 = vadd.f32 %v1415_v22, %v1414_v18  ;;  %v1446_v27 = vmul.f32 %v1939_v20, %v1939_v20  ;;  %v1874_v2 = vpop.f32.mrb[14].mxu1  ;;  %v1419_v35 = vsel %vm1377_vm3, %v1939_v20, 0.0 }
 0x137   : > { %1390 = vst.msk [vmem:[%s2361_s28 + $0x60] sm:$0xff] %vm1377_vm3, %v1940_v24  ;;  %v1417_v28 = vsel %vm1377_vm3, %v1940_v24, 0.0  ;;  %v1445_v29 = vmul.f32 %v1940_v24, %v1940_v24  ;;  %v1926_v3 = vpop.f32.mrb[14].mxu0  ;;  %v946_v33 = vpop.f32.mrb[15].mxu1 }
 0x138   : > { %v1418_v30 = vadd.f32 %v1417_v28, %v1416_v26  ;;  %v1471_v31 = vadd.f32 %v1470_v6, %v1469_v25  ;;  %v1941_v32 = vadd.f32 %v1926_v3, %v1874_v2  ;;  %v1352_v34 = vpop.f32.mrb[15].mxu0  ;;  %v1474_v40 = vsel %vm1377_vm3, %v1446_v27, 0.0 }
 0x139   : > { %v1472_v36 = vsel %vm1377_vm3, %v1445_v29, 0.0  ;;  %v1942_v37 = vadd.f32 %v1352_v34, %v946_v33 }
 0x13a   : > { %v1473_v38 = vadd.f32 %v1472_v36, %v1471_v31  ;;  %1393 = vst.msk [vmem:[%s2361_s28 + $0x78] sm:$0xff] %vm1377_vm3, %v1941_v32  ;;  %v1420_v39 = vadd.f32 %v1419_v35, %v1418_v30  ;;  %v1448_v41 = vmul.f32 %v1941_v32, %v1941_v32  ;;  %v1423_v46 = vsel %vm1377_vm3, %v1941_v32, 0.0 }
 0x13b   : > { %1392 = vst.msk [vmem:[%s2361_s28 + $0x70] sm:$0xff] %vm1377_vm3, %v1942_v37  ;;  %v1421_v42 = vsel %vm1377_vm3, %v1942_v37, 0.0  ;;  %v1447_v43 = vmul.f32 %v1942_v37, %v1942_v37 }
 0x13c   : > { %v1422_v44 = vadd.f32 %v1421_v42, %v1420_v39  ;;  %v1475_v45 = vadd.f32 %v1474_v40, %v1473_v38  ;;  %v1478_v50 = vsel %vm1377_vm3, %v1448_v41, 0.0 }
 0x13d   : > { %v1476_v47 = vsel %vm1377_vm3, %v1447_v43, 0.0 }
 0x13e   : > { %v1424_v48 = vadd.f32 %v1423_v46, %v1422_v44  ;;  %v1477_v49 = vadd.f32 %v1476_v47, %v1475_v45 }
 0x140   : > { %v1425_v51 = vrot.slane %v1424_v48, 4  ;;  %v1479_v52 = vadd.f32 %v1478_v50, %v1477_v49 }
 0x142   : > { %v1426_v53 = vadd.f32 %v1425_v51, %v1424_v48  ;;  %v1480_v54 = vrot.slane %v1479_v52, 4 }
 0x144   : > { %v1427_v55 = vrot.slane %v1426_v53, 2  ;;  %v1481_v56 = vadd.f32 %v1480_v54, %v1479_v52 }
 0x146   : > { %v1428_v57 = vadd.f32 %v1427_v55, %v1426_v53  ;;  %v1482_v58 = vrot.slane %v1481_v56, 2 }
 0x148   : > { %v1429_v59 = vrot.slane %v1428_v57, 1  ;;  %v1483_v60 = vadd.f32 %v1482_v58, %v1481_v56 }
 0x14a   : > { %v1430_v61 = vadd.f32 %v1429_v59, %v1428_v57  ;;  %v1484_v62 = vrot.slane %v1483_v60, 1 }
 0x14c   : > { %1432 = vst.msk [vmem:[%s378_s8] sm:$0x1] %vm1431_vm4, %v1430_v61  ;;  %v1485_v63 = vadd.f32 %v1484_v62, %v1483_v60 }
 0x14e   : > { %1486 = vst.msk [vmem:[%s378_s8 + $0x1] sm:$0x1] %vm1431_vm4, %v1485_v63 }
 0x14f PF: > { %s17_s25 = sadd.s32 1, %s2054_s25   ;;  %s2456_s21 = smov %s2046_s23 }
 0x150   : > { %p14_p10 = scmp.ge.s32.totalorder %s17_s25, 6   ;;  %s2457_s22 = smov %s2050_s24 }
 0x151   : > { %s2458_s23 = smov %s2461_s26  ;;  %s2459_s24 = smov %s2465_s27 }
 0x152   :  { %16 = sbr.rel (!%p14_p10) target bundleno = 3 (0x3), region = 90 }

// kernel: tile.18
= control target key start
LH: loop header
LB: loop body
LE: loop exit
PB: predicated region body
PF: predicated region fallthrough
CT: control target
= control target key end

     0   :  { %s40_s0 = inlined_call_operand.vmem [shape: f32[16], index: 0, kind: input, shape index: {}]   ;;  %s41_s1 = inlined_call_operand.vmem [shape: f32[32,16], index: 1, kind: output, shape index: {}]  }
   0x1   :  { %v4_v0 = vld [vmem:[%s40_s0] ss:$0 sm:$0xff] }
   0x2   :  { %5 = vst [vmem:[%s41_s1] sm:$0xff] %v4_v0  ;;  %12 = vst [vmem:[%s41_s1 + $0x8] sm:$0xff] %v4_v0 }
   0x3   :  { %13 = vst [vmem:[%s41_s1 + $0x10] sm:$0xff] %v4_v0  ;;  %14 = vst [vmem:[%s41_s1 + $0x18] sm:$0xff] %v4_v0 }

// kernel: tile.19
= control target key start
LH: loop header
LB: loop body
LE: loop exit
PB: predicated region body
PF: predicated region fallthrough
CT: control target
= control target key end

     0   :  { %s89_s8 = smov 112   ;;  %s90_s11 = smov 80   ;;  %vm3_vm0 = vcmask 130048   ;;  %vm9_vm1 = vcmask 1048448   ;;  %vm15_vm2 = vcmask 917248   ;;  %vm21_vm3 = vcmask 786048   ;;  %s142_s0 = inlined_call_operand.vmem [shape: f32[32,16], index: 0, kind: input, shape index: {}]   ;;  %s143_s1 = inlined_call_operand.vmem [shape: f32[1,512], index: 1, kind: output, shape index: {}]  }
   0x1   :  { %v72_v0 = vld [vmem:[%s142_s0 + $0x7] ss:$8 sm:$0xf]   ;;  %v74_v1 = vld [vmem:[%s142_s0 + $0x5] ss:$8 sm:$0xf]  }
   0x2   :  { %7 = vrot.lane.b32.xlu0 %v72_v0, %s89_s8  ;;  %19 = vrot.lane.b32.xlu1 %v74_v1, %s90_s11  ;;  %v73_v2 = vld [vmem:[%s142_s0 + $0x6] ss:$8 sm:$0xf]   ;;  %v75_v3 = vld [vmem:[%s142_s0 + $0x4] ss:$8 sm:$0xf]  }
   0x3   :  { %s91_s16 = smov 96   ;;  %v2_v4 = vld [vmem:[%s142_s0] ss:$8 sm:$0xf]   ;;  %s92_s19 = smov 64   ;;  %vm27_vm4 = vcmask 654848  }
   0x4   :  { %v76_v5 = vld [vmem:[%s142_s0 + $0x3] ss:$8 sm:$0xf]   ;;  %4 = vst.msk [vmem:[#allocation0] ss:$8 sm:$0xf] %vm3_vm0, %v2_v4  }
   0x5   :  { %v77_v6 = vld [vmem:[%s142_s0 + $0x2] ss:$8 sm:$0xf]   ;;  %s93_s24 = smov 48   ;;  %s94_s25 = smov 32   ;;  %vm33_vm5 = vcmask 523648  }
   0x6   :  { %13 = vrot.lane.b32.xlu0 %v73_v2, %s91_s16  ;;  %25 = vrot.lane.b32.xlu1 %v75_v3, %s92_s19  ;;  %v78_v7 = vld [vmem:[%s142_s0 + $0x1] ss:$8 sm:$0xf]   ;;  %s95_s0 = smov 16   ;;  %vm39_vm6 = vcmask 392448   ;;  %vm45_vm7 = vcmask 261248  }
   0xa   :  { %31 = vrot.lane.b32.xlu0 %v76_v5, %s93_s24  ;;  %37 = vrot.lane.b32.xlu1 %v77_v6, %s94_s25 }
   0xe   :  { %43 = vrot.lane.b32.xlu0 %v78_v7, %s95_s0 }
  0x74   :  { %v8_v8 = vpop.permute.xlu0 %7   ;;  %v20_v9 = vpop.permute.xlu1 %19  }
  0x75   :  { %10 = vst.msk [vmem:[#allocation0] ss:$8 sm:$0xf] %vm9_vm1, %v8_v8  }
  0x78   :  { %v14_v10 = vpop.permute.xlu0 %13   ;;  %v26_v11 = vpop.permute.xlu1 %25  }
  0x79   :  { %16 = vst.msk [vmem:[#allocation0] ss:$8 sm:$0xf] %vm15_vm2, %v14_v10  }
  0x7a   :  { %22 = vst.msk [vmem:[#allocation0] ss:$8 sm:$0xf] %vm21_vm3, %v20_v9  }
  0x7b   :  { %28 = vst.msk [vmem:[#allocation0] ss:$8 sm:$0xf] %vm27_vm4, %v26_v11  }
  0x7c   :  { %v32_v12 = vpop.permute.xlu0 %31   ;;  %v38_v13 = vpop.permute.xlu1 %37  }
  0x7d   :  { %34 = vst.msk [vmem:[#allocation0] ss:$8 sm:$0xf] %vm33_vm5, %v32_v12  }
  0x7e   :  { %40 = vst.msk [vmem:[#allocation0] ss:$8 sm:$0xf] %vm39_vm6, %v38_v13  }
  0x80   :  { %v44_v14 = vpop.permute.xlu0 %43  }
  0x81   :  { %46 = vst.msk [vmem:[#allocation0] ss:$8 sm:$0xf] %vm45_vm7, %v44_v14  }
  0x88   :  { %v50_v15 = vld [vmem:[#allocation0] sm:$0x1]  ;;  %v54_v16 = vld [vmem:[#allocation0 + $0x8] sm:$0x1]  ;;  %v59_v17 = vld [vmem:[#allocation0 + $0x10] sm:$0x1] }
  0x89   :  { %52 = vst [vmem:[%s143_s1] sm:$0x1] %v50_v15  ;;  %79 = vst [vmem:[%s143_s1 + $0x1] sm:$0x1] %v54_v16  ;;  %v65_v18 = vld [vmem:[#allocation0 + $0x18] sm:$0x1] }
  0x8a   :  { %80 = vst [vmem:[%s143_s1 + $0x2] sm:$0x1] %v59_v17  ;;  %81 = vst [vmem:[%s143_s1 + $0x3] sm:$0x1] %v65_v18 }

// kernel: decoder_block_forward.6
= control target key start
LH: loop header
LB: loop body
LE: loop exit
PB: predicated region body
PF: predicated region fallthrough
CT: control target
= control target key end

     0   :  { %s1862_s18 = smov 0   ;;  %s2698_s0 = inlined_call_operand.vmem [shape: f32[2048,8], index: 0, kind: input, shape index: {}]   ;;  %s2699_s1 = inlined_call_operand.vmem [shape: f32[1,8], index: 1, kind: input, shape index: {}]   ;;  %s2700_s2 = inlined_call_operand.vmem [shape: f32[1,8], index: 2, kind: input, shape index: {}]   ;;  %s2701_s3 = inlined_call_operand.vmem [shape: f32[8,16], index: 3, kind: input, shape index: {}]   ;;  %s2702_s4 = inlined_call_operand.vmem [shape: f32[2048,16], index: 4, kind: output, shape index: {0}]   ;;  %s2703_s5 = inlined_call_operand.vmem [shape: f32[4,2,16], index: 5, kind: output, shape index: {1}]  }
   0x1 LB: > { %s1868_s19 = sadd.s32 4294967295, %s1830_s18   ;;  %p1577_p0 = scmp.ge.s32.totalorder %s1830_s18, 1  ;;  %s1830_s18 = sphi %s1862_s18, %s16_s18  }
   0x2   : > { %p191_p1 = scmp.lt.s32.totalorder %s1830_s18, 5 }
   0x4   : > { %p192_p2 = pnand %p1577_p0, %p191_p1 }
   0x5   : > { %v509_v0 = vld [vmem:[%s2701_s3] sm:$0xff] (!%p192_p2)  ;;  %s1578_s22 = sshll.u32 (!%p192_p2), %s1868_s19, 6  ;;  %vm510_vm0 = vcmask (!%p192_p2), 64512   ;;  %vm1088_vm1 = vcmask (!%p192_p2), 130048   ;;  %p235_p4 = scmp.lt.s32.totalorder (!%p192_p2), %s1868_s19, 3  ;;  %vm1286_vm2 = vcmask (!%p192_p2), 122880  }
   0x6   : > { %195 = sbr.rel (%p192_p2) target bundleno = 381 (0x17d), region = 36  ;;  %1716 = vmatprep.subr.mxu0 (!%p192_p2), %v509_v0  ;;  %p224_p3 = scmp.lt.s32.totalorder (!%p192_p2), %s1578_s22, 255  ;;  %1814 = vmatprep.subr.mxu1 (!%p192_p2), %v509_v0  ;;  %v1882_v1 = vld [vmem:[%s2699_s1] ss:$0 sm:$0xff] (!%p192_p2) }
   0x7   : > { %1717 = vmatpush3.msra.mxu0 (!%p192_p2), %v509_v0  ;;  %1815 = vmatpush3.msra.mxu1 (!%p192_p2), %v509_v0  ;;  %v1894_v2 = vld [vmem:[%s2700_s2] ss:$0 sm:$0xff] (!%p192_p2) }
   0xd   : > { %s2705_s22 = smov (!%p224_p3, %s1578_s22), 255  ;;  %s2707_s19 = smov (!%p235_p4, %s1868_s19), 3 }
   0xe   : > { %s1579_s23 = sshll.u32 %s2705_s22, 3  ;;  %s1582_s9 = sshll.u32 %s2707_s19, 1 }
   0xf   : > { %s1889_s28 = scalar_lea.vmem %s2698_s0, %s1579_s23  ;;  %s2240_s8 = scalar_lea.vmem %s2702_s4, %s1579_s23 }
  0x10   : > { %v239_v3 = vld [vmem:[%s1889_s28] sm:$0xff]  ;;  %v240_v4 = vld [vmem:[%s1889_s28 + $0x8] sm:$0xff]  ;;  %v241_v5 = vld [vmem:[%s1889_s28 + $0x10] sm:$0xff]  ;;  %s238_s12 = scalar_lea.vmem %s2703_s5, %s1582_s9 }
  0x11   : > { %v310_v6 = vmul.f32 %v1882_v1, %v239_v3  ;;  %v311_v7 = vmul.f32 %v1882_v1, %v240_v4  ;;  %v312_v8 = vmul.f32 %v1882_v1, %v241_v5  ;;  %v242_v9 = vld [vmem:[%s1889_s28 + $0x18] sm:$0xff]  ;;  %v243_v10 = vld [vmem:[%s1889_s28 + $0x20] sm:$0xff]  ;;  %v244_v11 = vld [vmem:[%s1889_s28 + $0x28] sm:$0xff] }
  0x12   : > { %v313_v12 = vmul.f32 %v1882_v1, %v242_v9  ;;  %v314_v13 = vmul.f32 %v1882_v1, %v243_v10  ;;  %v245_v14 = vld [vmem:[%s1889_s28 + $0x30] sm:$0xff]  ;;  %v315_v19 = vmul.f32 %v1882_v1, %v244_v11  ;;  %v246_v25 = vld [vmem:[%s1889_s28 + $0x38] sm:$0xff]  ;;  %v247_v26 = vld [vmem:[%s1889_s28 + $0x40] sm:$0xff] }
  0x13   : > { %v381_v15 = vadd.f32 %v1894_v2, %v310_v6  ;;  %v382_v16 = vadd.f32 %v1894_v2, %v311_v7  ;;  %v383_v17 = vadd.f32 %v1894_v2, %v312_v8  ;;  %v316_v20 = vmul.f32 %v1882_v1, %v245_v14  ;;  %v248_v33 = vld [vmem:[%s1889_s28 + $0x48] sm:$0xff]  ;;  %v249_v34 = vld [vmem:[%s1889_s28 + $0x50] sm:$0xff]  ;;  %v250_v38 = vld [vmem:[%s1889_s28 + $0x58] sm:$0xff] }
  0x14   : > { %v384_v18 = vadd.f32 %v1894_v2, %v313_v12  ;;  %v385_v24 = vadd.f32 %v1894_v2, %v314_v13  ;;  %v386_v28 = vadd.f32 %v1894_v2, %v315_v19  ;;  %v317_v29 = vmul.f32 %v1882_v1, %v246_v25  ;;  %v251_v39 = vld [vmem:[%s1889_s28 + $0x60] sm:$0xff]  ;;  %v252_v40 = vld [vmem:[%s1889_s28 + $0x68] sm:$0xff]  ;;  %v253_v44 = vld [vmem:[%s1889_s28 + $0x70] sm:$0xff] }
  0x15   : > { %v445_v21 = vmax.f32 %v381_v15, 0.0  ;;  %v446_v22 = vmax.f32 %v382_v16, 0.0  ;;  %v447_v23 = vmax.f32 %v383_v17, 0.0  ;;  %v387_v31 = vadd.f32 %v1894_v2, %v316_v20  ;;  %v254_v53 = vld [vmem:[%s1889_s28 + $0x78] sm:$0xff]  ;;  %v255_v60 = vld [vmem:[%s1889_s28 + $0x80] sm:$0xff]  ;;  %v256_v62 = vld [vmem:[%s1889_s28 + $0x88] sm:$0xff] }
  0x16   : > { %v448_v27 = vmax.f32 %v384_v18, 0.0  ;;  %v449_v30 = vmax.f32 %v385_v24, 0.0  ;;  %v318_v32 = vmul.f32 %v1882_v1, %v247_v26  ;;  %v450_v35 = vmax.f32 %v386_v28, 0.0  ;;  %v257_v63 = vld [vmem:[%s1889_s28 + $0x90] sm:$0xff]  ;;  %v258_v0 = vld [vmem:[%s1889_s28 + $0x98] sm:$0xff]  ;;  %v271_v3 = vld [vmem:[%s1889_s28 + $0x100] sm:$0xff] }
  0x17   : > { %1718 = vmatprep.mubr.msk.f32.mxu0 %vm510_vm0, %v445_v21  ;;  %v388_v36 = vadd.f32 %v1894_v2, %v317_v29  ;;  %v319_v37 = vmul.f32 %v1882_v1, %v248_v33  ;;  %v451_v41 = vmax.f32 %v387_v31, 0.0  ;;  %v320_v43 = vmul.f32 %v1882_v1, %v249_v34  ;;  %v272_v4 = vld [vmem:[%s1889_s28 + $0x108] sm:$0xff]  ;;  %v273_v5 = vld [vmem:[%s1889_s28 + $0x110] sm:$0xff]  ;;  %v259_v9 = vld [vmem:[%s1889_s28 + $0xa0] sm:$0xff] }
  0x18   : > { %1719 = vmatmul.mubr.msk.f32.vlgmr.msra.gmra.mrb[0].mxu0 %vm510_vm0, %v446_v22  ;;  %v389_v42 = vadd.f32 %v1894_v2, %v318_v32  ;;  %v321_v45 = vmul.f32 %v1882_v1, %v250_v38  ;;  %v322_v46 = vmul.f32 %v1882_v1, %v251_v39  ;;  %v323_v47 = vmul.f32 %v1882_v1, %v252_v40  ;;  %v274_v10 = vld [vmem:[%s1889_s28 + $0x118] sm:$0xff]  ;;  %v275_v11 = vld [vmem:[%s1889_s28 + $0x120] sm:$0xff]  ;;  %v260_v16 = vld [vmem:[%s1889_s28 + $0xa8] sm:$0xff] }
  0x19   : > { %1721 = vmatprep.mubr.msk.f32.mxu0 %vm510_vm0, %v447_v23  ;;  %v452_v48 = vmax.f32 %v388_v36, 0.0  ;;  %v390_v49 = vadd.f32 %v1894_v2, %v319_v37  ;;  %v324_v50 = vmul.f32 %v1882_v1, %v253_v44  ;;  %v391_v52 = vadd.f32 %v1894_v2, %v320_v43  ;;  %v276_v21 = vld [vmem:[%s1889_s28 + $0x128] sm:$0xff]  ;;  %v277_v22 = vld [vmem:[%s1889_s28 + $0x130] sm:$0xff]  ;;  %v262_v33 = vld [vmem:[%s1889_s28 + $0xb8] sm:$0xff] }
  0x1a   : > { %v453_v51 = vmax.f32 %v389_v42, 0.0  ;;  %v392_v54 = vadd.f32 %v1894_v2, %v321_v45  ;;  %v393_v55 = vadd.f32 %v1894_v2, %v322_v46  ;;  %v1948_v56 = vadd.f32 %v1894_v2, %v323_v47  ;;  %v261_v28 = vld [vmem:[%s1889_s28 + $0xb0] sm:$0xff]  ;;  %v279_v45 = vld [vmem:[%s1889_s28 + $0x140] sm:$0xff] }
  0x1b   : > { %v454_v57 = vmax.f32 %v390_v49, 0.0  ;;  %v1952_v58 = vadd.f32 %v1894_v2, %v324_v50  ;;  %v325_v59 = vmul.f32 %v1882_v1, %v254_v53  ;;  %v455_v61 = vmax.f32 %v391_v52, 0.0 }
  0x1c   : > { %1722 = vmatmul.mubr.msk.f32.gmra.mrb[2].mxu0 %vm510_vm0, %v448_v27  ;;  %v456_v6 = vmax.f32 %v392_v54, 0.0  ;;  %v457_v7 = vmax.f32 %v393_v55, 0.0  ;;  %v458_v8 = vmax.f32 %v1948_v56, 0.0  ;;  %v326_v14 = vmul.f32 %v1882_v1, %v255_v60  ;;  %v264_v56 = vld [vmem:[%s1889_s28 + $0xc8] sm:$0xff] }
  0x1d   : > { %1724 = vmatprep.mubr.msk.f32.mxu0 %vm510_vm0, %v449_v30  ;;  %v459_v12 = vmax.f32 %v1952_v58, 0.0  ;;  %v1970_v13 = vadd.f32 %v1894_v2, %v325_v59  ;;  %v327_v15 = vmul.f32 %v1882_v1, %v256_v62  ;;  %v328_v17 = vmul.f32 %v1882_v1, %v257_v63  ;;  %v280_v60 = vld [vmem:[%s1889_s28 + $0x148] sm:$0xff] }
  0x1e   : > { %v342_v18 = vmul.f32 %v1882_v1, %v271_v3  ;;  %v343_v19 = vmul.f32 %v1882_v1, %v272_v4  ;;  %v344_v20 = vmul.f32 %v1882_v1, %v273_v5  ;;  %v329_v23 = vmul.f32 %v1882_v1, %v258_v0  ;;  %v281_v0 = vld [vmem:[%s1889_s28 + $0x150] sm:$0xff] }
  0x1f   : > { %v330_v24 = vmul.f32 %v1882_v1, %v259_v9  ;;  %v345_v25 = vmul.f32 %v1882_v1, %v274_v10  ;;  %v346_v26 = vmul.f32 %v1882_v1, %v275_v11  ;;  %v331_v27 = vmul.f32 %v1882_v1, %v260_v16  ;;  %v283_v9 = vld [vmem:[%s1889_s28 + $0x160] sm:$0xff]  ;;  %v266_v11 = vld [vmem:[%s1889_s28 + $0xd8] sm:$0xff]  ;;  %v292_v16 = vld [vmem:[%s1889_s28 + $0x1a8] sm:$0xff] }
  0x20   : > { %1725 = vmatmul.mubr.msk.f32.gmra.mrb[4].mxu0 %vm510_vm0, %v450_v35  ;;  %v413_v29 = vadd.f32 %v1894_v2, %v342_v18  ;;  %v414_v30 = vadd.f32 %v1894_v2, %v343_v19  ;;  %v415_v31 = vadd.f32 %v1894_v2, %v344_v20  ;;  %v397_v32 = vadd.f32 %v1894_v2, %v326_v14 }
  0x21   : > { %1727 = vmatprep.mubr.msk.f32.mxu0 %vm510_vm0, %v451_v41  ;;  %v416_v34 = vadd.f32 %v1894_v2, %v345_v25  ;;  %v347_v35 = vmul.f32 %v1882_v1, %v276_v21  ;;  %v348_v36 = vmul.f32 %v1882_v1, %v277_v22  ;;  %v417_v40 = vadd.f32 %v1894_v2, %v346_v26  ;;  %v278_v41 = vld [vmem:[%s1889_s28 + $0x138] sm:$0xff]  ;;  %v293_v25 = vld [vmem:[%s1889_s28 + $0x1b0] sm:$0xff] }
  0x22   : > { %v477_v37 = vmax.f32 %v413_v29, 0.0  ;;  %v478_v38 = vmax.f32 %v414_v30, 0.0  ;;  %v479_v39 = vmax.f32 %v415_v31, 0.0  ;;  %v398_v42 = vadd.f32 %v1894_v2, %v327_v15  ;;  %v284_v29 = vld [vmem:[%s1889_s28 + $0x168] sm:$0xff]  ;;  %v294_v31 = vld [vmem:[%s1889_s28 + $0x1b8] sm:$0xff] }
  0x23   : > { %v2002_v43 = vadd.f32 %v1894_v2, %v328_v17  ;;  %v332_v44 = vmul.f32 %v1882_v1, %v261_v28  ;;  %v460_v46 = vmax.f32 %v1970_v13, 0.0  ;;  %v2008_v47 = vadd.f32 %v1894_v2, %v329_v23 }
  0x24   : > { %1728 = vmatmul.mubr.msk.f32.gmra.mrb[6].mxu0 %vm510_vm0, %v452_v48  ;;  %v2011_v48 = vadd.f32 %v1894_v2, %v330_v24  ;;  %v333_v49 = vmul.f32 %v1882_v1, %v262_v33  ;;  %1766 = vmatprep.mubr.msk.f32.mxu1 %vm510_vm0, %v477_v37  ;;  %v2017_v50 = vadd.f32 %v1894_v2, %v331_v27  ;;  %v480_v52 = vmax.f32 %v416_v34, 0.0  ;;  %v295_v37 = vld [vmem:[%s1889_s28 + $0x1c0] sm:$0xff] }
  0x25   : > { %1730 = vmatprep.mubr.msk.f32.mxu0 %vm510_vm0, %v453_v51  ;;  %v263_v51 = vld [vmem:[%s1889_s28 + $0xc0] sm:$0xff]  ;;  %1767 = vmatmul.mubr.msk.f32.vlgmr.msra.gmra.mrb[0].mxu1 %vm510_vm0, %v478_v38  ;;  %v418_v53 = vadd.f32 %v1894_v2, %v347_v35  ;;  %v349_v54 = vmul.f32 %v1882_v1, %v278_v41  ;;  %v461_v55 = vmax.f32 %v397_v32, 0.0  ;;  %v419_v58 = vadd.f32 %v1894_v2, %v348_v36  ;;  %v285_v36 = vld [vmem:[%s1889_s28 + $0x170] sm:$0xff]  ;;  %v296_v38 = vld [vmem:[%s1889_s28 + $0x1c8] sm:$0xff] }
  0x26   : > { %1769 = vmatprep.mubr.msk.f32.mxu1 %vm510_vm0, %v479_v39  ;;  %v350_v59 = vmul.f32 %v1882_v1, %v279_v45  ;;  %v463_v62 = vmax.f32 %v2002_v43, 0.0  ;;  %v2031_v63 = vadd.f32 %v1894_v2, %v332_v44  ;;  %v464_v3 = vmax.f32 %v2008_v47, 0.0  ;;  %v297_v43 = vld [vmem:[%s1889_s28 + $0x1d0] sm:$0xff]  ;;  %v298_v44 = vld [vmem:[%s1889_s28 + $0x1d8] sm:$0xff] }
  0x27   : > { %v465_v4 = vmax.f32 %v2011_v48, 0.0  ;;  %v2037_v5 = vadd.f32 %v1894_v2, %v333_v49  ;;  %v335_v10 = vmul.f32 %v1882_v1, %v264_v56  ;;  %v482_v13 = vmax.f32 %v418_v53, 0.0  ;;  %v300_v56 = vld [vmem:[%s1889_s28 + $0x1e8] sm:$0xff]  ;;  %v287_v48 = vld [vmem:[%s1889_s28 + $0x180] sm:$0xff] }
  0x28   : > { %1731 = vmatmul.mubr.msk.f32.gmra.mrb[8].mxu0 %vm510_vm0, %v454_v57  ;;  %v481_v57 = vmax.f32 %v417_v40, 0.0  ;;  %v420_v14 = vadd.f32 %v1894_v2, %v349_v54  ;;  %v351_v15 = vmul.f32 %v1882_v1, %v280_v60  ;;  %v466_v17 = vmax.f32 %v2017_v50, 0.0 }
  0x29   : > { %1733 = vmatprep.mubr.msk.f32.mxu0 %vm510_vm0, %v455_v61  ;;  %v462_v61 = vmax.f32 %v398_v42, 0.0  ;;  %1770 = vmatmul.mubr.msk.f32.gmra.mrb[2].mxu1 %vm510_vm0, %v480_v52  ;;  %v483_v18 = vmax.f32 %v419_v58, 0.0  ;;  %v421_v19 = vadd.f32 %v1894_v2, %v350_v59  ;;  %v352_v20 = vmul.f32 %v1882_v1, %v281_v0  ;;  %v286_v0 = vld [vmem:[%s1889_s28 + $0x178] sm:$0xff] }
  0x2a   : > { %1772 = vmatprep.mubr.msk.f32.mxu1 %vm510_vm0, %v481_v57  ;;  %v467_v21 = vmax.f32 %v2031_v63, 0.0  ;;  %v354_v24 = vmul.f32 %v1882_v1, %v283_v9  ;;  %v468_v26 = vmax.f32 %v2037_v5, 0.0  ;;  %v2063_v27 = vmul.f32 %v1882_v1, %v266_v11 }
  0x2b   : > { %v363_v30 = vmul.f32 %v1882_v1, %v292_v16  ;;  %v2076_v33 = vadd.f32 %v1894_v2, %v335_v10  ;;  %v484_v34 = vmax.f32 %v420_v14, 0.0  ;;  %v422_v35 = vadd.f32 %v1894_v2, %v351_v15  ;;  %v268_v16 = vld [vmem:[%s1889_s28 + $0xe8] sm:$0xff] }
  0x2c   : > { %1734 = vmatmul.mubr.msk.f32.gmra.mrb[10].mxu0 %vm510_vm0, %v456_v6  ;;  %v334_v6 = vmul.f32 %v1882_v1, %v263_v51  ;;  %v485_v39 = vmax.f32 %v421_v19, 0.0  ;;  %v423_v40 = vadd.f32 %v1894_v2, %v352_v20  ;;  %v364_v42 = vmul.f32 %v1882_v1, %v293_v25  ;;  %v299_v51 = vld [vmem:[%s1889_s28 + $0x1e0] sm:$0xff]  ;;  %v288_v25 = vld [vmem:[%s1889_s28 + $0x188] sm:$0xff] }
  0x2d   : > { %1736 = vmatprep.mubr.msk.f32.mxu0 %vm510_vm0, %v457_v7  ;;  %v265_v7 = vld [vmem:[%s1889_s28 + $0xd0] sm:$0xff]  ;;  %1773 = vmatmul.mubr.msk.f32.gmra.mrb[4].mxu1 %vm510_vm0, %v482_v13  ;;  %v2087_v41 = vadd.f32 %v1894_v2, %v363_v30  ;;  %v355_v47 = vmul.f32 %v1882_v1, %v284_v29  ;;  %v365_v49 = vmul.f32 %v1882_v1, %v294_v31  ;;  %v486_v57 = vmax.f32 %v422_v35, 0.0 }
  0x2e   : > { %v336_v22 = vmul.f32 %v1882_v1, %v265_v7  ;;  %v2073_v32 = vadd.f32 %v1894_v2, %v334_v6  ;;  %1775 = vmatprep.mubr.msk.f32.mxu1 %vm510_vm0, %v483_v18  ;;  %v356_v52 = vmul.f32 %v1882_v1, %v285_v36  ;;  %v2101_v53 = vadd.f32 %v1894_v2, %v364_v42  ;;  %v269_v18 = vld [vmem:[%s1889_s28 + $0xf0] sm:$0xff]  ;;  %v270_v36 = vld [vmem:[%s1889_s28 + $0xf8] sm:$0xff] }
  0x2f   : > { %v366_v54 = vmul.f32 %v1882_v1, %v295_v37  ;;  %v2109_v58 = vadd.f32 %v1894_v2, %v365_v49  ;;  %v368_v59 = vmul.f32 %v1882_v1, %v297_v43  ;;  %v369_v60 = vmul.f32 %v1882_v1, %v298_v44  ;;  %v289_v30 = vld [vmem:[%s1889_s28 + $0x190] sm:$0xff] }
  0x30   : > { %1737 = vmatmul.mubr.msk.f32.gmra.mrb[12].mxu0 %vm510_vm0, %v458_v8  ;;  %v282_v8 = vld [vmem:[%s1889_s28 + $0x158] sm:$0xff]  ;;  %v370_v7 = vmul.f32 %v1882_v1, %v299_v51  ;;  %v407_v9 = vadd.f32 %v1894_v2, %v336_v22  ;;  %v371_v11 = vmul.f32 %v1882_v1, %v300_v56  ;;  %v426_v13 = vadd.f32 %v1894_v2, %v355_v47 }
  0x31   : > { %1739 = vmatprep.mubr.msk.f32.mxu0 %vm510_vm0, %v459_v12  ;;  %v267_v12 = vld [vmem:[%s1889_s28 + $0xe0] sm:$0xff]  ;;  %v353_v23 = vmul.f32 %v1882_v1, %v282_v8  ;;  %1776 = vmatmul.mubr.msk.f32.gmra.mrb[6].mxu1 %vm510_vm0, %v484_v34  ;;  %v302_v8 = vld [vmem:[%s1889_s28 + $0x1f8] sm:$0xff]  ;;  %v2133_v10 = vadd.f32 %v1894_v2, %v369_v60  ;;  %v357_v20 = vmul.f32 %v1882_v1, %v286_v0  ;;  %v470_v35 = vmax.f32 %v2076_v33, 0.0 }
  0x32   : > { %v2066_v28 = vmul.f32 %v1882_v1, %v267_v12  ;;  %1778 = vmatprep.mubr.msk.f32.mxu1 %vm510_vm0, %v485_v39  ;;  %v469_v12 = vmax.f32 %v2073_v32, 0.0  ;;  %v2139_v14 = vadd.f32 %v1894_v2, %v370_v7  ;;  %v2150_v22 = vadd.f32 %v1894_v2, %v371_v11  ;;  %v291_v33 = vld [vmem:[%s1889_s28 + $0x1a0] sm:$0xff] }
  0x33   : > { %v424_v45 = vadd.f32 %v1894_v2, %v353_v23  ;;  %v373_v23 = vmul.f32 %v1882_v1, %v302_v8  ;;  %v408_v63 = vadd.f32 %v1894_v2, %v2063_v27  ;;  %v339_v32 = vmul.f32 %v1882_v1, %v268_v16 }
  0x34   : > { %1740 = vmatmul.mubr.msk.f32.gmra.mrb[14].mxu0 %vm510_vm0, %v460_v46  ;;  %v2094_v46 = vadd.f32 %v1894_v2, %v354_v24  ;;  %v358_v24 = vmul.f32 %v1882_v1, %v287_v48  ;;  %v340_v34 = vmul.f32 %v1882_v1, %v269_v18  ;;  %v490_v37 = vmax.f32 %v426_v13, 0.0 }
  0x35   : > { %1742 = vmatprep.mubr.msk.f32.mxu0 %vm510_vm0, %v461_v55  ;;  %v367_v55 = vmul.f32 %v1882_v1, %v296_v38  ;;  %1779 = vmatmul.mubr.msk.f32.gmra.mrb[8].mxu1 %vm510_vm0, %v486_v57  ;;  %v488_v19 = vmax.f32 %v424_v45, 0.0  ;;  %v2166_v31 = vadd.f32 %v1894_v2, %v373_v23  ;;  %v428_v27 = vadd.f32 %v1894_v2, %v357_v20 }
  0x36   : > { %v489_v50 = vmax.f32 %v2094_v46, 0.0  ;;  %v471_v38 = vmax.f32 %v407_v9, 0.0  ;;  %v429_v5 = vadd.f32 %v1894_v2, %v358_v24  ;;  %v410_v42 = vadd.f32 %v1894_v2, %v339_v32 }
  0x37   : > { %v2123_v6 = vadd.f32 %v1894_v2, %v367_v55  ;;  %v411_v43 = vadd.f32 %v1894_v2, %v340_v34  ;;  %v341_v44 = vmul.f32 %v1882_v1, %v270_v36  ;;  %v472_v45 = vmax.f32 %v408_v63, 0.0 }
  0x38   : > { %1743 = vmatmul.mubr.msk.f32.gmra.mrb[16].mxu0 %vm510_vm0, %v462_v61  ;;  %v301_v61 = vld [vmem:[%s1889_s28 + $0x1f0] sm:$0xff]  ;;  %v492_v46 = vmax.f32 %v428_v27, 0.0  ;;  %v362_v55 = vmul.f32 %v1882_v1, %v291_v33  ;;  %v474_v56 = vmax.f32 %v410_v42, 0.0  ;;  %v498_v9 = vmax.f32 %v2087_v41, 0.0 }
  0x39   : > { %1745 = vmatprep.mubr.msk.f32.mxu0 %vm510_vm0, %v463_v62  ;;  %v487_v62 = vmax.f32 %v423_v40, 0.0  ;;  %v372_v15 = vmul.f32 %v1882_v1, %v301_v61  ;;  %v290_v40 = vld [vmem:[%s1889_s28 + $0x198] sm:$0xff]  ;;  %v412_v57 = vadd.f32 %v1894_v2, %v341_v44  ;;  %v475_v61 = vmax.f32 %v411_v43, 0.0 }
  0x3a   : > { %v361_v49 = vmul.f32 %v1882_v1, %v290_v40  ;;  %v433_v0 = vadd.f32 %v1894_v2, %v362_v55  ;;  %v500_v48 = vmax.f32 %v2109_v58, 0.0  ;;  %v505_v58 = vmax.f32 %v2139_v14, 0.0 }
  0x3b   : > { %1781 = vmatprep.mubr.msk.f32.mxu1 %vm510_vm0, %v487_v62  ;;  %v2162_v29 = vadd.f32 %v1894_v2, %v372_v15 }
  0x3c   : > { %1746 = vmatmul.mubr.msk.f32.gmra.mrb[18].mxu0 %vm510_vm0, %v464_v3  ;;  %v2120_v3 = vadd.f32 %v1894_v2, %v366_v54  ;;  %1782 = vmatmul.mubr.msk.f32.gmra.mrb[10].mxu1 %vm510_vm0, %v488_v19  ;;  %v432_v60 = vadd.f32 %v1894_v2, %v361_v49  ;;  %v497_v8 = vmax.f32 %v433_v0, 0.0 }
  0x3d   : > { %1748 = vmatprep.mubr.msk.f32.mxu0 %vm510_vm0, %v465_v4  ;;  %v2130_v4 = vadd.f32 %v1894_v2, %v368_v59  ;;  %1784 = vmatprep.mubr.msk.f32.mxu1 %vm510_vm0, %v489_v50 }
  0x3e   : > { %v496_v7 = vmax.f32 %v432_v60, 0.0  ;;  %v501_v11 = vmax.f32 %v2120_v3, 0.0  ;;  %v506_v3 = vmax.f32 %v2150_v22, 0.0 }
  0x3f   : > { %v503_v41 = vmax.f32 %v2130_v4, 0.0  ;;  %v508_v4 = vmax.f32 %v2166_v31, 0.0 }
  0x40   : > { %1749 = vmatmul.mubr.msk.f32.gmra.mrb[20].mxu0 %vm510_vm0, %v466_v17  ;;  %v427_v17 = vadd.f32 %v1894_v2, %v356_v52  ;;  %1785 = vmatmul.mubr.msk.f32.gmra.mrb[12].mxu1 %vm510_vm0, %v490_v37  ;;  %v493_v52 = vmax.f32 %v429_v5, 0.0 }
  0x41   : > { %1751 = vmatprep.mubr.msk.f32.mxu0 %vm510_vm0, %v467_v21  ;;  %v409_v21 = vadd.f32 %v1894_v2, %v2066_v28  ;;  %v359_v28 = vmul.f32 %v1882_v1, %v288_v25 }
  0x42   : > { %v491_v39 = vmax.f32 %v427_v17, 0.0 }
  0x43   : > { %v430_v47 = vadd.f32 %v1894_v2, %v359_v28  ;;  %v473_v51 = vmax.f32 %v409_v21, 0.0 }
  0x44   : > { %1752 = vmatmul.mubr.msk.f32.gmra.mrb[22].mxu0 %vm510_vm0, %v468_v26  ;;  %v360_v26 = vmul.f32 %v1882_v1, %v289_v30  ;;  %1787 = vmatprep.mubr.msk.f32.mxu1 %vm510_vm0, %v491_v39  ;;  %v476_v1 = vmax.f32 %v412_v57, 0.0 }
  0x45   : > { %1754 = vmatprep.mubr.msk.f32.mxu0 %vm510_vm0, %v469_v12  ;;  %1788 = vmatmul.mubr.msk.f32.gmra.mrb[14].mxu1 %vm510_vm0, %v492_v46  ;;  %v494_v59 = vmax.f32 %v430_v47, 0.0  ;;  %v502_v12 = vmax.f32 %v2123_v6, 0.0  ;;  %v507_v6 = vmax.f32 %v2162_v29, 0.0 }
  0x46   : > { %v431_v54 = vadd.f32 %v1894_v2, %v360_v26  ;;  %1790 = vmatprep.mubr.msk.f32.mxu1 %vm510_vm0, %v493_v52  ;;  %v499_v2 = vmax.f32 %v2101_v53, 0.0  ;;  %v504_v53 = vmax.f32 %v2133_v10, 0.0 }
  0x48   : > { %1755 = vmatmul.mubr.msk.f32.gmra.mrb[24].mxu0 %vm510_vm0, %v470_v35  ;;  %v495_v62 = vmax.f32 %v431_v54, 0.0 }
  0x49   : > { %1757 = vmatprep.mubr.msk.f32.mxu0 %vm510_vm0, %v471_v38  ;;  %1791 = vmatmul.mubr.msk.f32.gmra.mrb[16].mxu1 %vm510_vm0, %v494_v59 }
  0x4a   : > { %1793 = vmatprep.mubr.msk.f32.mxu1 %vm510_vm0, %v495_v62 }
  0x4c   : > { %1758 = vmatmul.mubr.msk.f32.gmra.mrb[26].mxu0 %vm510_vm0, %v472_v45 }
  0x4d   : > { %1760 = vmatprep.mubr.msk.f32.mxu0 %vm510_vm0, %v473_v51  ;;  %1794 = vmatmul.mubr.msk.f32.gmra.mrb[18].mxu1 %vm510_vm0, %v496_v7 }
  0x4e   : > { %1796 = vmatprep.mubr.msk.f32.mxu1 %vm510_vm0, %v497_v8 }
  0x50   : > { %1761 = vmatmul.mubr.msk.f32.gmra.mrb[28].mxu0 %vm510_vm0, %v474_v56 }
  0x51   : > { %1763 = vmatprep.mubr.msk.f32.mxu0 %vm510_vm0, %v475_v61  ;;  %1797 = vmatmul.mubr.msk.f32.gmra.mrb[20].mxu1 %vm510_vm0, %v498_v9 }
  0x52   : > { %1799 = vmatprep.mubr.msk.f32.mxu1 %vm510_vm0, %v499_v2 }
  0x54   : > { %1764 = vmatmul.mubr.msk.f32.gmra.mrb[30].mxu0 %vm510_vm0, %v476_v1 }
  0x55   : > { %1800 = vmatmul.mubr.msk.f32.gmra.mrb[22].mxu1 %vm510_vm0, %v500_v48 }
  0x56   : > { %1802 = vmatprep.mubr.msk.f32.mxu1 %vm510_vm0, %v501_v11 }
  0x59   : > { %1803 = vmatmul.mubr.msk.f32.gmra.mrb[24].mxu1 %vm510_vm0, %v502_v12 }
  0x5a   : > { %1805 = vmatprep.mubr.msk.f32.mxu1 %vm510_vm0, %v503_v41 }
  0x5d   : > { %1806 = vmatmul.mubr.msk.f32.gmra.mrb[26].mxu1 %vm510_vm0, %v504_v53 }
  0x5e   : > { %1808 = vmatprep.mubr.msk.f32.mxu1 %vm510_vm0, %v505_v58 }
  0x61   : > { %1809 = vmatmul.mubr.msk.f32.gmra.mrb[28].mxu1 %vm510_vm0, %v506_v3 }
  0x62   : > { %1811 = vmatprep.mubr.msk.f32.mxu1 %vm510_vm0, %v507_v6 }
  0x65   : > { %1812 = vmatmul.mubr.msk.f32.gmra.mrb[30].mxu1 %vm510_vm0, %v508_v4 }
  0xeb   : > { %v1720_v10 = vpop.f32.mrb[0].mxu0 }
  0xec   : > { %1090 = vst.msk [vmem:[%s2240_s8 + $0x8] sm:$0xff] %vm1088_vm1, %v1720_v10  ;;  %v1154_v13 = vsel %vm1088_vm1, %v1720_v10, 0.0  ;;  %v1289_v14 = vmul.f32 %v1720_v10, %v1720_v10  ;;  %v769_v15 = vpop.f32.mrb[1].mxu0 }
  0xed   : > { %1089 = vst.msk [vmem:[%s2240_s8] sm:$0xff] %vm1088_vm1, %v769_v15  ;;  %v1153_v16 = vsel %vm1088_vm1, %v769_v15, 0.0  ;;  %v1288_v18 = vmul.f32 %v769_v15, %v769_v15 }
  0xee   : > { %v1353_v19 = vsel %vm1088_vm1, %v1289_v14, 0.0  ;;  %v1155_v20 = vadd.f32 %v1154_v13, %v1153_v16 }
  0xef   : > { %v1352_v22 = vsel %vm1088_vm1, %v1288_v18, 0.0  ;;  %v1723_v23 = vpop.f32.mrb[2].mxu0 }
  0xf0   : > { %v1354_v50 = vadd.f32 %v1353_v19, %v1352_v22  ;;  %1092 = vst.msk [vmem:[%s2240_s8 + $0x18] sm:$0xff] %vm1088_vm1, %v1723_v23  ;;  %v779_v17 = vpop.f32.mrb[3].mxu0  ;;  %v1291_v24 = vmul.f32 %v1723_v23, %v1723_v23  ;;  %v1158_v31 = vsel %vm1088_vm1, %v1723_v23, 0.0 }
  0xf1   : > { %1091 = vst.msk [vmem:[%s2240_s8 + $0x10] sm:$0xff] %vm1088_vm1, %v779_v17  ;;  %v1156_v25 = vsel %vm1088_vm1, %v779_v17, 0.0  ;;  %v1290_v29 = vmul.f32 %v779_v17, %v779_v17 }
  0xf2   : > { %v1157_v30 = vadd.f32 %v1156_v25, %v1155_v20  ;;  %v1357_v36 = vsel %vm1088_vm1, %v1291_v24, 0.0 }
  0xf3   : > { %v1355_v63 = vsel %vm1088_vm1, %v1290_v29, 0.0  ;;  %v1726_v21 = vpop.f32.mrb[4].mxu0 }
  0xf4   : > { %v1356_v32 = vadd.f32 %v1355_v63, %v1354_v50  ;;  %1094 = vst.msk [vmem:[%s2240_s8 + $0x28] sm:$0xff] %vm1088_vm1, %v1726_v21  ;;  %v789_v34 = vpop.f32.mrb[5].mxu0  ;;  %v1159_v35 = vadd.f32 %v1158_v31, %v1157_v30  ;;  %v1293_v37 = vmul.f32 %v1726_v21, %v1726_v21  ;;  %v1162_v5 = vsel %vm1088_vm1, %v1726_v21, 0.0 }
  0xf5   : > { %1093 = vst.msk [vmem:[%s2240_s8 + $0x20] sm:$0xff] %vm1088_vm1, %v789_v34  ;;  %v1160_v27 = vsel %vm1088_vm1, %v789_v34, 0.0  ;;  %v1292_v28 = vmul.f32 %v789_v34, %v789_v34 }
  0xf6   : > { %v1161_v38 = vadd.f32 %v1160_v27, %v1159_v35  ;;  %v1358_v39 = vadd.f32 %v1357_v36, %v1356_v32  ;;  %v1361_v44 = vsel %vm1088_vm1, %v1293_v37, 0.0 }
  0xf7   : > { %v1359_v26 = vsel %vm1088_vm1, %v1292_v28, 0.0  ;;  %v1729_v40 = vpop.f32.mrb[6].mxu0 }
  0xf8   : > { %v1360_v33 = vadd.f32 %v1359_v26, %v1358_v39  ;;  %1096 = vst.msk [vmem:[%s2240_s8 + $0x38] sm:$0xff] %vm1088_vm1, %v1729_v40  ;;  %v799_v42 = vpop.f32.mrb[7].mxu0  ;;  %v1163_v43 = vadd.f32 %v1162_v5, %v1161_v38  ;;  %v1295_v45 = vmul.f32 %v1729_v40, %v1729_v40  ;;  %v1166_v52 = vsel %vm1088_vm1, %v1729_v40, 0.0  ;;  %v2289_v15 = vpop.f32.mrb[0].mxu1 }
  0xf9   : > { %1095 = vst.msk [vmem:[%s2240_s8 + $0x30] sm:$0xff] %vm1088_vm1, %v799_v42  ;;  %v1164_v46 = vsel %vm1088_vm1, %v799_v42, 0.0  ;;  %v1294_v47 = vmul.f32 %v799_v42, %v799_v42  ;;  %1122 = vst.msk [vmem:[%s2240_s8 + $0x108] sm:$0xff] %vm1088_vm1, %v2289_v15  ;;  %v2296_v20 = vpop.f32.mrb[1].mxu1 }
  0xfa   : > { %v1165_v49 = vadd.f32 %v1164_v46, %v1163_v43  ;;  %v1362_v51 = vadd.f32 %v1361_v44, %v1360_v33  ;;  %v1365_v60 = vsel %vm1088_vm1, %v1295_v45, 0.0  ;;  %1121 = vst.msk [vmem:[%s2240_s8 + $0x100] sm:$0xff] %vm1088_vm1, %v2296_v20 }
  0xfb   : > { %v1363_v54 = vsel %vm1088_vm1, %v1294_v47, 0.0  ;;  %v1732_v55 = vpop.f32.mrb[8].mxu0 }
  0xfc   : > { %v1364_v56 = vadd.f32 %v1363_v54, %v1362_v51  ;;  %1098 = vst.msk [vmem:[%s2240_s8 + $0x48] sm:$0xff] %vm1088_vm1, %v1732_v55  ;;  %v809_v57 = vpop.f32.mrb[9].mxu0  ;;  %v1167_v59 = vadd.f32 %v1166_v52, %v1165_v49  ;;  %v1297_v61 = vmul.f32 %v1732_v55, %v1732_v55  ;;  %v1170_v8 = vsel %vm1088_vm1, %v1732_v55, 0.0  ;;  %v2307_v63 = vpop.f32.mrb[2].mxu1 }
  0xfd   : > { %1097 = vst.msk [vmem:[%s2240_s8 + $0x40] sm:$0xff] %vm1088_vm1, %v809_v57  ;;  %v1168_v62 = vsel %vm1088_vm1, %v809_v57, 0.0  ;;  %v1296_v0 = vmul.f32 %v809_v57, %v809_v57  ;;  %1124 = vst.msk [vmem:[%s2240_s8 + $0x118] sm:$0xff] %vm1088_vm1, %v2307_v63  ;;  %v2314_v35 = vpop.f32.mrb[3].mxu1 }
  0xfe   : > { %v1169_v1 = vadd.f32 %v1168_v62, %v1167_v59  ;;  %v1366_v7 = vadd.f32 %v1365_v60, %v1364_v56  ;;  %v1369_v41 = vsel %vm1088_vm1, %v1297_v61, 0.0  ;;  %1123 = vst.msk [vmem:[%s2240_s8 + $0x110] sm:$0xff] %vm1088_vm1, %v2314_v35 }
  0xff   : > { %v1367_v9 = vsel %vm1088_vm1, %v1296_v0, 0.0  ;;  %v1735_v2 = vpop.f32.mrb[10].mxu0 }
 0x100   : > { %v1368_v48 = vadd.f32 %v1367_v9, %v1366_v7  ;;  %1100 = vst.msk [vmem:[%s2240_s8 + $0x58] sm:$0xff] %vm1088_vm1, %v1735_v2  ;;  %v819_v11 = vpop.f32.mrb[11].mxu0  ;;  %v1171_v12 = vadd.f32 %v1170_v8, %v1169_v1  ;;  %v1299_v53 = vmul.f32 %v1735_v2, %v1735_v2  ;;  %v1174_v10 = vsel %vm1088_vm1, %v1735_v2, 0.0  ;;  %v2325_v33 = vpop.f32.mrb[4].mxu1 }
 0x101   : > { %1099 = vst.msk [vmem:[%s2240_s8 + $0x50] sm:$0xff] %vm1088_vm1, %v819_v11  ;;  %v1172_v58 = vsel %vm1088_vm1, %v819_v11, 0.0  ;;  %v1298_v3 = vmul.f32 %v819_v11, %v819_v11  ;;  %1126 = vst.msk [vmem:[%s2240_s8 + $0x128] sm:$0xff] %vm1088_vm1, %v2325_v33  ;;  %v2332_v45 = vpop.f32.mrb[5].mxu1 }
 0x102   : > { %v1173_v6 = vadd.f32 %v1172_v58, %v1171_v12  ;;  %v1370_v4 = vadd.f32 %v1369_v41, %v1368_v48  ;;  %v1373_v22 = vsel %vm1088_vm1, %v1299_v53, 0.0  ;;  %1125 = vst.msk [vmem:[%s2240_s8 + $0x120] sm:$0xff] %vm1088_vm1, %v2332_v45 }
 0x103   : > { %v1371_v13 = vsel %vm1088_vm1, %v1298_v3, 0.0  ;;  %v1738_v14 = vpop.f32.mrb[12].mxu0 }
 0x104   : > { %v1372_v16 = vadd.f32 %v1371_v13, %v1370_v4  ;;  %1102 = vst.msk [vmem:[%s2240_s8 + $0x68] sm:$0xff] %vm1088_vm1, %v1738_v14  ;;  %v829_v18 = vpop.f32.mrb[13].mxu0  ;;  %v1175_v19 = vadd.f32 %v1174_v10, %v1173_v6  ;;  %v1301_v23 = vmul.f32 %v1738_v14, %v1738_v14  ;;  %v1178_v29 = vsel %vm1088_vm1, %v1738_v14, 0.0  ;;  %v2343_v59 = vpop.f32.mrb[6].mxu1 }
 0x105   : > { %1101 = vst.msk [vmem:[%s2240_s8 + $0x60] sm:$0xff] %vm1088_vm1, %v829_v18  ;;  %v1176_v50 = vsel %vm1088_vm1, %v829_v18, 0.0  ;;  %v1300_v17 = vmul.f32 %v829_v18, %v829_v18  ;;  %1128 = vst.msk [vmem:[%s2240_s8 + $0x138] sm:$0xff] %vm1088_vm1, %v2343_v59  ;;  %v2350_v0 = vpop.f32.mrb[7].mxu1 }
 0x106   : > { %v1177_v24 = vadd.f32 %v1176_v50, %v1175_v19  ;;  %v1374_v25 = vadd.f32 %v1373_v22, %v1372_v16  ;;  %v1377_v36 = vsel %vm1088_vm1, %v1301_v23, 0.0  ;;  %1127 = vst.msk [vmem:[%s2240_s8 + $0x130] sm:$0xff] %vm1088_vm1, %v2350_v0 }
 0x107   : > { %v1375_v30 = vsel %vm1088_vm1, %v1300_v17, 0.0  ;;  %v1741_v31 = vpop.f32.mrb[14].mxu0 }
 0x108   : > { %v1376_v21 = vadd.f32 %v1375_v30, %v1374_v25  ;;  %1104 = vst.msk [vmem:[%s2240_s8 + $0x78] sm:$0xff] %vm1088_vm1, %v1741_v31  ;;  %v839_v32 = vpop.f32.mrb[15].mxu0  ;;  %v1179_v34 = vadd.f32 %v1178_v29, %v1177_v24  ;;  %v1303_v37 = vmul.f32 %v1741_v31, %v1741_v31  ;;  %v1182_v5 = vsel %vm1088_vm1, %v1741_v31, 0.0  ;;  %v2361_v53 = vpop.f32.mrb[8].mxu1 }
 0x109   : > { %1103 = vst.msk [vmem:[%s2240_s8 + $0x70] sm:$0xff] %vm1088_vm1, %v839_v32  ;;  %v1180_v27 = vsel %vm1088_vm1, %v839_v32, 0.0  ;;  %v1302_v28 = vmul.f32 %v839_v32, %v839_v32  ;;  %1130 = vst.msk [vmem:[%s2240_s8 + $0x148] sm:$0xff] %vm1088_vm1, %v2361_v53  ;;  %v2368_v4 = vpop.f32.mrb[9].mxu1 }
 0x10a   : > { %v1181_v38 = vadd.f32 %v1180_v27, %v1179_v34  ;;  %v1378_v39 = vadd.f32 %v1377_v36, %v1376_v21  ;;  %v1381_v46 = vsel %vm1088_vm1, %v1303_v37, 0.0  ;;  %1129 = vst.msk [vmem:[%s2240_s8 + $0x140] sm:$0xff] %vm1088_vm1, %v2368_v4 }
 0x10b   : > { %v1379_v26 = vsel %vm1088_vm1, %v1302_v28, 0.0  ;;  %v1744_v40 = vpop.f32.mrb[16].mxu0 }
 0x10c   : > { %v1380_v42 = vadd.f32 %v1379_v26, %v1378_v39  ;;  %1106 = vst.msk [vmem:[%s2240_s8 + $0x88] sm:$0xff] %vm1088_vm1, %v1744_v40  ;;  %v849_v43 = vpop.f32.mrb[17].mxu0  ;;  %v1183_v44 = vadd.f32 %v1182_v5, %v1181_v38  ;;  %v1305_v47 = vmul.f32 %v1744_v40, %v1744_v40  ;;  %v1186_v55 = vsel %vm1088_vm1, %v1744_v40, 0.0 }
 0x10d   : > { %1105 = vst.msk [vmem:[%s2240_s8 + $0x80] sm:$0xff] %vm1088_vm1, %v849_v43  ;;  %v1184_v49 = vsel %vm1088_vm1, %v849_v43, 0.0  ;;  %v1304_v51 = vmul.f32 %v849_v43, %v849_v43 }
 0x10e   : > { %v1185_v52 = vadd.f32 %v1184_v49, %v1183_v44  ;;  %v1382_v54 = vadd.f32 %v1381_v46, %v1380_v42  ;;  %v1385_v1 = vsel %vm1088_vm1, %v1305_v47, 0.0 }
 0x10f   : > { %v1383_v56 = vsel %vm1088_vm1, %v1304_v51, 0.0  ;;  %v1747_v57 = vpop.f32.mrb[18].mxu0  ;;  %v2379_v17 = vpop.f32.mrb[10].mxu1 }
 0x110   : > { %v1384_v60 = vadd.f32 %v1383_v56, %v1382_v54  ;;  %1108 = vst.msk [vmem:[%s2240_s8 + $0x98] sm:$0xff] %vm1088_vm1, %v1747_v57  ;;  %v859_v61 = vpop.f32.mrb[19].mxu0  ;;  %v1187_v62 = vadd.f32 %v1186_v55, %v1185_v52  ;;  %v1307_v7 = vmul.f32 %v1747_v57, %v1747_v57  ;;  %v1190_v11 = vsel %vm1088_vm1, %v1747_v57, 0.0  ;;  %1132 = vst.msk [vmem:[%s2240_s8 + $0x158] sm:$0xff] %vm1088_vm1, %v2379_v17  ;;  %v2386_v30 = vpop.f32.mrb[11].mxu1 }
 0x111   : > { %1107 = vst.msk [vmem:[%s2240_s8 + $0x90] sm:$0xff] %vm1088_vm1, %v859_v61  ;;  %v1188_v8 = vsel %vm1088_vm1, %v859_v61, 0.0  ;;  %v1306_v9 = vmul.f32 %v859_v61, %v859_v61  ;;  %1131 = vst.msk [vmem:[%s2240_s8 + $0x150] sm:$0xff] %vm1088_vm1, %v2386_v30 }
 0x112   : > { %v1189_v2 = vadd.f32 %v1188_v8, %v1187_v62  ;;  %v1386_v48 = vadd.f32 %v1385_v1, %v1384_v60  ;;  %v1389_v10 = vsel %vm1088_vm1, %v1307_v7, 0.0 }
 0x113   : > { %v1387_v12 = vsel %vm1088_vm1, %v1306_v9, 0.0  ;;  %v1750_v41 = vpop.f32.mrb[20].mxu0  ;;  %v2397_v39 = vpop.f32.mrb[12].mxu1 }
 0x114   : > { %v1388_v58 = vadd.f32 %v1387_v12, %v1386_v48  ;;  %1110 = vst.msk [vmem:[%s2240_s8 + $0xa8] sm:$0xff] %vm1088_vm1, %v1750_v41  ;;  %v869_v3 = vpop.f32.mrb[21].mxu0  ;;  %v1191_v6 = vadd.f32 %v1190_v11, %v1189_v2  ;;  %v1309_v13 = vmul.f32 %v1750_v41, %v1750_v41  ;;  %v1194_v22 = vsel %vm1088_vm1, %v1750_v41, 0.0  ;;  %1134 = vst.msk [vmem:[%s2240_s8 + $0x168] sm:$0xff] %vm1088_vm1, %v2397_v39  ;;  %v2404_v42 = vpop.f32.mrb[13].mxu1 }
 0x115   : > { %1109 = vst.msk [vmem:[%s2240_s8 + $0xa0] sm:$0xff] %vm1088_vm1, %v869_v3  ;;  %v1192_v14 = vsel %vm1088_vm1, %v869_v3, 0.0  ;;  %v1308_v16 = vmul.f32 %v869_v3, %v869_v3  ;;  %1133 = vst.msk [vmem:[%s2240_s8 + $0x160] sm:$0xff] %vm1088_vm1, %v2404_v42 }
 0x116   : > { %v1193_v18 = vadd.f32 %v1192_v14, %v1191_v6  ;;  %v1390_v19 = vadd.f32 %v1389_v10, %v1388_v58  ;;  %v1393_v31 = vsel %vm1088_vm1, %v1309_v13, 0.0 }
 0x117   : > { %v1391_v23 = vsel %vm1088_vm1, %v1308_v16, 0.0  ;;  %v1753_v50 = vpop.f32.mrb[22].mxu0 }
 0x118   : > { %v1392_v24 = vadd.f32 %v1391_v23, %v1390_v19  ;;  %1112 = vst.msk [vmem:[%s2240_s8 + $0xb8] sm:$0xff] %vm1088_vm1, %v1753_v50  ;;  %v879_v25 = vpop.f32.mrb[23].mxu0  ;;  %v1195_v29 = vadd.f32 %v1194_v22, %v1193_v18  ;;  %v1311_v21 = vmul.f32 %v1753_v50, %v1753_v50  ;;  %v1198_v27 = vsel %vm1088_vm1, %v1753_v50, 0.0  ;;  %v2415_v56 = vpop.f32.mrb[14].mxu1 }
 0x119   : > { %1111 = vst.msk [vmem:[%s2240_s8 + $0xb0] sm:$0xff] %vm1088_vm1, %v879_v25  ;;  %v1196_v32 = vsel %vm1088_vm1, %v879_v25, 0.0  ;;  %v1310_v34 = vmul.f32 %v879_v25, %v879_v25  ;;  %1136 = vst.msk [vmem:[%s2240_s8 + $0x178] sm:$0xff] %vm1088_vm1, %v2415_v56  ;;  %v2422_v62 = vpop.f32.mrb[15].mxu1 }
 0x11a   : > { %v1197_v36 = vadd.f32 %v1196_v32, %v1195_v29  ;;  %v1394_v37 = vadd.f32 %v1393_v31, %v1392_v24  ;;  %v1397_v43 = vsel %vm1088_vm1, %v1311_v21, 0.0  ;;  %1135 = vst.msk [vmem:[%s2240_s8 + $0x170] sm:$0xff] %vm1088_vm1, %v2422_v62 }
 0x11b   : > { %v1395_v28 = vsel %vm1088_vm1, %v1310_v34, 0.0  ;;  %v1756_v38 = vpop.f32.mrb[24].mxu0  ;;  %v1320_v34 = vmul.f32 %v2296_v20, %v2296_v20 }
 0x11c   : > { %v1396_v5 = vadd.f32 %v1395_v28, %v1394_v37  ;;  %1114 = vst.msk [vmem:[%s2240_s8 + $0xc8] sm:$0xff] %vm1088_vm1, %v1756_v38  ;;  %v889_v26 = vpop.f32.mrb[25].mxu0  ;;  %v1199_v40 = vadd.f32 %v1198_v27, %v1197_v36  ;;  %v1313_v44 = vmul.f32 %v1756_v38, %v1756_v38  ;;  %v1202_v52 = vsel %vm1088_vm1, %v1756_v38, 0.0  ;;  %v2433_v58 = vpop.f32.mrb[16].mxu1 }
 0x11d   : > { %1113 = vst.msk [vmem:[%s2240_s8 + $0xc0] sm:$0xff] %vm1088_vm1, %v889_v26  ;;  %v1200_v46 = vsel %vm1088_vm1, %v889_v26, 0.0  ;;  %v1312_v47 = vmul.f32 %v889_v26, %v889_v26  ;;  %1138 = vst.msk [vmem:[%s2240_s8 + $0x188] sm:$0xff] %vm1088_vm1, %v2433_v58  ;;  %v2440_v13 = vpop.f32.mrb[17].mxu1 }
 0x11e   : > { %v1201_v49 = vadd.f32 %v1200_v46, %v1199_v40  ;;  %v1398_v51 = vadd.f32 %v1397_v43, %v1396_v5  ;;  %v1401_v1 = vsel %vm1088_vm1, %v1313_v44, 0.0  ;;  %1137 = vst.msk [vmem:[%s2240_s8 + $0x180] sm:$0xff] %vm1088_vm1, %v2440_v13  ;;  %v1216_v44 = vsel %vm1088_vm1, %v2296_v20, 0.0 }
 0x11f   : > { %v1399_v54 = vsel %vm1088_vm1, %v1312_v47, 0.0  ;;  %v1759_v55 = vpop.f32.mrb[26].mxu0  ;;  %v1322_v20 = vmul.f32 %v2314_v35, %v2314_v35 }
 0x120   : > { %v1400_v57 = vadd.f32 %v1399_v54, %v1398_v51  ;;  %1116 = vst.msk [vmem:[%s2240_s8 + $0xd8] sm:$0xff] %vm1088_vm1, %v1759_v55  ;;  %v899_v60 = vpop.f32.mrb[27].mxu0  ;;  %v1203_v61 = vadd.f32 %v1202_v52, %v1201_v49  ;;  %v1315_v7 = vmul.f32 %v1759_v55, %v1759_v55  ;;  %v1206_v11 = vsel %vm1088_vm1, %v1759_v55, 0.0  ;;  %v2451_v29 = vpop.f32.mrb[18].mxu1 }
 0x121   : > { %1115 = vst.msk [vmem:[%s2240_s8 + $0xd0] sm:$0xff] %vm1088_vm1, %v899_v60  ;;  %v1204_v8 = vsel %vm1088_vm1, %v899_v60, 0.0  ;;  %v1314_v9 = vmul.f32 %v899_v60, %v899_v60  ;;  %1140 = vst.msk [vmem:[%s2240_s8 + $0x198] sm:$0xff] %vm1088_vm1, %v2451_v29  ;;  %v2460_v36 = vpop.f32.mrb[19].mxu1  ;;  %v1321_v54 = vmul.f32 %v2289_v15, %v2289_v15  ;;  %v1415_v55 = vsel %vm1088_vm1, %v1320_v34, 0.0 }
 0x122   : > { %v1205_v2 = vadd.f32 %v1204_v8, %v1203_v61  ;;  %v1402_v48 = vadd.f32 %v1401_v1, %v1400_v57  ;;  %v1405_v14 = vsel %vm1088_vm1, %v1315_v7, 0.0  ;;  %1139 = vst.msk [vmem:[%s2240_s8 + $0x190] sm:$0xff] %vm1088_vm1, %v2460_v36  ;;  %v1218_v61 = vsel %vm1088_vm1, %v2289_v15, 0.0 }
 0x123   : > { %v1403_v12 = vsel %vm1088_vm1, %v1314_v9, 0.0  ;;  %v1762_v41 = vpop.f32.mrb[28].mxu0  ;;  %v1220_v1 = vsel %vm1088_vm1, %v2314_v35, 0.0  ;;  %v1419_v15 = vsel %vm1088_vm1, %v1322_v20, 0.0  ;;  %v1324_v35 = vmul.f32 %v2332_v45, %v2332_v45 }
 0x124   : > { %v1404_v3 = vadd.f32 %v1403_v12, %v1402_v48  ;;  %1118 = vst.msk [vmem:[%s2240_s8 + $0xe8] sm:$0xff] %vm1088_vm1, %v1762_v41  ;;  %v909_v6 = vpop.f32.mrb[29].mxu0  ;;  %v1207_v10 = vadd.f32 %v1206_v11, %v1205_v2  ;;  %v1317_v16 = vmul.f32 %v1762_v41, %v1762_v41  ;;  %v1210_v50 = vsel %vm1088_vm1, %v1762_v41, 0.0  ;;  %v2473_v46 = vpop.f32.mrb[20].mxu1 }
 0x125   : > { %1117 = vst.msk [vmem:[%s2240_s8 + $0xe0] sm:$0xff] %vm1088_vm1, %v909_v6  ;;  %v1208_v18 = vsel %vm1088_vm1, %v909_v6, 0.0  ;;  %v1316_v19 = vmul.f32 %v909_v6, %v909_v6  ;;  %1142 = vst.msk [vmem:[%s2240_s8 + $0x1a8] sm:$0xff] %vm1088_vm1, %v2473_v46  ;;  %v2478_v51 = vpop.f32.mrb[21].mxu1  ;;  %v1417_v48 = vsel %vm1088_vm1, %v1321_v54, 0.0  ;;  %v1323_v11 = vmul.f32 %v2307_v63, %v2307_v63 }
 0x126   : > { %v1209_v22 = vadd.f32 %v1208_v18, %v1207_v10  ;;  %v1406_v23 = vadd.f32 %v1405_v14, %v1404_v3  ;;  %v1409_v37 = vsel %vm1088_vm1, %v1317_v16, 0.0  ;;  %1141 = vst.msk [vmem:[%s2240_s8 + $0x1a0] sm:$0xff] %vm1088_vm1, %v2478_v51  ;;  %v1222_v3 = vsel %vm1088_vm1, %v2307_v63, 0.0 }
 0x127   : > { %v1407_v24 = vsel %vm1088_vm1, %v1316_v19, 0.0  ;;  %v1765_v25 = vpop.f32.mrb[30].mxu0  ;;  %v1224_v6 = vsel %vm1088_vm1, %v2332_v45, 0.0  ;;  %v1421_v19 = vsel %vm1088_vm1, %v1323_v11, 0.0  ;;  %v1423_v63 = vsel %vm1088_vm1, %v1324_v35, 0.0 }
 0x128   : > { %v1408_v31 = vadd.f32 %v1407_v24, %v1406_v23  ;;  %1120 = vst.msk [vmem:[%s2240_s8 + $0xf8] sm:$0xff] %vm1088_vm1, %v1765_v25  ;;  %v919_v21 = vpop.f32.mrb[31].mxu0  ;;  %v1211_v32 = vadd.f32 %v1210_v50, %v1209_v22  ;;  %v1319_v27 = vmul.f32 %v1765_v25, %v1765_v25  ;;  %v1214_v40 = vsel %vm1088_vm1, %v1765_v25, 0.0  ;;  %v2493_v7 = vpop.f32.mrb[22].mxu1 }
 0x129   : > { %1119 = vst.msk [vmem:[%s2240_s8 + $0xf0] sm:$0xff] %vm1088_vm1, %v919_v21  ;;  %v1212_v28 = vsel %vm1088_vm1, %v919_v21, 0.0  ;;  %v1318_v38 = vmul.f32 %v919_v21, %v919_v21  ;;  %1144 = vst.msk [vmem:[%s2240_s8 + $0x1b8] sm:$0xff] %vm1088_vm1, %v2493_v7  ;;  %v2498_v2 = vpop.f32.mrb[23].mxu1  ;;  %v1325_v22 = vmul.f32 %v2325_v33, %v2325_v33  ;;  %v1326_v45 = vmul.f32 %v2350_v0, %v2350_v0 }
 0x12a   : > { %v1213_v5 = vadd.f32 %v1212_v28, %v1211_v32  ;;  %v1410_v26 = vadd.f32 %v1409_v37, %v1408_v31  ;;  %v1413_v52 = vsel %vm1088_vm1, %v1319_v27, 0.0  ;;  %1143 = vst.msk [vmem:[%s2240_s8 + $0x1b0] sm:$0xff] %vm1088_vm1, %v2498_v2  ;;  %v1226_v24 = vsel %vm1088_vm1, %v2325_v33, 0.0 }
 0x12b   : > { %v1411_v43 = vsel %vm1088_vm1, %v1318_v38, 0.0  ;;  %v1228_v25 = vsel %vm1088_vm1, %v2350_v0, 0.0  ;;  %v1425_v37 = vsel %vm1088_vm1, %v1325_v22, 0.0  ;;  %v1327_v27 = vmul.f32 %v2343_v59, %v2343_v59 }
 0x12c   : > { %v1215_v47 = vadd.f32 %v1214_v40, %v1213_v5  ;;  %v1412_v49 = vadd.f32 %v1411_v43, %v1410_v26  ;;  %v2513_v10 = vpop.f32.mrb[24].mxu1  ;;  %v1427_v33 = vsel %vm1088_vm1, %v1326_v45, 0.0  ;;  %v1328_v0 = vmul.f32 %v2368_v4, %v2368_v4 }
 0x12d   : > { %1146 = vst.msk [vmem:[%s2240_s8 + $0x1c8] sm:$0xff] %vm1088_vm1, %v2513_v10  ;;  %v2518_v18 = vpop.f32.mrb[25].mxu1  ;;  %v1230_v5 = vsel %vm1088_vm1, %v2343_v59, 0.0  ;;  %v1232_v26 = vsel %vm1088_vm1, %v2368_v4, 0.0  ;;  %v1330_v4 = vmul.f32 %v2386_v30, %v2386_v30  ;;  %v1234_v20 = vsel %vm1088_vm1, %v2361_v53, 0.0 }
 0x12e   : > { %v1414_v57 = vadd.f32 %v1413_v52, %v1412_v49  ;;  %v1217_v60 = vadd.f32 %v1216_v44, %v1215_v47  ;;  %1145 = vst.msk [vmem:[%s2240_s8 + $0x1c0] sm:$0xff] %vm1088_vm1, %v2518_v18  ;;  %v1429_v49 = vsel %vm1088_vm1, %v1327_v27, 0.0  ;;  %v1329_v52 = vmul.f32 %v2361_v53, %v2361_v53 }
 0x12f   : > { %v1431_v59 = vsel %vm1088_vm1, %v1328_v0, 0.0  ;;  %v1435_v11 = vsel %vm1088_vm1, %v1330_v4, 0.0  ;;  %v1332_v53 = vmul.f32 %v2404_v42, %v2404_v42  ;;  %v1238_v35 = vsel %vm1088_vm1, %v2379_v17, 0.0 }
 0x130   : > { %v1416_v8 = vadd.f32 %v1415_v55, %v1414_v57  ;;  %v1219_v9 = vadd.f32 %v1218_v61, %v1217_v60  ;;  %v2533_v31 = vpop.f32.mrb[26].mxu1  ;;  %v1236_v57 = vsel %vm1088_vm1, %v2386_v30, 0.0 }
 0x131   : > { %1148 = vst.msk [vmem:[%s2240_s8 + $0x1d8] sm:$0xff] %vm1088_vm1, %v2533_v31  ;;  %v2538_v34 = vpop.f32.mrb[27].mxu1 }
 0x132   : > { %v1221_v12 = vadd.f32 %v1220_v1, %v1219_v9  ;;  %v1418_v41 = vadd.f32 %v1417_v48, %v1416_v8  ;;  %1147 = vst.msk [vmem:[%s2240_s8 + $0x1d0] sm:$0xff] %vm1088_vm1, %v2538_v34  ;;  %v1433_v9 = vsel %vm1088_vm1, %v1329_v52, 0.0  ;;  %v1331_v48 = vmul.f32 %v2379_v17, %v2379_v17 }
 0x133   : > { %v1242_v17 = vsel %vm1088_vm1, %v2397_v39, 0.0 }
 0x134   : > { %v1420_v14 = vadd.f32 %v1419_v15, %v1418_v41  ;;  %v1223_v16 = vadd.f32 %v1222_v3, %v1221_v12  ;;  %v2553_v40 = vpop.f32.mrb[28].mxu1  ;;  %v1240_v12 = vsel %vm1088_vm1, %v2404_v42, 0.0  ;;  %v1244_v42 = vsel %vm1088_vm1, %v2422_v62, 0.0 }
 0x135   : > { %1150 = vst.msk [vmem:[%s2240_s8 + $0x1e8] sm:$0xff] %vm1088_vm1, %v2553_v40  ;;  %v2558_v47 = vpop.f32.mrb[29].mxu1 }
 0x136   : > { %v1225_v23 = vadd.f32 %v1224_v6, %v1223_v16  ;;  %v1422_v50 = vadd.f32 %v1421_v19, %v1420_v14  ;;  %1149 = vst.msk [vmem:[%s2240_s8 + $0x1e0] sm:$0xff] %vm1088_vm1, %v2558_v47  ;;  %v1437_v6 = vsel %vm1088_vm1, %v1331_v48, 0.0  ;;  %v1333_v14 = vmul.f32 %v2397_v39, %v2397_v39 }
 0x137   : > { %v1439_v16 = vsel %vm1088_vm1, %v1332_v53, 0.0  ;;  %v1334_v19 = vmul.f32 %v2422_v62, %v2422_v62  ;;  %v1246_v39 = vsel %vm1088_vm1, %v2415_v56, 0.0  ;;  %v1248_v62 = vsel %vm1088_vm1, %v2440_v13, 0.0 }
 0x138   : > { %v1424_v21 = vadd.f32 %v1423_v63, %v1422_v50  ;;  %v1227_v32 = vadd.f32 %v1226_v24, %v1225_v23  ;;  %v2573_v60 = vpop.f32.mrb[30].mxu1  ;;  %v1441_v50 = vsel %vm1088_vm1, %v1333_v14, 0.0  ;;  %v1335_v24 = vmul.f32 %v2415_v56, %v2415_v56 }
 0x139   : > { %1152 = vst.msk [vmem:[%s2240_s8 + $0x1f8] sm:$0xff] %vm1088_vm1, %v2573_v60  ;;  %v2578_v8 = vpop.f32.mrb[31].mxu1  ;;  %v1250_v56 = vsel %vm1088_vm1, %v2433_v58, 0.0 }
 0x13a   : > { %v1229_v28 = vadd.f32 %v1228_v25, %v1227_v32  ;;  %v1426_v38 = vadd.f32 %v1425_v37, %v1424_v21  ;;  %1151 = vst.msk [vmem:[%s2240_s8 + $0x1f0] sm:$0xff] %vm1088_vm1, %v2578_v8  ;;  %v1443_v25 = vsel %vm1088_vm1, %v1334_v19, 0.0  ;;  %v1336_v21 = vmul.f32 %v2440_v13, %v2440_v13 }
 0x13b   : > { %v1445_v0 = vsel %vm1088_vm1, %v1335_v24, 0.0  ;;  %v1252_v13 = vsel %vm1088_vm1, %v2460_v36, 0.0 }
 0x13c   : > { %v1428_v43 = vadd.f32 %v1427_v33, %v1426_v38  ;;  %v1231_v44 = vadd.f32 %v1230_v5, %v1229_v28  ;;  %v1337_v28 = vmul.f32 %v2433_v58, %v2433_v58  ;;  %v1447_v38 = vsel %vm1088_vm1, %v1336_v21, 0.0 }
 0x13d   : > { %v1338_v5 = vmul.f32 %v2460_v36, %v2460_v36  ;;  %v1254_v58 = vsel %vm1088_vm1, %v2451_v29, 0.0  ;;  %v1256_v36 = vsel %vm1088_vm1, %v2478_v51, 0.0 }
 0x13e   : > { %v1233_v54 = vadd.f32 %v1232_v26, %v1231_v44  ;;  %v1430_v55 = vadd.f32 %v1429_v49, %v1428_v43  ;;  %v1449_v52 = vsel %vm1088_vm1, %v1337_v28, 0.0 }
 0x13f   : > { %v1451_v4 = vsel %vm1088_vm1, %v1338_v5, 0.0 }
 0x140   : > { %v1432_v61 = vadd.f32 %v1431_v59, %v1430_v55  ;;  %v1235_v1 = vadd.f32 %v1234_v20, %v1233_v54  ;;  %v1339_v59 = vmul.f32 %v2451_v29, %v2451_v29  ;;  %v1340_v54 = vmul.f32 %v2478_v51, %v2478_v51 }
 0x141   : > { %v1258_v29 = vsel %vm1088_vm1, %v2473_v46, 0.0  ;;  %v1260_v51 = vsel %vm1088_vm1, %v2498_v2, 0.0 }
 0x142   : > { %v1237_v30 = vadd.f32 %v1236_v57, %v1235_v1  ;;  %v1434_v15 = vadd.f32 %v1433_v9, %v1432_v61  ;;  %v1453_v1 = vsel %vm1088_vm1, %v1339_v59, 0.0  ;;  %v1341_v9 = vmul.f32 %v2473_v46, %v2473_v46 }
 0x143   : > { %v1455_v48 = vsel %vm1088_vm1, %v1340_v54, 0.0  ;;  %v1262_v46 = vsel %vm1088_vm1, %v2493_v7, 0.0 }
 0x144   : > { %v1436_v41 = vadd.f32 %v1435_v11, %v1434_v15  ;;  %v1239_v3 = vadd.f32 %v1238_v35, %v1237_v30  ;;  %v1342_v11 = vmul.f32 %v2498_v2, %v2498_v2  ;;  %v1264_v2 = vsel %vm1088_vm1, %v2518_v18, 0.0 }
 0x146   : > { %v1241_v22 = vadd.f32 %v1240_v12, %v1239_v3  ;;  %v1438_v63 = vadd.f32 %v1437_v6, %v1436_v41  ;;  %v1457_v12 = vsel %vm1088_vm1, %v1341_v9, 0.0  ;;  %v1343_v41 = vmul.f32 %v2493_v7, %v2493_v7 }
 0x147   : > { %v1459_v3 = vsel %vm1088_vm1, %v1342_v11, 0.0  ;;  %v1344_v6 = vmul.f32 %v2518_v18, %v2518_v18  ;;  %v1266_v7 = vsel %vm1088_vm1, %v2513_v10, 0.0  ;;  %v1268_v18 = vsel %vm1088_vm1, %v2538_v34, 0.0 }
 0x148   : > { %v1440_v45 = vadd.f32 %v1439_v16, %v1438_v63  ;;  %v1243_v23 = vadd.f32 %v1242_v17, %v1241_v22  ;;  %v1461_v63 = vsel %vm1088_vm1, %v1343_v41, 0.0  ;;  %v1345_v17 = vmul.f32 %v2513_v10, %v2513_v10 }
 0x149   : > { %v1270_v10 = vsel %vm1088_vm1, %v2533_v31, 0.0 }
 0x14a   : > { %v1245_v32 = vadd.f32 %v1244_v42, %v1243_v23  ;;  %v1442_v37 = vadd.f32 %v1441_v50, %v1440_v45  ;;  %v1463_v42 = vsel %vm1088_vm1, %v1344_v6, 0.0  ;;  %v1346_v45 = vmul.f32 %v2538_v34, %v2538_v34 }
 0x14b   : > { %v1465_v21 = vsel %vm1088_vm1, %v1345_v17, 0.0  ;;  %v1272_v34 = vsel %vm1088_vm1, %v2558_v47, 0.0 }
 0x14c   : > { %v1444_v27 = vadd.f32 %v1443_v25, %v1442_v37  ;;  %v1247_v33 = vadd.f32 %v1246_v39, %v1245_v32  ;;  %v1347_v32 = vmul.f32 %v2533_v31, %v2533_v31  ;;  %v1467_v37 = vsel %vm1088_vm1, %v1346_v45, 0.0 }
 0x14d   : > { %v1348_v39 = vmul.f32 %v2558_v47, %v2558_v47  ;;  %v1274_v31 = vsel %vm1088_vm1, %v2553_v40, 0.0  ;;  %v1276_v47 = vsel %vm1088_vm1, %v2578_v8, 0.0 }
 0x14e   : > { %v1249_v26 = vadd.f32 %v1248_v62, %v1247_v33  ;;  %v1446_v43 = vadd.f32 %v1445_v0, %v1444_v27  ;;  %v1469_v28 = vsel %vm1088_vm1, %v1347_v32, 0.0 }
 0x14f   : > { %v1471_v5 = vsel %vm1088_vm1, %v1348_v39, 0.0 }
 0x150   : > { %v1448_v44 = vadd.f32 %v1447_v38, %v1446_v43  ;;  %v1251_v49 = vadd.f32 %v1250_v56, %v1249_v26  ;;  %v1349_v38 = vmul.f32 %v2553_v40, %v2553_v40  ;;  %v1350_v26 = vmul.f32 %v2578_v8, %v2578_v8 }
 0x152   : > { %v1253_v55 = vadd.f32 %v1252_v13, %v1251_v49  ;;  %v1450_v20 = vadd.f32 %v1449_v52, %v1448_v44  ;;  %v1473_v49 = vsel %vm1088_vm1, %v1349_v38, 0.0  ;;  %v1351_v52 = vmul.f32 %v2573_v60, %v2573_v60 }
 0x153   : > { %v1475_v59 = vsel %vm1088_vm1, %v1350_v26, 0.0 }
 0x154   : > { %v1452_v57 = vadd.f32 %v1451_v4, %v1450_v20  ;;  %v1255_v61 = vadd.f32 %v1254_v58, %v1253_v55  ;;  %v1278_v55 = vsel %vm1088_vm1, %v2573_v60, 0.0  ;;  %v1477_v58 = vsel %vm1088_vm1, %v1351_v52, 0.0 }
 0x156   : > { %v1257_v53 = vadd.f32 %v1256_v36, %v1255_v61  ;;  %v1454_v30 = vadd.f32 %v1453_v1, %v1452_v57 }
 0x158   : > { %v1456_v15 = vadd.f32 %v1455_v48, %v1454_v30  ;;  %v1259_v35 = vadd.f32 %v1258_v29, %v1257_v53 }
 0x15a   : > { %v1261_v14 = vadd.f32 %v1260_v51, %v1259_v35  ;;  %v1458_v16 = vadd.f32 %v1457_v12, %v1456_v15 }
 0x15c   : > { %v1460_v19 = vadd.f32 %v1459_v3, %v1458_v16  ;;  %v1263_v22 = vadd.f32 %v1262_v46, %v1261_v14 }
 0x15e   : > { %v1265_v23 = vadd.f32 %v1264_v2, %v1263_v22  ;;  %v1462_v50 = vadd.f32 %v1461_v63, %v1460_v19 }
 0x160   : > { %v1464_v24 = vadd.f32 %v1463_v42, %v1462_v50  ;;  %v1267_v25 = vadd.f32 %v1266_v7, %v1265_v23 }
 0x162   : > { %v1269_v62 = vadd.f32 %v1268_v18, %v1267_v25  ;;  %v1466_v27 = vadd.f32 %v1465_v21, %v1464_v24 }
 0x164   : > { %v1468_v33 = vadd.f32 %v1467_v37, %v1466_v27  ;;  %v1271_v0 = vadd.f32 %v1270_v10, %v1269_v62 }
 0x166   : > { %v1273_v43 = vadd.f32 %v1272_v34, %v1271_v0  ;;  %v1470_v56 = vadd.f32 %v1469_v28, %v1468_v33 }
 0x168   : > { %v1472_v13 = vadd.f32 %v1471_v5, %v1470_v56  ;;  %v1275_v44 = vadd.f32 %v1274_v31, %v1273_v43 }
 0x16a   : > { %v1277_v4 = vadd.f32 %v1276_v47, %v1275_v44  ;;  %v1474_v54 = vadd.f32 %v1473_v49, %v1472_v13 }
 0x16c   : > { %v1279_v40 = vadd.f32 %v1278_v55, %v1277_v4  ;;  %v1476_v20 = vadd.f32 %v1475_v59, %v1474_v54 }
 0x16e   : > { %v1280_v8 = vrot.slane %v1279_v40, 4  ;;  %v1478_v36 = vadd.f32 %v1477_v58, %v1476_v20 }
 0x170   : > { %v1281_v57 = vadd.f32 %v1280_v8, %v1279_v40  ;;  %v1479_v61 = vrot.slane %v1478_v36, 4 }
 0x172   : > { %v1282_v1 = vrot.slane %v1281_v57, 2  ;;  %v1480_v9 = vadd.f32 %v1479_v61, %v1478_v36 }
 0x174   : > { %v1283_v48 = vadd.f32 %v1282_v1, %v1281_v57  ;;  %v1481_v11 = vrot.slane %v1480_v9, 2 }
 0x176   : > { %v1284_v53 = vrot.slane %v1283_v48, 1  ;;  %v1482_v30 = vadd.f32 %v1481_v11, %v1480_v9 }
 0x178   : > { %v1285_v60 = vadd.f32 %v1284_v53, %v1283_v48  ;;  %v1483_v29 = vrot.slane %v1482_v30, 1 }
 0x17a   : > { %1287 = vst.msk [vmem:[%s238_s12] sm:$0x1] %vm1286_vm2, %v1285_v60  ;;  %v1484_v51 = vadd.f32 %v1483_v29, %v1482_v30 }
 0x17c   : > { %1485 = vst.msk [vmem:[%s238_s12 + $0x1] sm:$0x1] %vm1286_vm2, %v1484_v51 }
 0x17d PF: > { %s16_s18 = sadd.s32 1, %s1830_s18  }
 0x17e   : > { %p13_p5 = scmp.ge.s32.totalorder %s16_s18, 6  }
 0x180   :  { %15 = sbr.rel (!%p13_p5) target bundleno = 1 (0x1), region = 78 }

// kernel: decoder_block_forward.7
= control target key start
LH: loop header
LB: loop body
LE: loop exit
PB: predicated region body
PF: predicated region fallthrough
CT: control target
= control target key end

     0   :  { %s372_s12 = smov 0   ;;  %s398_s0 = inlined_call_operand.vmem [shape: f32[64,512], index: 0, kind: input, shape index: {}]   ;;  %s399_s1 = inlined_call_operand.vmem [shape: f32[1,512], index: 1, kind: input, shape index: {}]   ;;  %s400_s2 = inlined_call_operand.vmem [shape: f32[1,512], index: 2, kind: input, shape index: {}]   ;;  %s401_s3 = inlined_call_operand.vmem [shape: f32[64,512], index: 3, kind: output, shape index: {}]  }
   0x1 LB: > { %s321_s13 = sadd.s32 4294967295, %s350_s12   ;;  %p325_p0 = scmp.ge.s32.totalorder %s350_s12, 1  ;;  %s350_s12 = sphi %s372_s12, %s13_s12  }
   0x2   : > { %p139_p1 = scmp.lt.s32.totalorder %s350_s12, 5 }
   0x4   : > { %p140_p2 = pnand %p325_p0, %p139_p1 }
   0x5   : > { %s326_s14 = sshll.u32 (!%p140_p2), %s321_s13, 1  ;;  %v189_v0 = vlaneseq (!%p140_p2)  ;;  %v187_v2 = vld [vmem:[%s399_s1] sm:$0xf] (!%p140_p2) }
   0x6   : > { %143 = sbr.rel (%p140_p2) target bundleno = 27 (0x1b), region = 32  ;;  %p166_p3 = scmp.lt.s32.totalorder (!%p140_p2), %s326_s14, 7  ;;  %v217_v3 = vld [vmem:[%s400_s2] sm:$0xf] (!%p140_p2) }
   0x7   : > { %v190_v1 = vshrl.u32 (!%p140_p2), %v189_v0, 7 }
   0x9   : > { %v191_v4 = vsub.s32 (!%p140_p2), 0, %v190_v1  ;;  %v195_v5 = vsub.s32 (!%p140_p2), 1, %v190_v1  ;;  %v199_v6 = vsub.s32 (!%p140_p2), 2, %v190_v1  ;;  %v203_v7 = vsub.s32 (!%p140_p2), 3, %v190_v1 }
   0xb   : > { %v192_v8 = vrot.slane (!%p140_p2), %v187_v2, %v191_v4  ;;  %v222_v9 = vrot.slane (!%p140_p2), %v217_v3, %v191_v4  ;;  %v196_v10 = vrot.slane (!%p140_p2), %v187_v2, %v195_v5  ;;  %v226_v11 = vrot.slane (!%p140_p2), %v217_v3, %v195_v5 }
   0xc   : > { %v200_v15 = vrot.slane (!%p140_p2), %v187_v2, %v199_v6  ;;  %v230_v16 = vrot.slane (!%p140_p2), %v217_v3, %v199_v6  ;;  %v204_v17 = vrot.slane (!%p140_p2), %v187_v2, %v203_v7  ;;  %v234_v18 = vrot.slane (!%p140_p2), %v217_v3, %v203_v7 }
   0xd   : > { %s403_s14 = smov (!%p166_p3, %s326_s14), 7 }
   0xe   : > { %s334_s19 = sshll.u32 %s403_s14, 5 }
   0xf   : > { %s170_s22 = scalar_lea.vmem %s398_s0, %s334_s19  ;;  %s177_s25 = scalar_lea.vmem %s401_s3, %s334_s19 }
  0x10   : > { %v179_v12 = vld [vmem:[%s170_s22] sm:$0xff]  ;;  %v180_v13 = vld [vmem:[%s170_s22 + $0x8] sm:$0xff]  ;;  %v181_v14 = vld [vmem:[%s170_s22 + $0x10] sm:$0xff] }
  0x11   : > { %v209_v19 = vmul.f32 %v192_v8, %v179_v12  ;;  %v210_v20 = vmul.f32 %v196_v10, %v180_v13  ;;  %v182_v21 = vld [vmem:[%s170_s22 + $0x18] sm:$0xff]  ;;  %v183_v22 = vld [vmem:[%s170_s22 + $0x20] sm:$0xff]  ;;  %v184_v23 = vld [vmem:[%s170_s22 + $0x28] sm:$0xff]  ;;  %v211_v24 = vmul.f32 %v200_v15, %v181_v14 }
  0x12   : > { %v212_v25 = vmul.f32 %v204_v17, %v182_v21  ;;  %v213_v26 = vmul.f32 %v192_v8, %v183_v22  ;;  %v214_v27 = vmul.f32 %v196_v10, %v184_v23  ;;  %v185_v28 = vld [vmem:[%s170_s22 + $0x30] sm:$0xff]  ;;  %v186_v29 = vld [vmem:[%s170_s22 + $0x38] sm:$0xff] }
  0x13   : > { %v239_v30 = vadd.f32 %v222_v9, %v209_v19  ;;  %v240_v31 = vadd.f32 %v226_v11, %v210_v20  ;;  %v215_v32 = vmul.f32 %v200_v15, %v185_v28  ;;  %v216_v33 = vmul.f32 %v204_v17, %v186_v29 }
  0x14   : > { %v241_v34 = vadd.f32 %v230_v16, %v211_v24  ;;  %v242_v35 = vadd.f32 %v234_v18, %v212_v25  ;;  %v243_v36 = vadd.f32 %v222_v9, %v213_v26  ;;  %v244_v37 = vadd.f32 %v226_v11, %v214_v27 }
  0x15   : > { %v247_v38 = vmax.f32 %v239_v30, 0.0  ;;  %v248_v39 = vmax.f32 %v240_v31, 0.0  ;;  %v245_v40 = vadd.f32 %v230_v16, %v215_v32  ;;  %v246_v41 = vadd.f32 %v234_v18, %v216_v33 }
  0x16   : > { %v249_v42 = vmax.f32 %v241_v34, 0.0  ;;  %v250_v43 = vmax.f32 %v242_v35, 0.0  ;;  %v251_v44 = vmax.f32 %v243_v36, 0.0  ;;  %v252_v45 = vmax.f32 %v244_v37, 0.0 }
  0x17   : > { %255 = vst [vmem:[%s177_s25] sm:$0xff] %v247_v38  ;;  %256 = vst [vmem:[%s177_s25 + $0x8] sm:$0xff] %v248_v39  ;;  %v253_v46 = vmax.f32 %v245_v40, 0.0  ;;  %v254_v47 = vmax.f32 %v246_v41, 0.0 }
  0x18   : > { %257 = vst [vmem:[%s177_s25 + $0x10] sm:$0xff] %v249_v42  ;;  %258 = vst [vmem:[%s177_s25 + $0x18] sm:$0xff] %v250_v43 }
  0x19   : > { %259 = vst [vmem:[%s177_s25 + $0x20] sm:$0xff] %v251_v44  ;;  %260 = vst [vmem:[%s177_s25 + $0x28] sm:$0xff] %v252_v45 }
  0x1a   : > { %261 = vst [vmem:[%s177_s25 + $0x30] sm:$0xff] %v253_v46  ;;  %262 = vst [vmem:[%s177_s25 + $0x38] sm:$0xff] %v254_v47 }
  0x1b PF: > { %s13_s12 = sadd.s32 1, %s350_s12  }
  0x1c   : > { %p10_p4 = scmp.ge.s32.totalorder %s13_s12, 6  }
  0x1e   :  { %12 = sbr.rel (!%p10_p4) target bundleno = 1 (0x1), region = 62 }

</bundles_post_ra>
